<compile_context>
chip_gen: v7x
topology: tpu7x:2x2x1
jax: 0.10.0
libtpu: 0.0.40
codegen_flags: <defaults>
</compile_context>

<pallas_src>
import functools

import jax
import jax.numpy as jnp
from jax import lax
from jax.experimental import pallas as pl
from jax.experimental.pallas import tpu as pltpu

EPS = 1e-6


def _attn_block_kernel(x_hbm, x_res_ref, gamma_ref, beta_ref, memb_ref,
                       wq_ref, bq_ref, wk_ref, bk_ref, wv_ref, bv_ref,
                       wp_ref, bp_ref,
                       o_ref,
                       k_s, vp_s, scale_s, shift_s, xbuf, dma_sem,
                       *, group_size, scale, ck, n_chunks, hw):
    b = pl.program_id(0)
    qi = pl.program_id(2)
    cp = xbuf.shape[2]

    # ---- once per (batch, core-split): GroupNorm stats + k / (v @ Wproj) projections ----
    @pl.when(qi == 0)
    def _prologue():
        def start_copy(ci, slot):
            pltpu.make_async_copy(x_hbm.at[b, pl.ds(ci * ck, ck), :],
                                  xbuf.at[slot], dma_sem.at[slot]).start()

        def wait_copy(slot):
            pltpu.make_async_copy(x_hbm.at[b, pl.ds(0, ck), :],
                                  xbuf.at[slot], dma_sem.at[slot]).wait()

        ones_row = jnp.ones((1, ck), jnp.float32)

        # -- pass 1: chunked spatial sums (MXU ones-row reduction, stats in f32) --
        start_copy(0, 0)

        def stats_body(ci, carry):
            s1, s2 = carry
            slot = ci % 2
            wait_copy(slot)

            @pl.when(ci + 1 < n_chunks)
            def _():
                start_copy(ci + 1, 1 - slot)

            xc = xbuf[slot]                                          # (ck, Cp) f32
            s1 = s1 + jnp.dot(ones_row, xc, preferred_element_type=jnp.float32)
            s2 = s2 + jnp.dot(ones_row, xc * xc, preferred_element_type=jnp.float32)
            return s1, s2

        s1, s2 = lax.fori_loop(0, n_chunks, stats_body,
                               (jnp.zeros((1, cp), jnp.float32),
                                jnp.zeros((1, cp), jnp.float32)))

        memb = memb_ref[...]                                         # (G, Cp) 0/1 membership
        inv_n = jnp.float32(1.0 / (hw * group_size))
        cdims = (((1,), (1,)), ((), ()))                             # contract channel axes
        mean_g = lax.dot_general(s1, memb, cdims,
                                 preferred_element_type=jnp.float32) * inv_n   # (1, G)
        ex2_g = lax.dot_general(s2, memb, cdims,
                                preferred_element_type=jnp.float32) * inv_n
        var_g = ex2_g - mean_g * mean_g
        mean_c = jnp.dot(mean_g, memb, preferred_element_type=jnp.float32)     # (1, Cp)
        var_c = jnp.dot(var_g, memb, preferred_element_type=jnp.float32)
        inv_std = lax.rsqrt(var_c + EPS)
        scale_c = inv_std * gamma_ref[...]                           # h = x*scale_c + shift_c
        shift_c = beta_ref[...] - mean_c * scale_c
        scale_s[...] = scale_c
        shift_s[...] = shift_c

        # -- pass 2: chunked normalize + k / (v @ Wproj), bf16 MXU inputs, f32 accumulate --
        start_copy(0, 0)

        def proj_body(ci, carry):
            slot = ci % 2
            wait_copy(slot)

            @pl.when(ci + 1 < n_chunks)
            def _():
                start_copy(ci + 1, 1 - slot)

            xc = xbuf[slot]
            hb = (xc * scale_c + shift_c).astype(jnp.bfloat16)       # (ck, Cp)
            kc = jnp.dot(hb, wk_ref[...], preferred_element_type=jnp.float32) + bk_ref[...]
            vc = jnp.dot(hb, wv_ref[...], preferred_element_type=jnp.float32) + bv_ref[...]
            # Fold the output projection into v: (p @ v) @ Wp == p @ (v @ Wp).
            vpc = jnp.dot(vc.astype(jnp.bfloat16), wp_ref[...],
                          preferred_element_type=jnp.float32)
            row0 = pl.multiple_of(ci * ck, ck)
            k_s[pl.ds(row0, ck), :] = kc.astype(jnp.bfloat16)
            vp_s[pl.ds(row0, ck), :] = vpc.astype(jnp.bfloat16)
            return carry

        lax.fori_loop(0, n_chunks, proj_body, 0)

    # ---- per query-tile attention ----
    x_t = x_res_ref[0]                                               # (tq, Cp) f32 residual
    h_t = (x_t * scale_s[...] + shift_s[...]).astype(jnp.bfloat16)   # re-normalized tile
    # Recompute q per tile (same total FLOPs as a prologue pass); fold 1/sqrt(C) into q.
    q_t = ((jnp.dot(h_t, wq_ref[...], preferred_element_type=jnp.float32)
            + bq_ref[...]) * scale).astype(jnp.bfloat16)             # (tq, Cp)
    # q @ k^T without materializing k.T (contract the last axes of both operands).
    scores = lax.dot_general(q_t, k_s[...], (((1,), (1,)), ((), ())),
                             preferred_element_type=jnp.float32)     # (tq, HW) f32
    m = jnp.max(scores, axis=-1, keepdims=True)
    p = jnp.exp(scores - m)
    l = jnp.sum(p, axis=-1, keepdims=True)                           # (tq, 1)
    attn = jnp.dot(p.astype(jnp.bfloat16), vp_s[...],
                   preferred_element_type=jnp.float32)               # (tq, Cp), proj folded in
    out = x_t + attn * pl.reciprocal(l, approx=False) + bp_ref[...]
    o_ref[0] = out.astype(o_ref.dtype)


def _pick_divisor(n, cap, candidates=(1024, 512, 256, 128, 64, 32, 16, 8)):
    for t in candidates:
        if t <= cap and n % t == 0:
            return t
    return n


def _pick_tq(hw, score_budget_bytes=12 << 20):
    # Keep ~3 live f32 copies of the (tq, HW) score tile inside the budget.  Candidates are
    # multiples of the MXU tile (128 on v5e, 256 on v6e/v7x): bigger tq buys nothing since
    # k/v are already resident, it only inflates per-step VMEM.
    cap = max(8, score_budget_bytes // (3 * 4 * hw))
    return _pick_divisor(hw, cap)


def _pick_chunk(hw):
    # Prologue DMA/compute chunk: bounds all prologue temporaries to (chunk, Cp).
    return _pick_divisor(hw, 512)


def _vmem_limit_bytes():
    # Generation-aware scoped-VMEM limit: physical capacity minus ~14% headroom for Mosaic
    # internal scratch (v7x: ~55 of 64 MiB; v5e/v6e: ~110 of 128 MiB).
    try:
        cap = int(pltpu.get_tpu_info().vmem_capacity_bytes)
    except Exception:
        cap = 64 << 20
    return max(16 << 20, int(cap * 0.86))


def attn_block(x_nchw, params, num_groups=32, tq=None, prologue_chunk=None, core_split=None):
    """x_nchw: (B, C, H, W) float32. params: dict of weights (see init_params)."""
    B, C, H, W = x_nchw.shape
    assert C % num_groups == 0
    G = num_groups
    HW = H * W
    Cp = ((C + 127) // 128) * 128            # lane-dense channel padding
    if tq is None:
        tq = _pick_tq(HW)
    assert HW % tq == 0
    nq = HW // tq
    if core_split is None:
        # v7x dual-TensorCore: when batch alone can't feed both cores, split the query-tile
        # axis over a second "parallel" axis (each core re-runs the cheap prologue).
        core_split = 2 if (B == 1 and nq % 2 == 0) else 1
    assert nq % core_split == 0
    nqc = nq // core_split
    if prologue_chunk is None:
        prologue_chunk = _pick_chunk(HW)
    ck = prologue_chunk
    assert HW % ck == 0
    n_chunks = HW // ck

    # NCHW -> (B, HW, Cp): channels on lanes, zero-padded to a multiple of 128.
    x = jnp.transpose(x_nchw.reshape(B, C, HW), (0, 2, 1)).astype(jnp.float32)
    x = jnp.pad(x, ((0, 0), (0, 0), (0, Cp - C)))

    def pad_mat(w):   # (C, C) -> (Cp, Cp), bf16 for the MXU
        return jnp.zeros((Cp, Cp), jnp.bfloat16).at[:C, :C].set(w.astype(jnp.bfloat16))

    def pad_vec(v):   # (1, C) -> (1, Cp), f32
        return jnp.zeros((1, Cp), jnp.float32).at[:, :C].set(v.astype(jnp.float32))

    gs = C // G
    ch = jnp.arange(Cp)
    memb = ((ch[None, :] // gs == jnp.arange(G)[:, None]) & (ch[None, :] < C)
            ).astype(jnp.float32)                          # (G, Cp); pads belong to no group

    wq, wk, wv, wp = (pad_mat(params[k]) for k in ("wq", "wk", "wv", "wp"))
    bq, bk, bv, bp = (pad_vec(params[k]) for k in ("bq", "bk", "bv", "bp"))
    gamma, beta = pad_vec(params["gamma"]), pad_vec(params["beta"])

    kernel = functools.partial(_attn_block_kernel, group_size=gs,
                               scale=float(C) ** -0.5, ck=ck, n_chunks=n_chunks, hw=HW)

    tile_map = lambda b_, cs_, q_: (b_, cs_ * nqc + q_, 0)

    def call(single_buffer_consts):
        def const2d(shape):
            idx = lambda b_, cs_, q_: (0, 0)
            if single_buffer_consts:
                # Constant-index blocks: a second pipeline buffer is dead weight.
                return pl.BlockSpec(shape, idx, pipeline_mode=pl.Buffered(1))
            return pl.BlockSpec(shape, idx)

        return pl.pallas_call(
            kernel,
            out_shape=jax.ShapeDtypeStruct((B, HW, Cp), jnp.float32),
            grid_spec=pltpu.PrefetchScalarGridSpec(
                num_scalar_prefetch=0,
                grid=(B, core_split, nqc),
                in_specs=[
                    pl.BlockSpec(memory_space=pl.ANY),           # x in HBM (prologue DMA)
                    pl.BlockSpec((1, tq, Cp), tile_map),         # streamed residual tile
                    const2d((1, Cp)),    # gamma
                    const2d((1, Cp)),    # beta
                    const2d((G, Cp)),    # group membership
                    const2d((Cp, Cp)),   # Wq   (pre-transposed: y = x @ W)
                    const2d((1, Cp)),    # bq
                    const2d((Cp, Cp)),   # Wk
                    const2d((1, Cp)),    # bk
                    const2d((Cp, Cp)),   # Wv
                    const2d((1, Cp)),    # bv
                    const2d((Cp, Cp)),   # Wproj
                    const2d((1, Cp)),    # bproj
                ],
                out_specs=pl.BlockSpec((1, tq, Cp), tile_map),
                scratch_shapes=[
                    pltpu.VMEM((HW, Cp), jnp.bfloat16),          # k
                    pltpu.VMEM((HW, Cp), jnp.bfloat16),          # v @ Wproj
                    pltpu.VMEM((1, Cp), jnp.float32),            # GroupNorm scale_c
                    pltpu.VMEM((1, Cp), jnp.float32),            # GroupNorm shift_c
                    pltpu.VMEM((2, ck, Cp), jnp.float32),        # prologue DMA chunk buffers
                    pltpu.SemaphoreType.DMA((2,)),
                ],
            ),
            compiler_params=pltpu.CompilerParams(
                dimension_semantics=("parallel", "parallel", "arbitrary"),
                vmem_limit_bytes=_vmem_limit_bytes(),
            ),
        )(x, x, gamma, beta, memb, wq, bq, wk, bk, wv, bv, wp, bp)

    try:
        out = call(single_buffer_consts=True)
    except Exception:
        # pl.Buffered(1) not accepted by this jax/backend: fall back to default pipelining
        # (identical semantics, slightly more VMEM).
        out = call(single_buffer_consts=False)

    # (B, HW, Cp) -> NCHW, dropping channel padding.
    return jnp.transpose(out[:, :, :C], (0, 2, 1)).reshape(B, C, H, W)


def init_params(key, C):
    """Deterministic synthetic parameters. Conv weights stored transposed:
    torch conv weight is (Cout, Cin, 1, 1); here w = W_torch.T so y = x @ w + b."""
    keys = jax.random.split(key, 10)
    s = 0.1
    return {
        "gamma": jax.random.normal(keys[0], (1, C), jnp.float32) * 0.1 + 1.0,
        "beta": jax.random.normal(keys[1], (1, C), jnp.float32) * 0.1,
        "wq": jax.random.normal(keys[2], (C, C), jnp.float32) * s,
        "bq": jax.random.normal(keys[3], (1, C), jnp.float32) * s,
        "wk": jax.random.normal(keys[4], (C, C), jnp.float32) * s,
        "bk": jax.random.normal(keys[5], (1, C), jnp.float32) * s,
        "wv": jax.random.normal(keys[6], (C, C), jnp.float32) * s,
        "bv": jax.random.normal(keys[7], (1, C), jnp.float32) * s,
        "wp": jax.random.normal(keys[8], (C, C), jnp.float32) * s,
        "bp": jax.random.normal(keys[9], (1, C), jnp.float32) * s,
    }


def attn_block_ref(x, p, num_groups=32):
    """Pure-JAX f32 reference mirroring the PyTorch forward (NCHW)."""
    B, C, H, W = x.shape
    G = num_groups
    xg = x.reshape(B, G, C // G, H, W)
    mean = xg.mean(axis=(2, 3, 4), keepdims=True)
    var = xg.var(axis=(2, 3, 4), keepdims=True)
    h_ = ((xg - mean) / jnp.sqrt(var + EPS)).reshape(B, C, H, W)
    h_ = h_ * p["gamma"].reshape(1, C, 1, 1) + p["beta"].reshape(1, C, 1, 1)

    def conv(z, w, b):
        return jnp.einsum("bchw,cd->bdhw", z, w) + b.reshape(1, C, 1, 1)

    q = conv(h_, p["wq"], p["bq"])
    k = conv(h_, p["wk"], p["bk"])
    v = conv(h_, p["wv"], p["bv"])
    HW = H * W
    q = q.reshape(B, C, HW).transpose(0, 2, 1)       # (B, HW, C)
    k = k.reshape(B, C, HW)                          # (B, C, HW)
    w_ = jnp.einsum("bic,bcj->bij", q, k) * (C ** -0.5)
    w_ = jax.nn.softmax(w_, axis=2)
    v = v.reshape(B, C, HW)
    h2 = jnp.einsum("bcj,bij->bci", v, w_).reshape(B, C, H, W)
    h2 = conv(h2, p["wp"], p["bp"])
    return x + h2


if __name__ == "__main__":
    key = jax.random.PRNGKey(0)
    kx, kp, kx2, kp2 = jax.random.split(key, 4)

    # Case 1: B=2, C=32 (GroupNorm(32) needs C % 32 == 0), 8x8 spatial.
    # tq=16 -> 4 query tiles/image and prologue_chunk=16 -> 4 DMA chunks: exercises both
    # the tiled attention path and the chunked, double-buffered prologue DMA.
    B, C, H, W = 2, 32, 8, 8
    x = jax.random.normal(kx, (B, C, H, W), jnp.float32)
    params = init_params(kp, C)
    out = jax.block_until_ready(attn_block(x, params, tq=16, prologue_chunk=16))
    ref = attn_block_ref(x, params)
    assert out.shape == (B, C, H, W)
    # bf16 MXU inputs (k, v@Wp, q, p) => looser tolerance than pure f32.
    assert jnp.allclose(out, ref, atol=3e-2, rtol=3e-2), float(jnp.max(jnp.abs(out - ref)))

    # Case 2: B=1, C=64 -> exercises the core-split ("parallel") query axis that feeds both
    # v7x TensorCores when batch alone cannot (each core re-runs the prologue).
    x2 = jax.random.normal(kx2, (1, 64, 8, 8), jnp.float32)
    params2 = init_params(kp2, 64)
    out2 = jax.block_until_ready(attn_block(x2, params2, tq=16))
    ref2 = attn_block_ref(x2, params2)
    assert jnp.allclose(out2, ref2, atol=3e-2, rtol=3e-2), float(jnp.max(jnp.abs(out2 - ref2)))

    print("KERNEL_OK")
</pallas_src>

<mosaic_0001>
module attributes {stable_mosaic.version = 11 : i64} {
  func.func @_attn_block_kernel(%arg0: i32, %arg1: i32, %arg2: i32, %arg3: memref<2x64x128xf32, #tpu.memory_space<any>>, %arg4: memref<1x16x128xf32, #tpu.memory_space<vmem>>, %arg5: memref<1x128xf32, #tpu.memory_space<vmem>>, %arg6: memref<1x128xf32, #tpu.memory_space<vmem>>, %arg7: memref<32x128xf32, #tpu.memory_space<vmem>>, %arg8: memref<128x128xbf16, #tpu.memory_space<vmem>>, %arg9: memref<1x128xf32, #tpu.memory_space<vmem>>, %arg10: memref<128x128xbf16, #tpu.memory_space<vmem>>, %arg11: memref<1x128xf32, #tpu.memory_space<vmem>>, %arg12: memref<128x128xbf16, #tpu.memory_space<vmem>>, %arg13: memref<1x128xf32, #tpu.memory_space<vmem>>, %arg14: memref<128x128xbf16, #tpu.memory_space<vmem>>, %arg15: memref<1x128xf32, #tpu.memory_space<vmem>>, %arg16: memref<1x16x128xf32, #tpu.memory_space<vmem>>, %arg17: memref<64x128xbf16, #tpu.memory_space<vmem>>, %arg18: memref<64x128xbf16, #tpu.memory_space<vmem>>, %arg19: memref<1x128xf32, #tpu.memory_space<vmem>>, %arg20: memref<1x128xf32, #tpu.memory_space<vmem>>, %arg21: memref<2x16x128xf32, #tpu.memory_space<vmem>>, %arg22: memref<2x!tpu.dma_semaphore, #tpu.memory_space<semaphore_mem>>) attributes {dimension_semantics = [#tpu.dimension_semantics<parallel>, #tpu.dimension_semantics<parallel>, #tpu.dimension_semantics<arbitrary>], iteration_bounds = array<i64: 2, 1, 4>, scalar_prefetch = 0 : i64, scratch_operands = 6 : i64, tpu.core_type = #tpu.core_type<tc>, window_params = [{}, {transform_indices = @transform_1, window_bounds = array<i64: 1, 16, 128>}, {pipeline_mode = #tpu.pipeline_mode<synchronous>, transform_indices = @transform_2, window_bounds = array<i64: 1, 128>}, {pipeline_mode = #tpu.pipeline_mode<synchronous>, transform_indices = @transform_3, window_bounds = array<i64: 1, 128>}, {pipeline_mode = #tpu.pipeline_mode<synchronous>, transform_indices = @transform_4, window_bounds = array<i64: 32, 128>}, {pipeline_mode = #tpu.pipeline_mode<synchronous>, transform_indices = @transform_5, window_bounds = array<i64: 128, 128>}, {pipeline_mode = #tpu.pipeline_mode<synchronous>, transform_indices = @transform_6, window_bounds = array<i64: 1, 128>}, {pipeline_mode = #tpu.pipeline_mode<synchronous>, transform_indices = @transform_7, window_bounds = array<i64: 128, 128>}, {pipeline_mode = #tpu.pipeline_mode<synchronous>, transform_indices = @transform_8, window_bounds = array<i64: 1, 128>}, {pipeline_mode = #tpu.pipeline_mode<synchronous>, transform_indices = @transform_9, window_bounds = array<i64: 128, 128>}, {pipeline_mode = #tpu.pipeline_mode<synchronous>, transform_indices = @transform_10, window_bounds = array<i64: 1, 128>}, {pipeline_mode = #tpu.pipeline_mode<synchronous>, transform_indices = @transform_11, window_bounds = array<i64: 128, 128>}, {pipeline_mode = #tpu.pipeline_mode<synchronous>, transform_indices = @transform_12, window_bounds = array<i64: 1, 128>}, {transform_indices = @transform_13, window_bounds = array<i64: 1, 16, 128>}]} {
    %c0_i32 = arith.constant 0 : i32
    %0 = arith.cmpi eq, %arg2, %c0_i32 : i32
    %1 = arith.extui %0 : i1 to i32
    %c0_i32_0 = arith.constant 0 : i32
    %2 = arith.cmpi ne, %1, %c0_i32_0 : i32
    scf.if %2 {
      %cst_25 = arith.constant 1.000000e+00 : f32
      %42 = vector.broadcast %cst_25 : f32 to vector<1x16xf32>
      %c0_i32_26 = arith.constant 0 : i32
      %c0_i32_27 = arith.constant 0 : i32
      %c0_i32_28 = arith.constant 0 : i32
      %c0_i32_29 = arith.constant 0 : i32
      %43 = tpu.memref_slice %arg3[%arg0, %c0_i32_28, %c0_i32_29] : memref<2x64x128xf32, #tpu.memory_space<any>> -> memref<1x16x128xf32, #tpu.memory_space<any>>
      %44 = tpu.memref_squeeze %43 : memref<1x16x128xf32, #tpu.memory_space<any>> -> memref<16x128xf32, #tpu.memory_space<any>>
      %c0_i32_30 = arith.constant 0 : i32
      %c0_i32_31 = arith.constant 0 : i32
      %45 = tpu.memref_slice %arg21[%c0_i32_26, %c0_i32_30, %c0_i32_31] : memref<2x16x128xf32, #tpu.memory_space<vmem>> -> memref<1x16x128xf32, #tpu.memory_space<vmem>>
      %46 = tpu.memref_squeeze %45 : memref<1x16x128xf32, #tpu.memory_space<vmem>> -> memref<16x128xf32, #tpu.memory_space<vmem>>
      %47 = tpu.memref_slice %arg22[%c0_i32_27] : memref<2x!tpu.dma_semaphore, #tpu.memory_space<semaphore_mem>> -> memref<1x!tpu.dma_semaphore, #tpu.memory_space<semaphore_mem>>
      %48 = tpu.memref_squeeze %47 : memref<1x!tpu.dma_semaphore, #tpu.memory_space<semaphore_mem>> -> memref<!tpu.dma_semaphore, #tpu.memory_space<semaphore_mem>>
      tpu.enqueue_dma source(%44 : memref<16x128xf32, #tpu.memory_space<any>>) target(%46 : memref<16x128xf32, #tpu.memory_space<vmem>>) target_semaphore(%48 : memref<!tpu.dma_semaphore, #tpu.memory_space<semaphore_mem>>)
      %cst_32 = arith.constant 0.000000e+00 : f32
      %49 = vector.broadcast %cst_32 : f32 to vector<1x128xf32>
      %cst_33 = arith.constant 0.000000e+00 : f32
      %50 = vector.broadcast %cst_33 : f32 to vector<1x128xf32>
      %c0_i32_34 = arith.constant 0 : i32
      %c4_i32 = arith.constant 4 : i32
      %51 = arith.addi %c0_i32_34, %c4_i32 : i32
      %c1_i32 = arith.constant 1 : i32
      %52:2 = scf.for %arg23 = %c0_i32_34 to %51 step %c1_i32 iter_args(%arg24 = %49, %arg25 = %50) -> (vector<1x128xf32>, vector<1x128xf32>)  : i32 {
        %c2_i32 = arith.constant 2 : i32
        %c0_i32_63 = arith.constant 0 : i32
        %81 = arith.cmpi eq, %c2_i32, %c0_i32_63 : i32
        %c1_i32_64 = arith.constant 1 : i32
        %82 = arith.select %81, %c1_i32_64, %c2_i32 : i32
        %83 = arith.remsi %arg23, %82 : i32
        %c0_i32_65 = arith.constant 0 : i32
        %84 = arith.cmpi ne, %83, %c0_i32_65 : i32
        %c0_i32_66 = arith.constant 0 : i32
        %85 = arith.cmpi slt, %83, %c0_i32_66 : i32
        %c0_i32_67 = arith.constant 0 : i32
        %86 = arith.cmpi slt, %82, %c0_i32_67 : i32
        %87 = arith.xori %85, %86 : i1
        %88 = arith.andi %87, %84 : i1
        %89 = arith.addi %83, %82 : i32
        %90 = arith.select %88, %89, %83 : i32
        %c0_i32_68 = arith.constant 0 : i32
        %c0_i32_69 = arith.constant 0 : i32
        %91 = tpu.memref_slice %arg3[%arg0, %c0_i32_68, %c0_i32_69] : memref<2x64x128xf32, #tpu.memory_space<any>> -> memref<1x16x128xf32, #tpu.memory_space<any>>
        %92 = tpu.memref_squeeze %91 : memref<1x16x128xf32, #tpu.memory_space<any>> -> memref<16x128xf32, #tpu.memory_space<any>>
        %c0_i32_70 = arith.constant 0 : i32
        %c0_i32_71 = arith.constant 0 : i32
        %93 = tpu.memref_slice %arg21[%90, %c0_i32_70, %c0_i32_71] : memref<2x16x128xf32, #tpu.memory_space<vmem>> -> memref<1x16x128xf32, #tpu.memory_space<vmem>>
        %94 = tpu.memref_squeeze %93 : memref<1x16x128xf32, #tpu.memory_space<vmem>> -> memref<16x128xf32, #tpu.memory_space<vmem>>
        %95 = tpu.memref_slice %arg22[%90] : memref<2x!tpu.dma_semaphore, #tpu.memory_space<semaphore_mem>> -> memref<1x!tpu.dma_semaphore, #tpu.memory_space<semaphore_mem>>
        %96 = tpu.memref_squeeze %95 : memref<1x!tpu.dma_semaphore, #tpu.memory_space<semaphore_mem>> -> memref<!tpu.dma_semaphore, #tpu.memory_space<semaphore_mem>>
        tpu.wait_dma2 semaphore(%96 : memref<!tpu.dma_semaphore, #tpu.memory_space<semaphore_mem>>) src(%92 : memref<16x128xf32, #tpu.memory_space<any>>) dst(%94 : memref<16x128xf32, #tpu.memory_space<vmem>>)
        %c1_i32_72 = arith.constant 1 : i32
        %97 = arith.addi %arg23, %c1_i32_72 : i32
        %c4_i32_73 = arith.constant 4 : i32
        %98 = arith.cmpi slt, %97, %c4_i32_73 : i32
        %99 = arith.extui %98 : i1 to i32
        %c0_i32_74 = arith.constant 0 : i32
        %100 = arith.cmpi ne, %99, %c0_i32_74 : i32
        scf.if %100 {
          %c1_i32_79 = arith.constant 1 : i32
          %109 = arith.addi %arg23, %c1_i32_79 : i32
          %c1_i32_80 = arith.constant 1 : i32
          %110 = arith.subi %c1_i32_80, %90 : i32
          %c16_i32 = arith.constant 16 : i32
          %111 = arith.muli %109, %c16_i32 : i32
          %c0_i32_81 = arith.constant 0 : i32
          %112 = tpu.memref_slice %arg3[%arg0, %111, %c0_i32_81] : memref<2x64x128xf32, #tpu.memory_space<any>> -> memref<1x16x128xf32, #tpu.memory_space<any>>
          %113 = tpu.memref_squeeze %112 : memref<1x16x128xf32, #tpu.memory_space<any>> -> memref<16x128xf32, #tpu.memory_space<any>>
          %c0_i32_82 = arith.constant 0 : i32
          %c0_i32_83 = arith.constant 0 : i32
          %114 = tpu.memref_slice %arg21[%110, %c0_i32_82, %c0_i32_83] : memref<2x16x128xf32, #tpu.memory_space<vmem>> -> memref<1x16x128xf32, #tpu.memory_space<vmem>>
          %115 = tpu.memref_squeeze %114 : memref<1x16x128xf32, #tpu.memory_space<vmem>> -> memref<16x128xf32, #tpu.memory_space<vmem>>
          %116 = tpu.memref_slice %arg22[%110] : memref<2x!tpu.dma_semaphore, #tpu.memory_space<semaphore_mem>> -> memref<1x!tpu.dma_semaphore, #tpu.memory_space<semaphore_mem>>
          %117 = tpu.memref_squeeze %116 : memref<1x!tpu.dma_semaphore, #tpu.memory_space<semaphore_mem>> -> memref<!tpu.dma_semaphore, #tpu.memory_space<semaphore_mem>>
          tpu.enqueue_dma source(%113 : memref<16x128xf32, #tpu.memory_space<any>>) target(%115 : memref<16x128xf32, #tpu.memory_space<vmem>>) target_semaphore(%117 : memref<!tpu.dma_semaphore, #tpu.memory_space<semaphore_mem>>)
        } else {
        }
        %101 = arith.index_cast %90 : i32 to index
        %c0_75 = arith.constant 0 : index
        %c0_76 = arith.constant 0 : index
        %102 = vector.load %arg21[%101, %c0_75, %c0_76] : memref<2x16x128xf32, #tpu.memory_space<vmem>>, vector<1x16x128xf32>
        %103 = vector.shape_cast %102 : vector<1x16x128xf32> to vector<16x128xf32>
        %cst_77 = arith.constant dense<0.000000e+00> : vector<1x128xf32>
        %104 = tpu.matmul %42, %103, %cst_77 {dimension_numbers = #tpu.dot_dimension_numbers<[1], [0], [0], [1], [0, 0, 1, 1], [], []>} : vector<1x16xf32>, vector<16x128xf32>, vector<1x128xf32> -> vector<1x128xf32>
        %105 = arith.addf %arg24, %104 : vector<1x128xf32>
        %106 = arith.mulf %103, %103 : vector<16x128xf32>
        %cst_78 = arith.constant dense<0.000000e+00> : vector<1x128xf32>
        %107 = tpu.matmul %42, %106, %cst_78 {dimension_numbers = #tpu.dot_dimension_numbers<[1], [0], [0], [1], [0, 0, 1, 1], [], []>} : vector<1x16xf32>, vector<16x128xf32>, vector<1x128xf32> -> vector<1x128xf32>
        %108 = arith.addf %arg25, %107 : vector<1x128xf32>
        scf.yield %105, %108 : vector<1x128xf32>, vector<1x128xf32>
      }
      %c4_i32_35 = arith.constant 4 : i32
      %c0_36 = arith.constant 0 : index
      %c0_37 = arith.constant 0 : index
      %53 = vector.load %arg7[%c0_36, %c0_37] : memref<32x128xf32, #tpu.memory_space<vmem>>, vector<32x128xf32>
      %cst_38 = arith.constant dense<0.000000e+00> : vector<1x32xf32>
      %54 = tpu.matmul %52#0, %53, %cst_38 {dimension_numbers = #tpu.dot_dimension_numbers<[1], [1], [0], [0], [0, 0, 1, 0], [], []>} : vector<1x128xf32>, vector<32x128xf32>, vector<1x32xf32> -> vector<1x32xf32>
      %cst_39 = arith.constant 1.562500e-02 : f32
      %55 = vector.broadcast %cst_39 : f32 to vector<1x32xf32>
      %56 = arith.mulf %54, %55 : vector<1x32xf32>
      %cst_40 = arith.constant dense<0.000000e+00> : vector<1x32xf32>
      %57 = tpu.matmul %52#1, %53, %cst_40 {dimension_numbers = #tpu.dot_dimension_numbers<[1], [1], [0], [0], [0, 0, 1, 0], [], []>} : vector<1x128xf32>, vector<32x128xf32>, vector<1x32xf32> -> vector<1x32xf32>
      %cst_41 = arith.constant 1.562500e-02 : f32
      %58 = vector.broadcast %cst_41 : f32 to vector<1x32xf32>
      %59 = arith.mulf %57, %58 : vector<1x32xf32>
      %60 = arith.mulf %56, %56 : vector<1x32xf32>
      %61 = arith.subf %59, %60 : vector<1x32xf32>
      %cst_42 = arith.constant dense<0.000000e+00> : vector<1x128xf32>
      %62 = tpu.matmul %56, %53, %cst_42 {dimension_numbers = #tpu.dot_dimension_numbers<[1], [0], [0], [1], [0, 0, 1, 1], [], []>} : vector<1x32xf32>, vector<32x128xf32>, vector<1x128xf32> -> vector<1x128xf32>
      %cst_43 = arith.constant dense<0.000000e+00> : vector<1x128xf32>
      %63 = tpu.matmul %61, %53, %cst_43 {dimension_numbers = #tpu.dot_dimension_numbers<[1], [0], [0], [1], [0, 0, 1, 1], [], []>} : vector<1x32xf32>, vector<32x128xf32>, vector<1x128xf32> -> vector<1x128xf32>
      %cst_44 = arith.constant 9.99999997E-7 : f32
      %64 = vector.broadcast %cst_44 : f32 to vector<1x128xf32>
      %65 = arith.addf %63, %64 : vector<1x128xf32>
      %66 = math.rsqrt %65 : vector<1x128xf32>
      %c0_45 = arith.constant 0 : index
      %c0_46 = arith.constant 0 : index
      %67 = vector.load %arg5[%c0_45, %c0_46] : memref<1x128xf32, #tpu.memory_space<vmem>>, vector<1x128xf32>
      %68 = arith.mulf %66, %67 : vector<1x128xf32>
      %c0_47 = arith.constant 0 : index
      %c0_48 = arith.constant 0 : index
      %69 = vector.load %arg6[%c0_47, %c0_48] : memref<1x128xf32, #tpu.memory_space<vmem>>, vector<1x128xf32>
      %70 = arith.mulf %62, %68 : vector<1x128xf32>
      %71 = arith.subf %69, %70 : vector<1x128xf32>
      %c0_49 = arith.constant 0 : index
      %c0_50 = arith.constant 0 : index
      %72 = vector.load %arg19[%c0_49, %c0_50] : memref<1x128xf32, #tpu.memory_space<vmem>>, vector<1x128xf32>
      tpu.vector_store %arg19[%c0_49, %c0_50], %68 {strides = array<i32>} : memref<1x128xf32, #tpu.memory_space<vmem>>, vector<1x128xf32>,
      %c0_51 = arith.constant 0 : index
      %c0_52 = arith.constant 0 : index
      %73 = vector.load %arg20[%c0_51, %c0_52] : memref<1x128xf32, #tpu.memory_space<vmem>>, vector<1x128xf32>
      tpu.vector_store %arg20[%c0_51, %c0_52], %71 {strides = array<i32>} : memref<1x128xf32, #tpu.memory_space<vmem>>, vector<1x128xf32>,
      %c0_i32_53 = arith.constant 0 : i32
      %c0_i32_54 = arith.constant 0 : i32
      %c0_i32_55 = arith.constant 0 : i32
      %c0_i32_56 = arith.constant 0 : i32
      %74 = tpu.memref_slice %arg3[%arg0, %c0_i32_55, %c0_i32_56] : memref<2x64x128xf32, #tpu.memory_space<any>> -> memref<1x16x128xf32, #tpu.memory_space<any>>
      %75 = tpu.memref_squeeze %74 : memref<1x16x128xf32, #tpu.memory_space<any>> -> memref<16x128xf32, #tpu.memory_space<any>>
      %c0_i32_57 = arith.constant 0 : i32
      %c0_i32_58 = arith.constant 0 : i32
      %76 = tpu.memref_slice %arg21[%c0_i32_53, %c0_i32_57, %c0_i32_58] : memref<2x16x128xf32, #tpu.memory_space<vmem>> -> memref<1x16x128xf32, #tpu.memory_space<vmem>>
      %77 = tpu.memref_squeeze %76 : memref<1x16x128xf32, #tpu.memory_space<vmem>> -> memref<16x128xf32, #tpu.memory_space<vmem>>
      %78 = tpu.memref_slice %arg22[%c0_i32_54] : memref<2x!tpu.dma_semaphore, #tpu.memory_space<semaphore_mem>> -> memref<1x!tpu.dma_semaphore, #tpu.memory_space<semaphore_mem>>
      %79 = tpu.memref_squeeze %78 : memref<1x!tpu.dma_semaphore, #tpu.memory_space<semaphore_mem>> -> memref<!tpu.dma_semaphore, #tpu.memory_space<semaphore_mem>>
      tpu.enqueue_dma source(%75 : memref<16x128xf32, #tpu.memory_space<any>>) target(%77 : memref<16x128xf32, #tpu.memory_space<vmem>>) target_semaphore(%79 : memref<!tpu.dma_semaphore, #tpu.memory_space<semaphore_mem>>)
      %c0_i32_59 = arith.constant 0 : i32
      %c4_i32_60 = arith.constant 4 : i32
      %80 = arith.addi %c0_i32_59, %c4_i32_60 : i32
      %c1_i32_61 = arith.constant 1 : i32
      scf.for %arg23 = %c0_i32_59 to %80 step %c1_i32_61  : i32 {
        %c2_i32 = arith.constant 2 : i32
        %c0_i32_63 = arith.constant 0 : i32
        %81 = arith.cmpi eq, %c2_i32, %c0_i32_63 : i32
        %c1_i32_64 = arith.constant 1 : i32
        %82 = arith.select %81, %c1_i32_64, %c2_i32 : i32
        %83 = arith.remsi %arg23, %82 : i32
        %c0_i32_65 = arith.constant 0 : i32
        %84 = arith.cmpi ne, %83, %c0_i32_65 : i32
        %c0_i32_66 = arith.constant 0 : i32
        %85 = arith.cmpi slt, %83, %c0_i32_66 : i32
        %c0_i32_67 = arith.constant 0 : i32
        %86 = arith.cmpi slt, %82, %c0_i32_67 : i32
        %87 = arith.xori %85, %86 : i1
        %88 = arith.andi %87, %84 : i1
        %89 = arith.addi %83, %82 : i32
        %90 = arith.select %88, %89, %83 : i32
        %c0_i32_68 = arith.constant 0 : i32
        %c0_i32_69 = arith.constant 0 : i32
        %91 = tpu.memref_slice %arg3[%arg0, %c0_i32_68, %c0_i32_69] : memref<2x64x128xf32, #tpu.memory_space<any>> -> memref<1x16x128xf32, #tpu.memory_space<any>>
        %92 = tpu.memref_squeeze %91 : memref<1x16x128xf32, #tpu.memory_space<any>> -> memref<16x128xf32, #tpu.memory_space<any>>
        %c0_i32_70 = arith.constant 0 : i32
        %c0_i32_71 = arith.constant 0 : i32
        %93 = tpu.memref_slice %arg21[%90, %c0_i32_70, %c0_i32_71] : memref<2x16x128xf32, #tpu.memory_space<vmem>> -> memref<1x16x128xf32, #tpu.memory_space<vmem>>
        %94 = tpu.memref_squeeze %93 : memref<1x16x128xf32, #tpu.memory_space<vmem>> -> memref<16x128xf32, #tpu.memory_space<vmem>>
        %95 = tpu.memref_slice %arg22[%90] : memref<2x!tpu.dma_semaphore, #tpu.memory_space<semaphore_mem>> -> memref<1x!tpu.dma_semaphore, #tpu.memory_space<semaphore_mem>>
        %96 = tpu.memref_squeeze %95 : memref<1x!tpu.dma_semaphore, #tpu.memory_space<semaphore_mem>> -> memref<!tpu.dma_semaphore, #tpu.memory_space<semaphore_mem>>
        tpu.wait_dma2 semaphore(%96 : memref<!tpu.dma_semaphore, #tpu.memory_space<semaphore_mem>>) src(%92 : memref<16x128xf32, #tpu.memory_space<any>>) dst(%94 : memref<16x128xf32, #tpu.memory_space<vmem>>)
        %c1_i32_72 = arith.constant 1 : i32
        %97 = arith.addi %arg23, %c1_i32_72 : i32
        %c4_i32_73 = arith.constant 4 : i32
        %98 = arith.cmpi slt, %97, %c4_i32_73 : i32
        %99 = arith.extui %98 : i1 to i32
        %c0_i32_74 = arith.constant 0 : i32
        %100 = arith.cmpi ne, %99, %c0_i32_74 : i32
        scf.if %100 {
          %c1_i32_92 = arith.constant 1 : i32
          %130 = arith.addi %arg23, %c1_i32_92 : i32
          %c1_i32_93 = arith.constant 1 : i32
          %131 = arith.subi %c1_i32_93, %90 : i32
          %c16_i32_94 = arith.constant 16 : i32
          %132 = arith.muli %130, %c16_i32_94 : i32
          %c0_i32_95 = arith.constant 0 : i32
          %133 = tpu.memref_slice %arg3[%arg0, %132, %c0_i32_95] : memref<2x64x128xf32, #tpu.memory_space<any>> -> memref<1x16x128xf32, #tpu.memory_space<any>>
          %134 = tpu.memref_squeeze %133 : memref<1x16x128xf32, #tpu.memory_space<any>> -> memref<16x128xf32, #tpu.memory_space<any>>
          %c0_i32_96 = arith.constant 0 : i32
          %c0_i32_97 = arith.constant 0 : i32
          %135 = tpu.memref_slice %arg21[%131, %c0_i32_96, %c0_i32_97] : memref<2x16x128xf32, #tpu.memory_space<vmem>> -> memref<1x16x128xf32, #tpu.memory_space<vmem>>
          %136 = tpu.memref_squeeze %135 : memref<1x16x128xf32, #tpu.memory_space<vmem>> -> memref<16x128xf32, #tpu.memory_space<vmem>>
          %137 = tpu.memref_slice %arg22[%131] : memref<2x!tpu.dma_semaphore, #tpu.memory_space<semaphore_mem>> -> memref<1x!tpu.dma_semaphore, #tpu.memory_space<semaphore_mem>>
          %138 = tpu.memref_squeeze %137 : memref<1x!tpu.dma_semaphore, #tpu.memory_space<semaphore_mem>> -> memref<!tpu.dma_semaphore, #tpu.memory_space<semaphore_mem>>
          tpu.enqueue_dma source(%134 : memref<16x128xf32, #tpu.memory_space<any>>) target(%136 : memref<16x128xf32, #tpu.memory_space<vmem>>) target_semaphore(%138 : memref<!tpu.dma_semaphore, #tpu.memory_space<semaphore_mem>>)
        } else {
        }
        %101 = arith.index_cast %90 : i32 to index
        %c0_75 = arith.constant 0 : index
        %c0_76 = arith.constant 0 : index
        %102 = vector.load %arg21[%101, %c0_75, %c0_76] : memref<2x16x128xf32, #tpu.memory_space<vmem>>, vector<1x16x128xf32>
        %103 = vector.shape_cast %102 : vector<1x16x128xf32> to vector<16x128xf32>
        %104 = vector.broadcast %68 : vector<1x128xf32> to vector<16x128xf32>
        %105 = arith.mulf %103, %104 : vector<16x128xf32>
        %106 = vector.broadcast %71 : vector<1x128xf32> to vector<16x128xf32>
        %107 = arith.addf %105, %106 : vector<16x128xf32>
        %108 = arith.truncf %107 : vector<16x128xf32> to vector<16x128xbf16>
        %c0_77 = arith.constant 0 : index
        %c0_78 = arith.constant 0 : index
        %109 = vector.load %arg10[%c0_77, %c0_78] : memref<128x128xbf16, #tpu.memory_space<vmem>>, vector<128x128xbf16>
        %cst_79 = arith.constant dense<0.000000e+00> : vector<16x128xf32>
        %110 = tpu.matmul %108, %109, %cst_79 {dimension_numbers = #tpu.dot_dimension_numbers<[1], [0], [0], [1], [0, 0, 1, 1], [], []>} : vector<16x128xbf16>, vector<128x128xbf16>, vector<16x128xf32> -> vector<16x128xf32>
        %c0_80 = arith.constant 0 : index
        %c0_81 = arith.constant 0 : index
        %111 = vector.load %arg11[%c0_80, %c0_81] : memref<1x128xf32, #tpu.memory_space<vmem>>, vector<1x128xf32>
        %112 = vector.broadcast %111 : vector<1x128xf32> to vector<16x128xf32>
        %113 = arith.addf %110, %112 : vector<16x128xf32>
        %c0_82 = arith.constant 0 : index
        %c0_83 = arith.constant 0 : index
        %114 = vector.load %arg12[%c0_82, %c0_83] : memref<128x128xbf16, #tpu.memory_space<vmem>>, vector<128x128xbf16>
        %cst_84 = arith.constant dense<0.000000e+00> : vector<16x128xf32>
        %115 = tpu.matmul %108, %114, %cst_84 {dimension_numbers = #tpu.dot_dimension_numbers<[1], [0], [0], [1], [0, 0, 1, 1], [], []>} : vector<16x128xbf16>, vector<128x128xbf16>, vector<16x128xf32> -> vector<16x128xf32>
        %c0_85 = arith.constant 0 : index
        %c0_86 = arith.constant 0 : index
        %116 = vector.load %arg13[%c0_85, %c0_86] : memref<1x128xf32, #tpu.memory_space<vmem>>, vector<1x128xf32>
        %117 = vector.broadcast %116 : vector<1x128xf32> to vector<16x128xf32>
        %118 = arith.addf %115, %117 : vector<16x128xf32>
        %119 = arith.truncf %118 : vector<16x128xf32> to vector<16x128xbf16>
        %c0_87 = arith.constant 0 : index
        %c0_88 = arith.constant 0 : index
        %120 = vector.load %arg14[%c0_87, %c0_88] : memref<128x128xbf16, #tpu.memory_space<vmem>>, vector<128x128xbf16>
        %cst_89 = arith.constant dense<0.000000e+00> : vector<16x128xf32>
        %121 = tpu.matmul %119, %120, %cst_89 {dimension_numbers = #tpu.dot_dimension_numbers<[1], [0], [0], [1], [0, 0, 1, 1], [], []>} : vector<16x128xbf16>, vector<128x128xbf16>, vector<16x128xf32> -> vector<16x128xf32>
        %c16_i32 = arith.constant 16 : i32
        %122 = arith.muli %arg23, %c16_i32 : i32
        %123 = tpu.assume_multiple %122, 16 : i32
        %124 = arith.truncf %113 : vector<16x128xf32> to vector<16x128xbf16>
        %125 = arith.index_cast %123 : i32 to index
        %c0_90 = arith.constant 0 : index
        %126 = vector.load %arg17[%125, %c0_90] : memref<64x128xbf16, #tpu.memory_space<vmem>>, vector<16x128xbf16>
        tpu.vector_store %arg17[%125, %c0_90], %124 {strides = array<i32>} : memref<64x128xbf16, #tpu.memory_space<vmem>>, vector<16x128xbf16>,
        %127 = arith.truncf %121 : vector<16x128xf32> to vector<16x128xbf16>
        %128 = arith.index_cast %123 : i32 to index
        %c0_91 = arith.constant 0 : index
        %129 = vector.load %arg18[%128, %c0_91] : memref<64x128xbf16, #tpu.memory_space<vmem>>, vector<16x128xbf16>
        tpu.vector_store %arg18[%128, %c0_91], %127 {strides = array<i32>} : memref<64x128xbf16, #tpu.memory_space<vmem>>, vector<16x128xbf16>,
      }
      %c4_i32_62 = arith.constant 4 : i32
    } else {
    }
    %c0 = arith.constant 0 : index
    %c0_1 = arith.constant 0 : index
    %c0_2 = arith.constant 0 : index
    %3 = vector.load %arg4[%c0, %c0_1, %c0_2] : memref<1x16x128xf32, #tpu.memory_space<vmem>>, vector<1x16x128xf32>
    %4 = vector.shape_cast %3 : vector<1x16x128xf32> to vector<16x128xf32>
    %c0_3 = arith.constant 0 : index
    %c0_4 = arith.constant 0 : index
    %5 = vector.load %arg19[%c0_3, %c0_4] : memref<1x128xf32, #tpu.memory_space<vmem>>, vector<1x128xf32>
    %6 = vector.broadcast %5 : vector<1x128xf32> to vector<16x128xf32>
    %7 = arith.mulf %4, %6 : vector<16x128xf32>
    %c0_5 = arith.constant 0 : index
    %c0_6 = arith.constant 0 : index
    %8 = vector.load %arg20[%c0_5, %c0_6] : memref<1x128xf32, #tpu.memory_space<vmem>>, vector<1x128xf32>
    %9 = vector.broadcast %8 : vector<1x128xf32> to vector<16x128xf32>
    %10 = arith.addf %7, %9 : vector<16x128xf32>
    %11 = arith.truncf %10 : vector<16x128xf32> to vector<16x128xbf16>
    %c0_7 = arith.constant 0 : index
    %c0_8 = arith.constant 0 : index
    %12 = vector.load %arg8[%c0_7, %c0_8] : memref<128x128xbf16, #tpu.memory_space<vmem>>, vector<128x128xbf16>
    %cst = arith.constant dense<0.000000e+00> : vector<16x128xf32>
    %13 = tpu.matmul %11, %12, %cst {dimension_numbers = #tpu.dot_dimension_numbers<[1], [0], [0], [1], [0, 0, 1, 1], [], []>} : vector<16x128xbf16>, vector<128x128xbf16>, vector<16x128xf32> -> vector<16x128xf32>
    %c0_9 = arith.constant 0 : index
    %c0_10 = arith.constant 0 : index
    %14 = vector.load %arg9[%c0_9, %c0_10] : memref<1x128xf32, #tpu.memory_space<vmem>>, vector<1x128xf32>
    %15 = vector.broadcast %14 : vector<1x128xf32> to vector<16x128xf32>
    %16 = arith.addf %13, %15 : vector<16x128xf32>
    %cst_11 = arith.constant 0.176776692 : f32
    %17 = vector.broadcast %cst_11 : f32 to vector<16x128xf32>
    %18 = arith.mulf %16, %17 : vector<16x128xf32>
    %19 = arith.truncf %18 : vector<16x128xf32> to vector<16x128xbf16>
    %c0_12 = arith.constant 0 : index
    %c0_13 = arith.constant 0 : index
    %20 = vector.load %arg17[%c0_12, %c0_13] : memref<64x128xbf16, #tpu.memory_space<vmem>>, vector<64x128xbf16>
    %cst_14 = arith.constant dense<0.000000e+00> : vector<16x64xf32>
    %21 = tpu.matmul %19, %20, %cst_14 {dimension_numbers = #tpu.dot_dimension_numbers<[1], [1], [0], [0], [0, 0, 1, 0], [], []>} : vector<16x128xbf16>, vector<64x128xbf16>, vector<16x64xf32> -> vector<16x64xf32>
    %cst_15 = arith.constant dense<0xFF800000> : vector<16xf32>
    %22 = vector.multi_reduction <maximumf>, %21, %cst_15 [1] : vector<16x64xf32> to vector<16xf32>
    %23 = vector.shape_cast %22 : vector<16xf32> to vector<16x1xf32>
    %24 = vector.broadcast %23 : vector<16x1xf32> to vector<16x64xf32>
    %25 = arith.subf %21, %24 : vector<16x64xf32>
    %26 = math.exp %25 : vector<16x64xf32>
    %cst_16 = arith.constant dense<0.000000e+00> : vector<16xf32>
    %27 = vector.multi_reduction <add>, %26, %cst_16 [1] : vector<16x64xf32> to vector<16xf32>
    %28 = vector.shape_cast %27 : vector<16xf32> to vector<16x1xf32>
    %29 = arith.truncf %26 : vector<16x64xf32> to vector<16x64xbf16>
    %c0_17 = arith.constant 0 : index
    %c0_18 = arith.constant 0 : index
    %30 = vector.load %arg18[%c0_17, %c0_18] : memref<64x128xbf16, #tpu.memory_space<vmem>>, vector<64x128xbf16>
    %cst_19 = arith.constant dense<0.000000e+00> : vector<16x128xf32>
    %31 = tpu.matmul %29, %30, %cst_19 {dimension_numbers = #tpu.dot_dimension_numbers<[1], [0], [0], [1], [0, 0, 1, 1], [], []>} : vector<16x64xbf16>, vector<64x128xbf16>, vector<16x128xf32> -> vector<16x128xf32>
    %32 = tpu.reciprocal %28 : vector<16x1xf32> -> vector<16x1xf32>
    %33 = vector.broadcast %32 : vector<16x1xf32> to vector<16x128xf32>
    %34 = arith.mulf %31, %33 : vector<16x128xf32>
    %35 = arith.addf %4, %34 : vector<16x128xf32>
    %c0_20 = arith.constant 0 : index
    %c0_21 = arith.constant 0 : index
    %36 = vector.load %arg15[%c0_20, %c0_21] : memref<1x128xf32, #tpu.memory_space<vmem>>, vector<1x128xf32>
    %37 = vector.broadcast %36 : vector<1x128xf32> to vector<16x128xf32>
    %38 = arith.addf %35, %37 : vector<16x128xf32>
    %c0_22 = arith.constant 0 : index
    %c0_23 = arith.constant 0 : index
    %c0_24 = arith.constant 0 : index
    %39 = vector.load %arg16[%c0_22, %c0_23, %c0_24] : memref<1x16x128xf32, #tpu.memory_space<vmem>>, vector<1x16x128xf32>
    %40 = vector.shape_cast %39 : vector<1x16x128xf32> to vector<16x128xf32>
    %41 = vector.shape_cast %38 : vector<16x128xf32> to vector<1x16x128xf32>
    tpu.vector_store %arg16[%c0_22, %c0_23, %c0_24], %41 {strides = array<i32>} : memref<1x16x128xf32, #tpu.memory_space<vmem>>, vector<1x16x128xf32>,
    return
  }
  func.func @transform_1(%arg0: i32, %arg1: i32, %arg2: i32) -> (i32, i32, i32) {
    %c4_i32 = arith.constant 4 : i32
    %0 = arith.muli %arg1, %c4_i32 : i32
    %1 = arith.addi %0, %arg2 : i32
    %c0_i32 = arith.constant 0 : i32
    %c0_i32_0 = arith.constant 0 : i32
    return %arg0, %1, %c0_i32 : i32, i32, i32
  }
  func.func @transform_2(%arg0: i32, %arg1: i32, %arg2: i32) -> (i32, i32) {
    %c0_i32 = arith.constant 0 : i32
    %c0_i32_0 = arith.constant 0 : i32
    %c0_i32_1 = arith.constant 0 : i32
    return %c0_i32, %c0_i32_0 : i32, i32
  }
  func.func @transform_3(%arg0: i32, %arg1: i32, %arg2: i32) -> (i32, i32) {
    %c0_i32 = arith.constant 0 : i32
    %c0_i32_0 = arith.constant 0 : i32
    %c0_i32_1 = arith.constant 0 : i32
    return %c0_i32, %c0_i32_0 : i32, i32
  }
  func.func @transform_4(%arg0: i32, %arg1: i32, %arg2: i32) -> (i32, i32) {
    %c0_i32 = arith.constant 0 : i32
    %c0_i32_0 = arith.constant 0 : i32
    %c0_i32_1 = arith.constant 0 : i32
    return %c0_i32, %c0_i32_0 : i32, i32
  }
  func.func @transform_5(%arg0: i32, %arg1: i32, %arg2: i32) -> (i32, i32) {
    %c0_i32 = arith.constant 0 : i32
    %c0_i32_0 = arith.constant 0 : i32
    %c0_i32_1 = arith.constant 0 : i32
    return %c0_i32, %c0_i32_0 : i32, i32
  }
  func.func @transform_6(%arg0: i32, %arg1: i32, %arg2: i32) -> (i32, i32) {
    %c0_i32 = arith.constant 0 : i32
    %c0_i32_0 = arith.constant 0 : i32
    %c0_i32_1 = arith.constant 0 : i32
    return %c0_i32, %c0_i32_0 : i32, i32
  }
  func.func @transform_7(%arg0: i32, %arg1: i32, %arg2: i32) -> (i32, i32) {
    %c0_i32 = arith.constant 0 : i32
    %c0_i32_0 = arith.constant 0 : i32
    %c0_i32_1 = arith.constant 0 : i32
    return %c0_i32, %c0_i32_0 : i32, i32
  }
  func.func @transform_8(%arg0: i32, %arg1: i32, %arg2: i32) -> (i32, i32) {
    %c0_i32 = arith.constant 0 : i32
    %c0_i32_0 = arith.constant 0 : i32
    %c0_i32_1 = arith.constant 0 : i32
    return %c0_i32, %c0_i32_0 : i32, i32
  }
  func.func @transform_9(%arg0: i32, %arg1: i32, %arg2: i32) -> (i32, i32) {
    %c0_i32 = arith.constant 0 : i32
    %c0_i32_0 = arith.constant 0 : i32
    %c0_i32_1 = arith.constant 0 : i32
    return %c0_i32, %c0_i32_0 : i32, i32
  }
  func.func @transform_10(%arg0: i32, %arg1: i32, %arg2: i32) -> (i32, i32) {
    %c0_i32 = arith.constant 0 : i32
    %c0_i32_0 = arith.constant 0 : i32
    %c0_i32_1 = arith.constant 0 : i32
    return %c0_i32, %c0_i32_0 : i32, i32
  }
  func.func @transform_11(%arg0: i32, %arg1: i32, %arg2: i32) -> (i32, i32) {
    %c0_i32 = arith.constant 0 : i32
    %c0_i32_0 = arith.constant 0 : i32
    %c0_i32_1 = arith.constant 0 : i32
    return %c0_i32, %c0_i32_0 : i32, i32
  }
  func.func @transform_12(%arg0: i32, %arg1: i32, %arg2: i32) -> (i32, i32) {
    %c0_i32 = arith.constant 0 : i32
    %c0_i32_0 = arith.constant 0 : i32
    %c0_i32_1 = arith.constant 0 : i32
    return %c0_i32, %c0_i32_0 : i32, i32
  }
  func.func @transform_13(%arg0: i32, %arg1: i32, %arg2: i32) -> (i32, i32, i32) {
    %c4_i32 = arith.constant 4 : i32
    %0 = arith.muli %arg1, %c4_i32 : i32
    %1 = arith.addi %0, %arg2 : i32
    %c0_i32 = arith.constant 0 : i32
    %c0_i32_0 = arith.constant 0 : i32
    return %arg0, %1, %c0_i32 : i32, i32, i32
  }
}

module attributes {stable_mosaic.version = 11 : i64} {
  func.func @_attn_block_kernel(%arg0: i32, %arg1: i32, %arg2: i32, %arg3: memref<2x64x128xf32, #tpu.memory_space<any>>, %arg4: memref<1x16x128xf32, #tpu.memory_space<vmem>>, %arg5: memref<1x128xf32, #tpu.memory_space<vmem>>, %arg6: memref<1x128xf32, #tpu.memory_space<vmem>>, %arg7: memref<32x128xf32, #tpu.memory_space<vmem>>, %arg8: memref<128x128xbf16, #tpu.memory_space<vmem>>, %arg9: memref<1x128xf32, #tpu.memory_space<vmem>>, %arg10: memref<128x128xbf16, #tpu.memory_space<vmem>>, %arg11: memref<1x128xf32, #tpu.memory_space<vmem>>, %arg12: memref<128x128xbf16, #tpu.memory_space<vmem>>, %arg13: memref<1x128xf32, #tpu.memory_space<vmem>>, %arg14: memref<128x128xbf16, #tpu.memory_space<vmem>>, %arg15: memref<1x128xf32, #tpu.memory_space<vmem>>, %arg16: memref<1x16x128xf32, #tpu.memory_space<vmem>>, %arg17: memref<64x128xbf16, #tpu.memory_space<vmem>>, %arg18: memref<64x128xbf16, #tpu.memory_space<vmem>>, %arg19: memref<1x128xf32, #tpu.memory_space<vmem>>, %arg20: memref<1x128xf32, #tpu.memory_space<vmem>>, %arg21: memref<2x16x128xf32, #tpu.memory_space<vmem>>, %arg22: memref<2x!tpu.dma_semaphore, #tpu.memory_space<semaphore_mem>>) attributes {dimension_semantics = [#tpu.dimension_semantics<parallel>, #tpu.dimension_semantics<parallel>, #tpu.dimension_semantics<arbitrary>], iteration_bounds = array<i64: 2, 1, 4>, scalar_prefetch = 0 : i64, scratch_operands = 6 : i64, tpu.core_type = #tpu.core_type<tc>, window_params = [{}, {transform_indices = @transform_1, window_bounds = array<i64: 1, 16, 128>}, {pipeline_mode = #tpu.pipeline_mode<synchronous>, transform_indices = @transform_2, window_bounds = array<i64: 1, 128>}, {pipeline_mode = #tpu.pipeline_mode<synchronous>, transform_indices = @transform_3, window_bounds = array<i64: 1, 128>}, {pipeline_mode = #tpu.pipeline_mode<synchronous>, transform_indices = @transform_4, window_bounds = array<i64: 32, 128>}, {pipeline_mode = #tpu.pipeline_mode<synchronous>, transform_indices = @transform_5, window_bounds = array<i64: 128, 128>}, {pipeline_mode = #tpu.pipeline_mode<synchronous>, transform_indices = @transform_6, window_bounds = array<i64: 1, 128>}, {pipeline_mode = #tpu.pipeline_mode<synchronous>, transform_indices = @transform_7, window_bounds = array<i64: 128, 128>}, {pipeline_mode = #tpu.pipeline_mode<synchronous>, transform_indices = @transform_8, window_bounds = array<i64: 1, 128>}, {pipeline_mode = #tpu.pipeline_mode<synchronous>, transform_indices = @transform_9, window_bounds = array<i64: 128, 128>}, {pipeline_mode = #tpu.pipeline_mode<synchronous>, transform_indices = @transform_10, window_bounds = array<i64: 1, 128>}, {pipeline_mode = #tpu.pipeline_mode<synchronous>, transform_indices = @transform_11, window_bounds = array<i64: 128, 128>}, {pipeline_mode = #tpu.pipeline_mode<synchronous>, transform_indices = @transform_12, window_bounds = array<i64: 1, 128>}, {transform_indices = @transform_13, window_bounds = array<i64: 1, 16, 128>}]} {
    %c0_i32 = arith.constant 0 : i32
    %0 = arith.cmpi eq, %arg2, %c0_i32 : i32
    %1 = arith.extui %0 : i1 to i32
    %c0_i32_0 = arith.constant 0 : i32
    %2 = arith.cmpi ne, %1, %c0_i32_0 : i32
    scf.if %2 {
      %cst_25 = arith.constant 1.000000e+00 : f32
      %42 = vector.broadcast %cst_25 : f32 to vector<1x16xf32>
      %c0_i32_26 = arith.constant 0 : i32
      %c0_i32_27 = arith.constant 0 : i32
      %c0_i32_28 = arith.constant 0 : i32
      %c0_i32_29 = arith.constant 0 : i32
      %43 = tpu.memref_slice %arg3[%arg0, %c0_i32_28, %c0_i32_29] : memref<2x64x128xf32, #tpu.memory_space<any>> -> memref<1x16x128xf32, #tpu.memory_space<any>>
      %44 = tpu.memref_squeeze %43 : memref<1x16x128xf32, #tpu.memory_space<any>> -> memref<16x128xf32, #tpu.memory_space<any>>
      %c0_i32_30 = arith.constant 0 : i32
      %c0_i32_31 = arith.constant 0 : i32
      %45 = tpu.memref_slice %arg21[%c0_i32_26, %c0_i32_30, %c0_i32_31] : memref<2x16x128xf32, #tpu.memory_space<vmem>> -> memref<1x16x128xf32, #tpu.memory_space<vmem>>
      %46 = tpu.memref_squeeze %45 : memref<1x16x128xf32, #tpu.memory_space<vmem>> -> memref<16x128xf32, #tpu.memory_space<vmem>>
      %47 = tpu.memref_slice %arg22[%c0_i32_27] : memref<2x!tpu.dma_semaphore, #tpu.memory_space<semaphore_mem>> -> memref<1x!tpu.dma_semaphore, #tpu.memory_space<semaphore_mem>>
      %48 = tpu.memref_squeeze %47 : memref<1x!tpu.dma_semaphore, #tpu.memory_space<semaphore_mem>> -> memref<!tpu.dma_semaphore, #tpu.memory_space<semaphore_mem>>
      tpu.enqueue_dma source(%44 : memref<16x128xf32, #tpu.memory_space<any>>) target(%46 : memref<16x128xf32, #tpu.memory_space<vmem>>) target_semaphore(%48 : memref<!tpu.dma_semaphore, #tpu.memory_space<semaphore_mem>>)
      %cst_32 = arith.constant 0.000000e+00 : f32
      %49 = vector.broadcast %cst_32 : f32 to vector<1x128xf32>
      %cst_33 = arith.constant 0.000000e+00 : f32
      %50 = vector.broadcast %cst_33 : f32 to vector<1x128xf32>
      %c0_i32_34 = arith.constant 0 : i32
      %c4_i32 = arith.constant 4 : i32
      %51 = arith.addi %c0_i32_34, %c4_i32 : i32
      %c1_i32 = arith.constant 1 : i32
      %52:2 = scf.for %arg23 = %c0_i32_34 to %51 step %c1_i32 iter_args(%arg24 = %49, %arg25 = %50) -> (vector<1x128xf32>, vector<1x128xf32>)  : i32 {
        %c2_i32 = arith.constant 2 : i32
        %c0_i32_63 = arith.constant 0 : i32
        %81 = arith.cmpi eq, %c2_i32, %c0_i32_63 : i32
        %c1_i32_64 = arith.constant 1 : i32
        %82 = arith.select %81, %c1_i32_64, %c2_i32 : i32
        %83 = arith.remsi %arg23, %82 : i32
        %c0_i32_65 = arith.constant 0 : i32
        %84 = arith.cmpi ne, %83, %c0_i32_65 : i32
        %c0_i32_66 = arith.constant 0 : i32
        %85 = arith.cmpi slt, %83, %c0_i32_66 : i32
        %c0_i32_67 = arith.constant 0 : i32
        %86 = arith.cmpi slt, %82, %c0_i32_67 : i32
        %87 = arith.xori %85, %86 : i1
        %88 = arith.andi %87, %84 : i1
        %89 = arith.addi %83, %82 : i32
        %90 = arith.select %88, %89, %83 : i32
        %c0_i32_68 = arith.constant 0 : i32
        %c0_i32_69 = arith.constant 0 : i32
        %91 = tpu.memref_slice %arg3[%arg0, %c0_i32_68, %c0_i32_69] : memref<2x64x128xf32, #tpu.memory_space<any>> -> memref<1x16x128xf32, #tpu.memory_space<any>>
        %92 = tpu.memref_squeeze %91 : memref<1x16x128xf32, #tpu.memory_space<any>> -> memref<16x128xf32, #tpu.memory_space<any>>
        %c0_i32_70 = arith.constant 0 : i32
        %c0_i32_71 = arith.constant 0 : i32
        %93 = tpu.memref_slice %arg21[%90, %c0_i32_70, %c0_i32_71] : memref<2x16x128xf32, #tpu.memory_space<vmem>> -> memref<1x16x128xf32, #tpu.memory_space<vmem>>
        %94 = tpu.memref_squeeze %93 : memref<1x16x128xf32, #tpu.memory_space<vmem>> -> memref<16x128xf32, #tpu.memory_space<vmem>>
        %95 = tpu.memref_slice %arg22[%90] : memref<2x!tpu.dma_semaphore, #tpu.memory_space<semaphore_mem>> -> memref<1x!tpu.dma_semaphore, #tpu.memory_space<semaphore_mem>>
        %96 = tpu.memref_squeeze %95 : memref<1x!tpu.dma_semaphore, #tpu.memory_space<semaphore_mem>> -> memref<!tpu.dma_semaphore, #tpu.memory_space<semaphore_mem>>
        tpu.wait_dma2 semaphore(%96 : memref<!tpu.dma_semaphore, #tpu.memory_space<semaphore_mem>>) src(%92 : memref<16x128xf32, #tpu.memory_space<any>>) dst(%94 : memref<16x128xf32, #tpu.memory_space<vmem>>)
        %c1_i32_72 = arith.constant 1 : i32
        %97 = arith.addi %arg23, %c1_i32_72 : i32
        %c4_i32_73 = arith.constant 4 : i32
        %98 = arith.cmpi slt, %97, %c4_i32_73 : i32
        %99 = arith.extui %98 : i1 to i32
        %c0_i32_74 = arith.constant 0 : i32
        %100 = arith.cmpi ne, %99, %c0_i32_74 : i32
        scf.if %100 {
          %c1_i32_79 = arith.constant 1 : i32
          %109 = arith.addi %arg23, %c1_i32_79 : i32
          %c1_i32_80 = arith.constant 1 : i32
          %110 = arith.subi %c1_i32_80, %90 : i32
          %c16_i32 = arith.constant 16 : i32
          %111 = arith.muli %109, %c16_i32 : i32
          %c0_i32_81 = arith.constant 0 : i32
          %112 = tpu.memref_slice %arg3[%arg0, %111, %c0_i32_81] : memref<2x64x128xf32, #tpu.memory_space<any>> -> memref<1x16x128xf32, #tpu.memory_space<any>>
          %113 = tpu.memref_squeeze %112 : memref<1x16x128xf32, #tpu.memory_space<any>> -> memref<16x128xf32, #tpu.memory_space<any>>
          %c0_i32_82 = arith.constant 0 : i32
          %c0_i32_83 = arith.constant 0 : i32
          %114 = tpu.memref_slice %arg21[%110, %c0_i32_82, %c0_i32_83] : memref<2x16x128xf32, #tpu.memory_space<vmem>> -> memref<1x16x128xf32, #tpu.memory_space<vmem>>
          %115 = tpu.memref_squeeze %114 : memref<1x16x128xf32, #tpu.memory_space<vmem>> -> memref<16x128xf32, #tpu.memory_space<vmem>>
          %116 = tpu.memref_slice %arg22[%110] : memref<2x!tpu.dma_semaphore, #tpu.memory_space<semaphore_mem>> -> memref<1x!tpu.dma_semaphore, #tpu.memory_space<semaphore_mem>>
          %117 = tpu.memref_squeeze %116 : memref<1x!tpu.dma_semaphore, #tpu.memory_space<semaphore_mem>> -> memref<!tpu.dma_semaphore, #tpu.memory_space<semaphore_mem>>
          tpu.enqueue_dma source(%113 : memref<16x128xf32, #tpu.memory_space<any>>) target(%115 : memref<16x128xf32, #tpu.memory_space<vmem>>) target_semaphore(%117 : memref<!tpu.dma_semaphore, #tpu.memory_space<semaphore_mem>>)
        } else {
        }
        %101 = arith.index_cast %90 : i32 to index
        %c0_75 = arith.constant 0 : index
        %c0_76 = arith.constant 0 : index
        %102 = vector.load %arg21[%101, %c0_75, %c0_76] : memref<2x16x128xf32, #tpu.memory_space<vmem>>, vector<1x16x128xf32>
        %103 = vector.shape_cast %102 : vector<1x16x128xf32> to vector<16x128xf32>
        %cst_77 = arith.constant dense<0.000000e+00> : vector<1x128xf32>
        %104 = tpu.matmul %42, %103, %cst_77 {dimension_numbers = #tpu.dot_dimension_numbers<[1], [0], [0], [1], [0, 0, 1, 1], [], []>} : vector<1x16xf32>, vector<16x128xf32>, vector<1x128xf32> -> vector<1x128xf32>
        %105 = arith.addf %arg24, %104 : vector<1x128xf32>
        %106 = arith.mulf %103, %103 : vector<16x128xf32>
        %cst_78 = arith.constant dense<0.000000e+00> : vector<1x128xf32>
        %107 = tpu.matmul %42, %106, %cst_78 {dimension_numbers = #tpu.dot_dimension_numbers<[1], [0], [0], [1], [0, 0, 1, 1], [], []>} : vector<1x16xf32>, vector<16x128xf32>, vector<1x128xf32> -> vector<1x128xf32>
        %108 = arith.addf %arg25, %107 : vector<1x128xf32>
        scf.yield %105, %108 : vector<1x128xf32>, vector<1x128xf32>
      }
      %c4_i32_35 = arith.constant 4 : i32
      %c0_36 = arith.constant 0 : index
      %c0_37 = arith.constant 0 : index
      %53 = vector.load %arg7[%c0_36, %c0_37] : memref<32x128xf32, #tpu.memory_space<vmem>>, vector<32x128xf32>
      %cst_38 = arith.constant dense<0.000000e+00> : vector<1x32xf32>
      %54 = tpu.matmul %52#0, %53, %cst_38 {dimension_numbers = #tpu.dot_dimension_numbers<[1], [1], [0], [0], [0, 0, 1, 0], [], []>} : vector<1x128xf32>, vector<32x128xf32>, vector<1x32xf32> -> vector<1x32xf32>
      %cst_39 = arith.constant 1.562500e-02 : f32
      %55 = vector.broadcast %cst_39 : f32 to vector<1x32xf32>
      %56 = arith.mulf %54, %55 : vector<1x32xf32>
      %cst_40 = arith.constant dense<0.000000e+00> : vector<1x32xf32>
      %57 = tpu.matmul %52#1, %53, %cst_40 {dimension_numbers = #tpu.dot_dimension_numbers<[1], [1], [0], [0], [0, 0, 1, 0], [], []>} : vector<1x128xf32>, vector<32x128xf32>, vector<1x32xf32> -> vector<1x32xf32>
      %cst_41 = arith.constant 1.562500e-02 : f32
      %58 = vector.broadcast %cst_41 : f32 to vector<1x32xf32>
      %59 = arith.mulf %57, %58 : vector<1x32xf32>
      %60 = arith.mulf %56, %56 : vector<1x32xf32>
      %61 = arith.subf %59, %60 : vector<1x32xf32>
      %cst_42 = arith.constant dense<0.000000e+00> : vector<1x128xf32>
      %62 = tpu.matmul %56, %53, %cst_42 {dimension_numbers = #tpu.dot_dimension_numbers<[1], [0], [0], [1], [0, 0, 1, 1], [], []>} : vector<1x32xf32>, vector<32x128xf32>, vector<1x128xf32> -> vector<1x128xf32>
      %cst_43 = arith.constant dense<0.000000e+00> : vector<1x128xf32>
      %63 = tpu.matmul %61, %53, %cst_43 {dimension_numbers = #tpu.dot_dimension_numbers<[1], [0], [0], [1], [0, 0, 1, 1], [], []>} : vector<1x32xf32>, vector<32x128xf32>, vector<1x128xf32> -> vector<1x128xf32>
      %cst_44 = arith.constant 9.99999997E-7 : f32
      %64 = vector.broadcast %cst_44 : f32 to vector<1x128xf32>
      %65 = arith.addf %63, %64 : vector<1x128xf32>
      %66 = math.rsqrt %65 : vector<1x128xf32>
      %c0_45 = arith.constant 0 : index
      %c0_46 = arith.constant 0 : index
      %67 = vector.load %arg5[%c0_45, %c0_46] : memref<1x128xf32, #tpu.memory_space<vmem>>, vector<1x128xf32>
      %68 = arith.mulf %66, %67 : vector<1x128xf32>
      %c0_47 = arith.constant 0 : index
      %c0_48 = arith.constant 0 : index
      %69 = vector.load %arg6[%c0_47, %c0_48] : memref<1x128xf32, #tpu.memory_space<vmem>>, vector<1x128xf32>
      %70 = arith.mulf %62, %68 : vector<1x128xf32>
      %71 = arith.subf %69, %70 : vector<1x128xf32>
      %c0_49 = arith.constant 0 : index
      %c0_50 = arith.constant 0 : index
      %72 = vector.load %arg19[%c0_49, %c0_50] : memref<1x128xf32, #tpu.memory_space<vmem>>, vector<1x128xf32>
      tpu.vector_store %arg19[%c0_49, %c0_50], %68 {strides = array<i32>} : memref<1x128xf32, #tpu.memory_space<vmem>>, vector<1x128xf32>,
      %c0_51 = arith.constant 0 : index
      %c0_52 = arith.constant 0 : index
      %73 = vector.load %arg20[%c0_51, %c0_52] : memref<1x128xf32, #tpu.memory_space<vmem>>, vector<1x128xf32>
      tpu.vector_store %arg20[%c0_51, %c0_52], %71 {strides = array<i32>} : memref<1x128xf32, #tpu.memory_space<vmem>>, vector<1x128xf32>,
      %c0_i32_53 = arith.constant 0 : i32
      %c0_i32_54 = arith.constant 0 : i32
      %c0_i32_55 = arith.constant 0 : i32
      %c0_i32_56 = arith.constant 0 : i32
      %74 = tpu.memref_slice %arg3[%arg0, %c0_i32_55, %c0_i32_56] : memref<2x64x128xf32, #tpu.memory_space<any>> -> memref<1x16x128xf32, #tpu.memory_space<any>>
      %75 = tpu.memref_squeeze %74 : memref<1x16x128xf32, #tpu.memory_space<any>> -> memref<16x128xf32, #tpu.memory_space<any>>
      %c0_i32_57 = arith.constant 0 : i32
      %c0_i32_58 = arith.constant 0 : i32
      %76 = tpu.memref_slice %arg21[%c0_i32_53, %c0_i32_57, %c0_i32_58] : memref<2x16x128xf32, #tpu.memory_space<vmem>> -> memref<1x16x128xf32, #tpu.memory_space<vmem>>
      %77 = tpu.memref_squeeze %76 : memref<1x16x128xf32, #tpu.memory_space<vmem>> -> memref<16x128xf32, #tpu.memory_space<vmem>>
      %78 = tpu.memref_slice %arg22[%c0_i32_54] : memref<2x!tpu.dma_semaphore, #tpu.memory_space<semaphore_mem>> -> memref<1x!tpu.dma_semaphore, #tpu.memory_space<semaphore_mem>>
      %79 = tpu.memref_squeeze %78 : memref<1x!tpu.dma_semaphore, #tpu.memory_space<semaphore_mem>> -> memref<!tpu.dma_semaphore, #tpu.memory_space<semaphore_mem>>
      tpu.enqueue_dma source(%75 : memref<16x128xf32, #tpu.memory_space<any>>) target(%77 : memref<16x128xf32, #tpu.memory_space<vmem>>) target_semaphore(%79 : memref<!tpu.dma_semaphore, #tpu.memory_space<semaphore_mem>>)
      %c0_i32_59 = arith.constant 0 : i32
      %c4_i32_60 = arith.constant 4 : i32
      %80 = arith.addi %c0_i32_59, %c4_i32_60 : i32
      %c1_i32_61 = arith.constant 1 : i32
      scf.for %arg23 = %c0_i32_59 to %80 step %c1_i32_61  : i32 {
        %c2_i32 = arith.constant 2 : i32
        %c0_i32_63 = arith.constant 0 : i32
        %81 = arith.cmpi eq, %c2_i32, %c0_i32_63 : i32
        %c1_i32_64 = arith.constant 1 : i32
        %82 = arith.select %81, %c1_i32_64, %c2_i32 : i32
        %83 = arith.remsi %arg23, %82 : i32
        %c0_i32_65 = arith.constant 0 : i32
        %84 = arith.cmpi ne, %83, %c0_i32_65 : i32
        %c0_i32_66 = arith.constant 0 : i32
        %85 = arith.cmpi slt, %83, %c0_i32_66 : i32
        %c0_i32_67 = arith.constant 0 : i32
        %86 = arith.cmpi slt, %82, %c0_i32_67 : i32
        %87 = arith.xori %85, %86 : i1
        %88 = arith.andi %87, %84 : i1
        %89 = arith.addi %83, %82 : i32
        %90 = arith.select %88, %89, %83 : i32
        %c0_i32_68 = arith.constant 0 : i32
        %c0_i32_69 = arith.constant 0 : i32
        %91 = tpu.memref_slice %arg3[%arg0, %c0_i32_68, %c0_i32_69] : memref<2x64x128xf32, #tpu.memory_space<any>> -> memref<1x16x128xf32, #tpu.memory_space<any>>
        %92 = tpu.memref_squeeze %91 : memref<1x16x128xf32, #tpu.memory_space<any>> -> memref<16x128xf32, #tpu.memory_space<any>>
        %c0_i32_70 = arith.constant 0 : i32
        %c0_i32_71 = arith.constant 0 : i32
        %93 = tpu.memref_slice %arg21[%90, %c0_i32_70, %c0_i32_71] : memref<2x16x128xf32, #tpu.memory_space<vmem>> -> memref<1x16x128xf32, #tpu.memory_space<vmem>>
        %94 = tpu.memref_squeeze %93 : memref<1x16x128xf32, #tpu.memory_space<vmem>> -> memref<16x128xf32, #tpu.memory_space<vmem>>
        %95 = tpu.memref_slice %arg22[%90] : memref<2x!tpu.dma_semaphore, #tpu.memory_space<semaphore_mem>> -> memref<1x!tpu.dma_semaphore, #tpu.memory_space<semaphore_mem>>
        %96 = tpu.memref_squeeze %95 : memref<1x!tpu.dma_semaphore, #tpu.memory_space<semaphore_mem>> -> memref<!tpu.dma_semaphore, #tpu.memory_space<semaphore_mem>>
        tpu.wait_dma2 semaphore(%96 : memref<!tpu.dma_semaphore, #tpu.memory_space<semaphore_mem>>) src(%92 : memref<16x128xf32, #tpu.memory_space<any>>) dst(%94 : memref<16x128xf32, #tpu.memory_space<vmem>>)
        %c1_i32_72 = arith.constant 1 : i32
        %97 = arith.addi %arg23, %c1_i32_72 : i32
        %c4_i32_73 = arith.constant 4 : i32
        %98 = arith.cmpi slt, %97, %c4_i32_73 : i32
        %99 = arith.extui %98 : i1 to i32
        %c0_i32_74 = arith.constant 0 : i32
        %100 = arith.cmpi ne, %99, %c0_i32_74 : i32
        scf.if %100 {
          %c1_i32_92 = arith.constant 1 : i32
          %130 = arith.addi %arg23, %c1_i32_92 : i32
          %c1_i32_93 = arith.constant 1 : i32
          %131 = arith.subi %c1_i32_93, %90 : i32
          %c16_i32_94 = arith.constant 16 : i32
          %132 = arith.muli %130, %c16_i32_94 : i32
          %c0_i32_95 = arith.constant 0 : i32
          %133 = tpu.memref_slice %arg3[%arg0, %132, %c0_i32_95] : memref<2x64x128xf32, #tpu.memory_space<any>> -> memref<1x16x128xf32, #tpu.memory_space<any>>
          %134 = tpu.memref_squeeze %133 : memref<1x16x128xf32, #tpu.memory_space<any>> -> memref<16x128xf32, #tpu.memory_space<any>>
          %c0_i32_96 = arith.constant 0 : i32
          %c0_i32_97 = arith.constant 0 : i32
          %135 = tpu.memref_slice %arg21[%131, %c0_i32_96, %c0_i32_97] : memref<2x16x128xf32, #tpu.memory_space<vmem>> -> memref<1x16x128xf32, #tpu.memory_space<vmem>>
          %136 = tpu.memref_squeeze %135 : memref<1x16x128xf32, #tpu.memory_space<vmem>> -> memref<16x128xf32, #tpu.memory_space<vmem>>
          %137 = tpu.memref_slice %arg22[%131] : memref<2x!tpu.dma_semaphore, #tpu.memory_space<semaphore_mem>> -> memref<1x!tpu.dma_semaphore, #tpu.memory_space<semaphore_mem>>
          %138 = tpu.memref_squeeze %137 : memref<1x!tpu.dma_semaphore, #tpu.memory_space<semaphore_mem>> -> memref<!tpu.dma_semaphore, #tpu.memory_space<semaphore_mem>>
          tpu.enqueue_dma source(%134 : memref<16x128xf32, #tpu.memory_space<any>>) target(%136 : memref<16x128xf32, #tpu.memory_space<vmem>>) target_semaphore(%138 : memref<!tpu.dma_semaphore, #tpu.memory_space<semaphore_mem>>)
        } else {
        }
        %101 = arith.index_cast %90 : i32 to index
        %c0_75 = arith.constant 0 : index
        %c0_76 = arith.constant 0 : index
        %102 = vector.load %arg21[%101, %c0_75, %c0_76] : memref<2x16x128xf32, #tpu.memory_space<vmem>>, vector<1x16x128xf32>
        %103 = vector.shape_cast %102 : vector<1x16x128xf32> to vector<16x128xf32>
        %104 = vector.broadcast %68 : vector<1x128xf32> to vector<16x128xf32>
        %105 = arith.mulf %103, %104 : vector<16x128xf32>
        %106 = vector.broadcast %71 : vector<1x128xf32> to vector<16x128xf32>
        %107 = arith.addf %105, %106 : vector<16x128xf32>
        %108 = arith.truncf %107 : vector<16x128xf32> to vector<16x128xbf16>
        %c0_77 = arith.constant 0 : index
        %c0_78 = arith.constant 0 : index
        %109 = vector.load %arg10[%c0_77, %c0_78] : memref<128x128xbf16, #tpu.memory_space<vmem>>, vector<128x128xbf16>
        %cst_79 = arith.constant dense<0.000000e+00> : vector<16x128xf32>
        %110 = tpu.matmul %108, %109, %cst_79 {dimension_numbers = #tpu.dot_dimension_numbers<[1], [0], [0], [1], [0, 0, 1, 1], [], []>} : vector<16x128xbf16>, vector<128x128xbf16>, vector<16x128xf32> -> vector<16x128xf32>
        %c0_80 = arith.constant 0 : index
        %c0_81 = arith.constant 0 : index
        %111 = vector.load %arg11[%c0_80, %c0_81] : memref<1x128xf32, #tpu.memory_space<vmem>>, vector<1x128xf32>
        %112 = vector.broadcast %111 : vector<1x128xf32> to vector<16x128xf32>
        %113 = arith.addf %110, %112 : vector<16x128xf32>
        %c0_82 = arith.constant 0 : index
        %c0_83 = arith.constant 0 : index
        %114 = vector.load %arg12[%c0_82, %c0_83] : memref<128x128xbf16, #tpu.memory_space<vmem>>, vector<128x128xbf16>
        %cst_84 = arith.constant dense<0.000000e+00> : vector<16x128xf32>
        %115 = tpu.matmul %108, %114, %cst_84 {dimension_numbers = #tpu.dot_dimension_numbers<[1], [0], [0], [1], [0, 0, 1, 1], [], []>} : vector<16x128xbf16>, vector<128x128xbf16>, vector<16x128xf32> -> vector<16x128xf32>
        %c0_85 = arith.constant 0 : index
        %c0_86 = arith.constant 0 : index
        %116 = vector.load %arg13[%c0_85, %c0_86] : memref<1x128xf32, #tpu.memory_space<vmem>>, vector<1x128xf32>
        %117 = vector.broadcast %116 : vector<1x128xf32> to vector<16x128xf32>
        %118 = arith.addf %115, %117 : vector<16x128xf32>
        %119 = arith.truncf %118 : vector<16x128xf32> to vector<16x128xbf16>
        %c0_87 = arith.constant 0 : index
        %c0_88 = arith.constant 0 : index
        %120 = vector.load %arg14[%c0_87, %c0_88] : memref<128x128xbf16, #tpu.memory_space<vmem>>, vector<128x128xbf16>
        %cst_89 = arith.constant dense<0.000000e+00> : vector<16x128xf32>
        %121 = tpu.matmul %119, %120, %cst_89 {dimension_numbers = #tpu.dot_dimension_numbers<[1], [0], [0], [1], [0, 0, 1, 1], [], []>} : vector<16x128xbf16>, vector<128x128xbf16>, vector<16x128xf32> -> vector<16x128xf32>
        %c16_i32 = arith.constant 16 : i32
        %122 = arith.muli %arg23, %c16_i32 : i32
        %123 = tpu.assume_multiple %122, 16 : i32
        %124 = arith.truncf %113 : vector<16x128xf32> to vector<16x128xbf16>
        %125 = arith.index_cast %123 : i32 to index
        %c0_90 = arith.constant 0 : index
        %126 = vector.load %arg17[%125, %c0_90] : memref<64x128xbf16, #tpu.memory_space<vmem>>, vector<16x128xbf16>
        tpu.vector_store %arg17[%125, %c0_90], %124 {strides = array<i32>} : memref<64x128xbf16, #tpu.memory_space<vmem>>, vector<16x128xbf16>,
        %127 = arith.truncf %121 : vector<16x128xf32> to vector<16x128xbf16>
        %128 = arith.index_cast %123 : i32 to index
        %c0_91 = arith.constant 0 : index
        %129 = vector.load %arg18[%128, %c0_91] : memref<64x128xbf16, #tpu.memory_space<vmem>>, vector<16x128xbf16>
        tpu.vector_store %arg18[%128, %c0_91], %127 {strides = array<i32>} : memref<64x128xbf16, #tpu.memory_space<vmem>>, vector<16x128xbf16>,
      }
      %c4_i32_62 = arith.constant 4 : i32
    } else {
    }
    %c0 = arith.constant 0 : index
    %c0_1 = arith.constant 0 : index
    %c0_2 = arith.constant 0 : index
    %3 = vector.load %arg4[%c0, %c0_1, %c0_2] : memref<1x16x128xf32, #tpu.memory_space<vmem>>, vector<1x16x128xf32>
    %4 = vector.shape_cast %3 : vector<1x16x128xf32> to vector<16x128xf32>
    %c0_3 = arith.constant 0 : index
    %c0_4 = arith.constant 0 : index
    %5 = vector.load %arg19[%c0_3, %c0_4] : memref<1x128xf32, #tpu.memory_space<vmem>>, vector<1x128xf32>
    %6 = vector.broadcast %5 : vector<1x128xf32> to vector<16x128xf32>
    %7 = arith.mulf %4, %6 : vector<16x128xf32>
    %c0_5 = arith.constant 0 : index
    %c0_6 = arith.constant 0 : index
    %8 = vector.load %arg20[%c0_5, %c0_6] : memref<1x128xf32, #tpu.memory_space<vmem>>, vector<1x128xf32>
    %9 = vector.broadcast %8 : vector<1x128xf32> to vector<16x128xf32>
    %10 = arith.addf %7, %9 : vector<16x128xf32>
    %11 = arith.truncf %10 : vector<16x128xf32> to vector<16x128xbf16>
    %c0_7 = arith.constant 0 : index
    %c0_8 = arith.constant 0 : index
    %12 = vector.load %arg8[%c0_7, %c0_8] : memref<128x128xbf16, #tpu.memory_space<vmem>>, vector<128x128xbf16>
    %cst = arith.constant dense<0.000000e+00> : vector<16x128xf32>
    %13 = tpu.matmul %11, %12, %cst {dimension_numbers = #tpu.dot_dimension_numbers<[1], [0], [0], [1], [0, 0, 1, 1], [], []>} : vector<16x128xbf16>, vector<128x128xbf16>, vector<16x128xf32> -> vector<16x128xf32>
    %c0_9 = arith.constant 0 : index
    %c0_10 = arith.constant 0 : index
    %14 = vector.load %arg9[%c0_9, %c0_10] : memref<1x128xf32, #tpu.memory_space<vmem>>, vector<1x128xf32>
    %15 = vector.broadcast %14 : vector<1x128xf32> to vector<16x128xf32>
    %16 = arith.addf %13, %15 : vector<16x128xf32>
    %cst_11 = arith.constant 0.176776692 : f32
    %17 = vector.broadcast %cst_11 : f32 to vector<16x128xf32>
    %18 = arith.mulf %16, %17 : vector<16x128xf32>
    %19 = arith.truncf %18 : vector<16x128xf32> to vector<16x128xbf16>
    %c0_12 = arith.constant 0 : index
    %c0_13 = arith.constant 0 : index
    %20 = vector.load %arg17[%c0_12, %c0_13] : memref<64x128xbf16, #tpu.memory_space<vmem>>, vector<64x128xbf16>
    %cst_14 = arith.constant dense<0.000000e+00> : vector<16x64xf32>
    %21 = tpu.matmul %19, %20, %cst_14 {dimension_numbers = #tpu.dot_dimension_numbers<[1], [1], [0], [0], [0, 0, 1, 0], [], []>} : vector<16x128xbf16>, vector<64x128xbf16>, vector<16x64xf32> -> vector<16x64xf32>
    %cst_15 = arith.constant dense<0xFF800000> : vector<16xf32>
    %22 = vector.multi_reduction <maximumf>, %21, %cst_15 [1] : vector<16x64xf32> to vector<16xf32>
    %23 = vector.shape_cast %22 : vector<16xf32> to vector<16x1xf32>
    %24 = vector.broadcast %23 : vector<16x1xf32> to vector<16x64xf32>
    %25 = arith.subf %21, %24 : vector<16x64xf32>
    %26 = math.exp %25 : vector<16x64xf32>
    %cst_16 = arith.constant dense<0.000000e+00> : vector<16xf32>
    %27 = vector.multi_reduction <add>, %26, %cst_16 [1] : vector<16x64xf32> to vector<16xf32>
    %28 = vector.shape_cast %27 : vector<16xf32> to vector<16x1xf32>
    %29 = arith.truncf %26 : vector<16x64xf32> to vector<16x64xbf16>
    %c0_17 = arith.constant 0 : index
    %c0_18 = arith.constant 0 : index
    %30 = vector.load %arg18[%c0_17, %c0_18] : memref<64x128xbf16, #tpu.memory_space<vmem>>, vector<64x128xbf16>
    %cst_19 = arith.constant dense<0.000000e+00> : vector<16x128xf32>
    %31 = tpu.matmul %29, %30, %cst_19 {dimension_numbers = #tpu.dot_dimension_numbers<[1], [0], [0], [1], [0, 0, 1, 1], [], []>} : vector<16x64xbf16>, vector<64x128xbf16>, vector<16x128xf32> -> vector<16x128xf32>
    %32 = tpu.reciprocal %28 : vector<16x1xf32> -> vector<16x1xf32>
    %33 = vector.broadcast %32 : vector<16x1xf32> to vector<16x128xf32>
    %34 = arith.mulf %31, %33 : vector<16x128xf32>
    %35 = arith.addf %4, %34 : vector<16x128xf32>
    %c0_20 = arith.constant 0 : index
    %c0_21 = arith.constant 0 : index
    %36 = vector.load %arg15[%c0_20, %c0_21] : memref<1x128xf32, #tpu.memory_space<vmem>>, vector<1x128xf32>
    %37 = vector.broadcast %36 : vector<1x128xf32> to vector<16x128xf32>
    %38 = arith.addf %35, %37 : vector<16x128xf32>
    %c0_22 = arith.constant 0 : index
    %c0_23 = arith.constant 0 : index
    %c0_24 = arith.constant 0 : index
    %39 = vector.load %arg16[%c0_22, %c0_23, %c0_24] : memref<1x16x128xf32, #tpu.memory_space<vmem>>, vector<1x16x128xf32>
    %40 = vector.shape_cast %39 : vector<1x16x128xf32> to vector<16x128xf32>
    %41 = vector.shape_cast %38 : vector<16x128xf32> to vector<1x16x128xf32>
    tpu.vector_store %arg16[%c0_22, %c0_23, %c0_24], %41 {strides = array<i32>} : memref<1x16x128xf32, #tpu.memory_space<vmem>>, vector<1x16x128xf32>,
    return
  }
  func.func @transform_1(%arg0: i32, %arg1: i32, %arg2: i32) -> (i32, i32, i32) {
    %c4_i32 = arith.constant 4 : i32
    %0 = arith.muli %arg1, %c4_i32 : i32
    %1 = arith.addi %0, %arg2 : i32
    %c0_i32 = arith.constant 0 : i32
    %c0_i32_0 = arith.constant 0 : i32
    return %arg0, %1, %c0_i32 : i32, i32, i32
  }
  func.func @transform_2(%arg0: i32, %arg1: i32, %arg2: i32) -> (i32, i32) {
    %c0_i32 = arith.constant 0 : i32
    %c0_i32_0 = arith.constant 0 : i32
    %c0_i32_1 = arith.constant 0 : i32
    return %c0_i32, %c0_i32_0 : i32, i32
  }
  func.func @transform_3(%arg0: i32, %arg1: i32, %arg2: i32) -> (i32, i32) {
    %c0_i32 = arith.constant 0 : i32
    %c0_i32_0 = arith.constant 0 : i32
    %c0_i32_1 = arith.constant 0 : i32
    return %c0_i32, %c0_i32_0 : i32, i32
  }
  func.func @transform_4(%arg0: i32, %arg1: i32, %arg2: i32) -> (i32, i32) {
    %c0_i32 = arith.constant 0 : i32
    %c0_i32_0 = arith.constant 0 : i32
    %c0_i32_1 = arith.constant 0 : i32
    return %c0_i32, %c0_i32_0 : i32, i32
  }
  func.func @transform_5(%arg0: i32, %arg1: i32, %arg2: i32) -> (i32, i32) {
    %c0_i32 = arith.constant 0 : i32
    %c0_i32_0 = arith.constant 0 : i32
    %c0_i32_1 = arith.constant 0 : i32
    return %c0_i32, %c0_i32_0 : i32, i32
  }
  func.func @transform_6(%arg0: i32, %arg1: i32, %arg2: i32) -> (i32, i32) {
    %c0_i32 = arith.constant 0 : i32
    %c0_i32_0 = arith.constant 0 : i32
    %c0_i32_1 = arith.constant 0 : i32
    return %c0_i32, %c0_i32_0 : i32, i32
  }
  func.func @transform_7(%arg0: i32, %arg1: i32, %arg2: i32) -> (i32, i32) {
    %c0_i32 = arith.constant 0 : i32
    %c0_i32_0 = arith.constant 0 : i32
    %c0_i32_1 = arith.constant 0 : i32
    return %c0_i32, %c0_i32_0 : i32, i32
  }
  func.func @transform_8(%arg0: i32, %arg1: i32, %arg2: i32) -> (i32, i32) {
    %c0_i32 = arith.constant 0 : i32
    %c0_i32_0 = arith.constant 0 : i32
    %c0_i32_1 = arith.constant 0 : i32
    return %c0_i32, %c0_i32_0 : i32, i32
  }
  func.func @transform_9(%arg0: i32, %arg1: i32, %arg2: i32) -> (i32, i32) {
    %c0_i32 = arith.constant 0 : i32
    %c0_i32_0 = arith.constant 0 : i32
    %c0_i32_1 = arith.constant 0 : i32
    return %c0_i32, %c0_i32_0 : i32, i32
  }
  func.func @transform_10(%arg0: i32, %arg1: i32, %arg2: i32) -> (i32, i32) {
    %c0_i32 = arith.constant 0 : i32
    %c0_i32_0 = arith.constant 0 : i32
    %c0_i32_1 = arith.constant 0 : i32
    return %c0_i32, %c0_i32_0 : i32, i32
  }
  func.func @transform_11(%arg0: i32, %arg1: i32, %arg2: i32) -> (i32, i32) {
    %c0_i32 = arith.constant 0 : i32
    %c0_i32_0 = arith.constant 0 : i32
    %c0_i32_1 = arith.constant 0 : i32
    return %c0_i32, %c0_i32_0 : i32, i32
  }
  func.func @transform_12(%arg0: i32, %arg1: i32, %arg2: i32) -> (i32, i32) {
    %c0_i32 = arith.constant 0 : i32
    %c0_i32_0 = arith.constant 0 : i32
    %c0_i32_1 = arith.constant 0 : i32
    return %c0_i32, %c0_i32_0 : i32, i32
  }
  func.func @transform_13(%arg0: i32, %arg1: i32, %arg2: i32) -> (i32, i32, i32) {
    %c4_i32 = arith.constant 4 : i32
    %0 = arith.muli %arg1, %c4_i32 : i32
    %1 = arith.addi %0, %arg2 : i32
    %c0_i32 = arith.constant 0 : i32
    %c0_i32_0 = arith.constant 0 : i32
    return %arg0, %1, %c0_i32 : i32, i32, i32
  }
}

</mosaic_0001>

<bundles_post_ra>
// kernel: tpu_custom_call.1
= control target key start
LH: loop header
LB: loop body
LE: loop exit
PB: predicated region body
PF: predicated region fallthrough
CT: control target
= control target key end

     0   :  { %s3696_s0 = inlined_call_operand.hbm [shape: f32[2,64,128], index: 0, kind: input, shape index: {}]   ;;  %s3697_s1 = inlined_call_operand.hbm [shape: f32[2,64,128], index: 1, kind: input, shape index: {}]   ;;  %s3698_s2 = inlined_call_operand.vmem [shape: f32[1,128], index: 2, kind: input, shape index: {}]   ;;  %s3699_s3 = inlined_call_operand.vmem [shape: f32[1,128], index: 3, kind: input, shape index: {}]   ;;  %s3700_s4 = inlined_call_operand.hbm [shape: f32[32,128], index: 4, kind: input, shape index: {}]   ;;  %s3701_s5 = inlined_call_operand.hbm [shape: bf16[128,128], index: 5, kind: input, shape index: {}]   ;;  %s3702_s6 = inlined_call_operand.vmem [shape: f32[1,128], index: 6, kind: input, shape index: {}]   ;;  %s3703_s7 = inlined_call_operand.hbm [shape: bf16[128,128], index: 7, kind: input, shape index: {}]   ;;  %s3704_s8 = inlined_call_operand.vmem [shape: f32[1,128], index: 8, kind: input, shape index: {}]   ;;  %s3705_s9 = inlined_call_operand.hbm [shape: bf16[128,128], index: 9, kind: input, shape index: {}]   ;;  %s3706_s10 = inlined_call_operand.vmem [shape: f32[1,128], index: 10, kind: input, shape index: {}]   ;;  %s3707_s11 = inlined_call_operand.hbm [shape: bf16[128,128], index: 11, kind: input, shape index: {}]   ;;  %s3708_s12 = inlined_call_operand.vmem [shape: f32[1,128], index: 12, kind: input, shape index: {}]   ;;  %s3709_s13 = inlined_call_operand.hbm [shape: f32[2,64,128], index: 13, kind: output, shape index: {}]  }
   0x1   :  { %3736 = sst [smem:[#allocation49_spill]] %s3696_s0 }
   0x2   :  { %3737 = sst [smem:[#allocation50_spill]] %s3697_s1 }
   0x3   :  { %3738 = sst [smem:[#allocation51_spill]] %s3698_s2 }
   0x4   :  { %3739 = sst [smem:[#allocation52_spill]] %s3699_s3 }
   0x5   :  { %3740 = sst [smem:[#allocation53_spill]] %s3700_s4 }
   0x6   :  { %3741 = sst [smem:[#allocation54_spill]] %s3701_s5 }
   0x7   :  { %3742 = sst [smem:[#allocation55_spill]] %s3702_s6 }
   0x8   :  { %3743 = sst [smem:[#allocation56_spill]] %s3703_s7 }
   0x9   :  { %3744 = sst [smem:[#allocation57_spill]] %s3704_s8 }
   0xa   :  { %3745 = sst [smem:[#allocation58_spill]] %s3705_s9 }
   0xb   :  { %3746 = sst [smem:[#allocation59_spill]] %s3706_s10 }
   0xc   :  { %3747 = sst [smem:[#allocation60_spill]] %s3707_s11 }
   0xd   :  { %3748 = sst [smem:[#allocation61_spill]] %s3708_s12 }
   0xe   :  { %3749 = sst [smem:[#allocation62_spill]] %s3709_s13 }
   0xf   :  { %18 = vsyncpa [#allocation9], 0 }
  0x10   :  { %20 = vsyncpa [#allocation9 + $0x1], 0 }
  0x11   :  { %21 = vsyncpa [#allocation12], 0 }
  0x12   :  { %22 = vsyncpa [#allocation15], 0 }
  0x13   :  { %23 = vsyncpa [#allocation18], 0 }
  0x14   :  { %24 = vsyncpa [#allocation10], 0 }
  0x15   :  { %26 = vsyncpa [#allocation10 + $0x1], 0  ;;  %s3081_s25 = smov 0   ;;  %s3083_s26 = smov 0  }
  0x16   :  { %s3085_s27 = smov 0   ;;  %s3087_s28 = smov 0  }
  0x17   :  { %s3089_s29 = smov 0   ;;  %s3091_s30 = smov 0  }
  0x18   :  { %s3093_s14 = smov 0   ;;  %s3095_s15 = smov 0  }
  0x19 LB: > { %3750 = sst [smem:[#allocation37_spill]] %s2940_s25  ;;  %s3710_s16 = sadd.s32 4294967295, %s2968_s15   ;;  %s2968_s15 = sphi %s3095_s15, %s32_s15   ;;  %s2964_s14 = sphi %s3093_s14, %s3823_s14   ;;  %s2960_s30 = sphi %s3091_s30, %s3822_s30   ;;  %s2956_s29 = sphi %s3089_s29, %s3821_s29   ;;  %s2952_s28 = sphi %s3087_s28, %s3820_s28   ;;  %s2948_s27 = sphi %s3085_s27, %s3819_s27   ;;  %s2944_s26 = sphi %s3083_s26, %s3818_s26   ;;  %s2940_s25 = sphi %s3081_s25, %s3817_s25  }
  0x1a   : > { %3751 = sst [smem:[#allocation38_spill]] %s2944_s26  ;;  %p1976_p0 = scmp.ge.s32.totalorder %s2968_s15, 1 }
  0x1b   : > { %3752 = sst [smem:[#allocation39_spill]] %s2948_s27  ;;  %p3125_p1 = scmp.eq.s32.totalorder %s3710_s16, 0 }
  0x1c   : > { %3753 = sst [smem:[#allocation40_spill]] %s2952_s28  ;;  %p351_p2 = scmp.lt.s32.totalorder %s2968_s15, 9 }
  0x1d   : > { %3754 = sst [smem:[#allocation41_spill]] %s2956_s29  ;;  %s2986_s19 = smov [#allocation11]  }
  0x1e   : > { %3755 = sst [smem:[#allocation42_spill]] %s2960_s30  ;;  %p3130_p3 = pnand %p1976_p0, %p351_p2 }
  0x1f   : > { %3756 = sst [smem:[#allocation43_spill]] %s2964_s14  ;;  %s369_s20 = sshll.u32 %s2986_s19, 4  ;;  %s370_s20 = int_to_ptr.vmem [resolvable:$true] %s369_s20 }
  0x20   : > { %3757 = sst [smem:[#allocation44_spill]] %s2968_s15  ;;  %p2363_p4 = pneg %p3130_p3 }
  0x21   : > { %s3758_s17 = scalar_select %p3125_p1, 1, 0 }
  0x22   : > { %s3759_s18 = scalar_select %p3130_p3, 1, 0 }
  0x23   : > { %p3138_p5 = pnand %p2363_p4, %p3125_p1  ;;  %s2987_s22 = smov [#allocation14]  }
  0x24   : > { %s398_s23 = sshll.u32 %s2987_s22, 4  ;;  %s3761_s4 = sld [smem:[#allocation53_spill]]  ;;  %s399_s23 = int_to_ptr.vmem [resolvable:$true] %s398_s23 }
  0x25   : > { %p3150_p7 = pneg %p3138_p5 }
  0x2a   : > { %s2562_s13 = scalar_lea.hbm %s3761_s4, 512 }
  0x2b   : > { %p2563_p6 = scmp.ne.s32.totalorder %s3761_s4, %s2562_s13  ;;  %p2569_p10 = scmp.lt.u32.totalorder %s2562_s13, %s3761_s4 }
  0x2d   : > { %p2565_p8 = pnand %p3150_p7, %p2563_p6 }
  0x2f   : > { %p2566_p9 = pneg %p2565_p8 }
  0x31   : > { %p2571_p11 = pnand %p2569_p10, %p2566_p9 }
  0x33   : > { %2574 = shalt.err (!%p2571_p11)
}
  0x34   : > { %s2575_s16 = scalar_lea.vmem %s370_s20, 512  ;;  %p2583_p2 = scmp.lt.s32.totalorder %s370_s20, %s370_s20 }
  0x35   : > { %p2576_p12 = scmp.ne.s32.totalorder %s370_s20, %s2575_s16  ;;  %p2584_p4 = scmp.lt.s32.totalorder %s2575_s16, %s2575_s16 }
  0x37   : > { %p2578_p13 = pnand %p2576_p12, %p3150_p7  ;;  %p2585_p3 = por %p2584_p4, %p2583_p2 }
  0x39   : > { %p2579_p0 = pneg %p2578_p13 }
  0x3b   : > { %p2586_p1 = pnand %p2585_p3, %p2579_p0 }
  0x3d   : > { %2589 = shalt.err (!%p2586_p1)
}
  0x3e   : > { %s3719_s6 = smov 128   ;;  %s3720_s12 = smov 8  }
  0x3f   : > { %2366 = dma.hbm_to_vmem [thread:$0]  (!%p3138_p5), %s3761_s4, 512, %s370_s20, [#allocation12], %s3719_s6, %s3719_s6, %s3720_s12  }
  0x40   : > { %s2990_s13 = smov [#allocation13]   ;;  %s3763_s7 = sld [smem:[#allocation56_spill]] }
  0x41   : > { %s382_s22 = sshll.u32 %s2990_s13, 4  ;;  %s383_s22 = int_to_ptr.vmem [resolvable:$true] %s382_s22 }
  0x46   : > { %s2590_s3 = scalar_lea.hbm %s3763_s7, 1024 }
  0x47   : > { %p2591_p1 = scmp.ne.s32.totalorder %s3763_s7, %s2590_s3  ;;  %p2597_p8 = scmp.lt.u32.totalorder %s2590_s3, %s3763_s7 }
  0x49   : > { %p2593_p3 = pnand %p2591_p1, %p3150_p7 }
  0x4b   : > { %p2594_p6 = pneg %p2593_p3 }
  0x4d   : > { %p2599_p9 = pnand %p2597_p8, %p2594_p6 }
  0x4f   : > { %2602 = shalt.err (!%p2599_p9)
}
  0x50   : > { %s2603_s20 = scalar_lea.vmem %s399_s23, 1024  ;;  %p2611_p13 = scmp.lt.s32.totalorder %s399_s23, %s399_s23 }
  0x51   : > { %p2604_p10 = scmp.ne.s32.totalorder %s399_s23, %s2603_s20  ;;  %p2612_p0 = scmp.lt.s32.totalorder %s2603_s20, %s2603_s20 }
  0x53   : > { %p2606_p11 = pnand %p2604_p10, %p3150_p7  ;;  %p2613_p2 = por %p2612_p0, %p2611_p13 }
  0x55   : > { %p2607_p12 = pneg %p2606_p11 }
  0x57   : > { %p2614_p4 = pnand %p2613_p2, %p2607_p12 }
  0x59   : > { %2617 = shalt.err (!%p2614_p4)
}
  0x5a   : > { %s2991_s0 = smov 64   ;;  %s2992_s2 = smov 4  }
  0x5b   : > { %2372 = dma.hbm_to_vmem [thread:$0]  (!%p3138_p5), %s3763_s7, 1024, %s399_s23, [#allocation15], %s2991_s0, %s2991_s0, %s2992_s2  }
  0x5c   : > { %s3764_s5 = sld [smem:[#allocation54_spill]] }
  0x62   : > { %s2618_s10 = scalar_lea.hbm %s3764_s5, 1024 }
  0x63   : > { %p2619_p1 = scmp.ne.s32.totalorder %s3764_s5, %s2618_s10  ;;  %p2625_p8 = scmp.lt.u32.totalorder %s2618_s10, %s3764_s5 }
  0x65   : > { %p2621_p3 = pnand %p2619_p1, %p3150_p7 }
  0x67   : > { %p2622_p6 = pneg %p2621_p3 }
  0x69   : > { %p2627_p9 = pnand %p2625_p8, %p2622_p6 }
  0x6b   : > { %2630 = shalt.err (!%p2627_p9)
}
  0x6c   : > { %s2631_s3 = scalar_lea.vmem %s383_s22, 1024  ;;  %p2639_p13 = scmp.lt.s32.totalorder %s383_s22, %s383_s22 }
  0x6d   : > { %p2632_p10 = scmp.ne.s32.totalorder %s383_s22, %s2631_s3  ;;  %p2640_p0 = scmp.lt.s32.totalorder %s2631_s3, %s2631_s3 }
  0x6f   : > { %p2634_p11 = pnand %p2632_p10, %p3150_p7  ;;  %p2641_p2 = por %p2640_p0, %p2639_p13 }
  0x71   : > { %p2635_p12 = pneg %p2634_p11 }
  0x73   : > { %p2642_p4 = pnand %p2641_p2, %p2635_p12 }
  0x75   : > { %2645 = shalt.err (!%p2642_p4)
}
  0x76   : > { %2369 = dma.hbm_to_vmem [thread:$0]  (!%p3138_p5), %s3764_s5, 1024, %s383_s22, [#allocation12], %s2991_s0, %s2991_s0, %s2992_s2  }
  0x77   : > { %s2993_s29 = smov [#allocation16]   ;;  %s2994_s10 = smov [#allocation17]  }
  0x78   : > { %s414_s8 = sshll.u32 %s2993_s29, 4  ;;  %s430_s13 = sshll.u32 %s2994_s10, 4  ;;  %s415_s8 = int_to_ptr.vmem [resolvable:$true] %s414_s8  ;;  %s431_s13 = int_to_ptr.vmem [resolvable:$true] %s430_s13 }
  0x79   : > { %s3765_s9 = sld [smem:[#allocation58_spill]] }
  0x7f   : > { %s2646_s20 = scalar_lea.hbm %s3765_s9, 1024 }
  0x80   : > { %p2647_p1 = scmp.ne.s32.totalorder %s3765_s9, %s2646_s20  ;;  %p2653_p8 = scmp.lt.u32.totalorder %s2646_s20, %s3765_s9 }
  0x82   : > { %p2649_p3 = pnand %p2647_p1, %p3150_p7 }
  0x84   : > { %p2650_p6 = pneg %p2649_p3 }
  0x86   : > { %p2655_p9 = pnand %p2653_p8, %p2650_p6 }
  0x88   : > { %2658 = shalt.err (!%p2655_p9)
}
  0x89   : > { %s2659_s22 = scalar_lea.vmem %s415_s8, 1024  ;;  %p2667_p13 = scmp.lt.s32.totalorder %s415_s8, %s415_s8 }
  0x8a   : > { %p2660_p10 = scmp.ne.s32.totalorder %s415_s8, %s2659_s22  ;;  %p2668_p0 = scmp.lt.s32.totalorder %s2659_s22, %s2659_s22 }
  0x8c   : > { %p2662_p11 = pnand %p2660_p10, %p3150_p7  ;;  %p2669_p2 = por %p2668_p0, %p2667_p13 }
  0x8e   : > { %p2663_p12 = pneg %p2662_p11 }
  0x90   : > { %p2670_p4 = pnand %p2669_p2, %p2663_p12 }
  0x92   : > { %2673 = shalt.err (!%p2670_p4)
}
  0x93   : > { %2375 = dma.hbm_to_vmem [thread:$0]  (!%p3138_p5), %s3765_s9, 1024, %s415_s8, [#allocation15], %s2991_s0, %s2991_s0, %s2992_s2  }
  0x94   : > { %s3766_s11 = sld [smem:[#allocation60_spill]] }
  0x9a   : > { %s2674_s10 = scalar_lea.hbm %s3766_s11, 1024 }
  0x9b   : > { %p2675_p1 = scmp.ne.s32.totalorder %s3766_s11, %s2674_s10  ;;  %p2681_p8 = scmp.lt.u32.totalorder %s2674_s10, %s3766_s11 }
  0x9d   : > { %p2677_p3 = pnand %p2675_p1, %p3150_p7 }
  0x9f   : > { %p2678_p6 = pneg %p2677_p3 }
  0xa1   : > { %p2683_p9 = pnand %p2681_p8, %p2678_p6 }
  0xa3   : > { %2686 = shalt.err (!%p2683_p9)
}
  0xa4   : > { %s2687_s23 = scalar_lea.vmem %s431_s13, 1024  ;;  %p2695_p13 = scmp.lt.s32.totalorder %s431_s13, %s431_s13 }
  0xa5   : > { %p2688_p10 = scmp.ne.s32.totalorder %s431_s13, %s2687_s23  ;;  %p2696_p0 = scmp.lt.s32.totalorder %s2687_s23, %s2687_s23 }
  0xa7   : > { %p2690_p11 = pnand %p2688_p10, %p3150_p7  ;;  %p2697_p2 = por %p2696_p0, %p2695_p13 }
  0xa9   : > { %p2691_p12 = pneg %p2690_p11 }
  0xab   : > { %p2698_p4 = pnand %p2697_p2, %p2691_p12 }
  0xad   : > { %2701 = shalt.err (!%p2698_p4)
}
  0xae   : > { %2378 = dma.hbm_to_vmem [thread:$0]  (!%p3138_p5), %s3766_s11, 1024, %s431_s13, [#allocation18], %s2991_s0, %s2991_s0, %s2992_s2  }
  0xaf   : > { %s1975_s21 = sadd.s32 4294967294, %s2968_s15   ;;  %s44_s19 = sadd.s32 1, %s2960_s30 }
  0xb0   : > { %s51_s6 = sadd.s32 1, %s2964_s14  ;;  %p45_p7 = scmp.ge.s32.totalorder %s44_s19, 4 }
  0xb1   : > { %s64_s12 = sadd.s32 1, %s2948_s27  ;;  %p71_p1 = scmp.ne.s32.totalorder %s2948_s27, %s2944_s26 }
  0xb2   : > { %p72_p3 = scmp.eq.s32.totalorder %s2968_s15, 0  ;;  %s3825_s19 = smov (%p45_p7, %s44_s19), 0 }
  0xb3   : > { %3767 = sst [smem:[#allocation45_spill]] %s3825_s19  ;;  %s3827_s6 = smov (!%p45_p7, %s51_s6), %s2964_s14 }
  0xb4   : > { %s60_s28 = ssub.s32 %s2960_s30, %s3825_s19  ;;  %p3265_p6 = por %p72_p3, %p71_p1 }
  0xb5   : > { %p53_p5 = scmp.ge.s32.totalorder %s3827_s6, 2  ;;  %p77_p8 = scmp.ne.s32.totalorder %s2944_s26, %s2940_s25 }
  0xb6   : > { %s3769_s0 = sadd.s32 4294967295, %s2968_s15   ;;  %p344_p10 = scmp.eq.s32.totalorder %s1975_s21, 7 }
  0xb7   : > { %p338_p9 = scmp.eq.s32.totalorder %s3769_s0, 7  ;;  %s3829_s6 = smov (%p53_p5, %s3827_s6), 0 }
  0xb8   : > { %3770 = sst [smem:[#allocation46_spill]] %s3829_s6  ;;  %p3771_p11 = scmp.ne.s32.totalorder %s3758_s17, 0 }
  0xb9   : > { %p3281_p13 = por %p338_p9, %p71_p1  ;;  %s59_s10 = ssub.s32 %s2964_s14, %s3829_s6 }
  0xba   : > { %p3277_p12 = por %p3771_p11, %p77_p8  ;;  %p3287_p0 = por %p344_p10, %p77_p8 }
  0xbb   : > { %s3773_s13 = scalar_select %p3281_p13, 1, 0 }
  0xbc   : > { %s3774_s24 = scalar_select %p3287_p0, 1, 0 }
  0xbd   : > { %s61_s16 = sor.u32 %s60_s28, %s59_s10  ;;  %p2392_p2 = scmp.lt.s32.totalorder %s2968_s15, 8 }
  0xbe   : > { %3775 = sst [smem:[#allocation47_spill]] %s3774_s24  ;;  %p62_p4 = scmp.eq.s32.totalorder %s61_s16, 0 }
  0xbf   : > { %s447_s20 = sand.u32 1, %s2948_s27   ;;  %s1984_s8 = sshll.u32 %s2960_s30, 1 }
  0xc0   : > { %s1983_s3 = sshll.u32 %s447_s20, 4  ;;  %s1985_s22 = sshll.u32 %s2964_s14, 3 }
  0xc1   : > { %s3294_s23 = scalar_select %p62_p4, %s2948_s27, %s64_s12  }
  0xc2   : > { %s451_s21 = scalar_lea.vmem [#allocation8], %s1983_s3  ;;  %s459_s4 = sadd.s32 %s1985_s22, %s1984_s8 }
  0xc3   : > { %3776 = sst [smem:[#allocation48_spill]] %s3294_s23  ;;  %s462_s0 = sshll.u32 %s451_s21, 4  ;;  %s3298_s0 = int_to_ptr.vmem [resolvable:$true] %s462_s0 }
  0xc4   : > { %s1986_s5 = sshll.u32 %s459_s4, 7  ;;  %p3302_p7 = pnand %p2392_p2, %p3265_p6 }
  0xc5   : > { %s3778_s1 = sld [smem:[#allocation50_spill]]  ;;  %s3311_s16 = scalar_lea.sflag [#allocation9], %s447_s20 }
  0xc6   : > { %p2704_p3 = pneg %p3302_p7 }
  0xcb   : > { %s3309_s12 = scalar_lea.hbm %s3778_s1, %s1986_s5  ;;  %s2707_s8 = scalar_lea.hbm %s3778_s1, 2048 }
  0xcc   : > { %s2702_s3 = scalar_lea.hbm %s3309_s12, 256  ;;  %p2708_p8 = scmp.lt.u32.totalorder %s3309_s12, %s3778_s1 }
  0xcd   : > { %p2703_p1 = scmp.ne.s32.totalorder %s3309_s12, %s2702_s3  ;;  %p2709_p9 = scmp.lt.u32.totalorder %s2707_s8, %s2702_s3 }
  0xce   : > { %p2711_p11 = scmp.lt.u32.totalorder %s2702_s3, %s3309_s12 }
  0xcf   : > { %p2705_p6 = pnand %p2704_p3, %p2703_p1  ;;  %p2710_p10 = por %p2709_p9, %p2708_p8 }
  0xd1   : > { %p2706_p5 = pneg %p2705_p6  ;;  %p2712_p2 = por %p2711_p11, %p2710_p10 }
  0xd3   : > { %p2713_p4 = pnand %p2712_p2, %p2706_p5 }
  0xd5   : > { %2716 = shalt.err (!%p2713_p4)
}
  0xd6   : > { %s2717_s20 = scalar_lea.vmem %s3298_s0, 256  ;;  %s2995_s21 = smov [#allocation8]  }
  0xd7   : > { %p2718_p1 = scmp.ne.s32.totalorder %s3298_s0, %s2717_s20  ;;  %s2722_s28 = sshll.u32 %s2995_s21, 4  ;;  %s2723_s28 = int_to_ptr.vmem [resolvable:$false] %s2722_s28 }
  0xd8   : > { %s2724_s10 = scalar_lea.vmem %s2723_s28, 512  ;;  %p2725_p13 = scmp.lt.s32.totalorder %s3298_s0, %s2723_s28 }
  0xd9   : > { %p2720_p6 = pnand %p2718_p1, %p2704_p3  ;;  %p2726_p8 = scmp.lt.s32.totalorder %s2724_s10, %s2717_s20 }
  0xdb   : > { %p2721_p0 = pneg %p2720_p6  ;;  %p2727_p9 = por %p2726_p8, %p2725_p13 }
  0xdd   : > { %p2728_p10 = pnand %p2727_p9, %p2721_p0 }
  0xdf   : > { %2731 = shalt.err (!%p2728_p10)
}
  0xe0   : > { %s3779_s3 = smov 8   ;;  %s3780_s4 = smov 128  }
  0xe1   : > { %2382 = dma.hbm_to_vmem [thread:$0]  (!%p3302_p7), %s3309_s12, 256, %s3298_s0, %s3311_s16, %s3780_s4, %s3780_s4, %s3779_s3  }
  0xe2   : > { %p3781_p3 = scmp.ne.s32.totalorder %s3759_s18, 0 }
  0xe3   : > { %s3345_s29 = sand.u32 (!%p3781_p3), 1, %s2944_s26  }
  0xe4   : > { %474 = sbr.rel (%p3781_p3) target bundleno = 2390 (0x956), region = 68  ;;  %s1988_s8 = sshll.u32 (!%p3781_p3), %s3345_s29, 4 }
  0xe5   : > { %s477_s5 = scalar_lea.sflag (!%p3781_p3), [#allocation9], %s3345_s29  ;;  %s3349_s22 = scalar_lea.vmem (!%p3781_p3), [#allocation8], %s1988_s8 }
  0xeb   : > { %2915 = dma.done.wait (%p3277_p12), %s477_s5, 256  }
  0xec   : > { %2917 = vsyncadd (%p3277_p12), %s477_s5, 4294967040  ;;  %p3782_p13 = scmp.ne.s32.totalorder %s3758_s17, 0 }
  0xee   : > { %2919 = dma.done.wait (%p3782_p13), [#allocation12], 1536  }
  0xef   : > { %2921 = vsyncadd (%p3782_p13), [#allocation12], 4294965760 }
  0xf0   : > { %2923 = dma.done.wait (%p3782_p13), [#allocation15], 2048  }
  0xf1   : > { %2925 = vsyncadd (%p3782_p13), [#allocation15], 4294965248 }
  0xf2   : > { %2927 = dma.done.wait (%p3782_p13), [#allocation18], 1024  }
  0xf3   : > { %2929 = vsyncadd (%p3782_p13), [#allocation18], 4294966272  ;;  %s3367_s7 = scalar_lea.vmem [#allocation19], %s1988_s8  ;;  %s3783_s18 = sld [smem:[#allocation40_spill]] }
  0xf9   : > { %p1995_p12 = scmp.ne.s32.totalorder %s3783_s18, 0 }
  0xfa   : > { %s3784_s2 = sld [smem:[#allocation41_spill]] (!%p1995_p12)  ;;  %s3785_s20 = sld [smem:[#allocation49_spill]] (!%p1995_p12) }
  0xfb   : > { %551 = sbr.rel (%p1995_p12) target bundleno = 1526 (0x5f6), region = 96  ;;  %s2996_s28 = smov (!%p1995_p12), [#allocation6]  }
  0xfc   : > { %s562_s10 = sshll.u32 (!%p1995_p12), %s2996_s28, 4  ;;  %s3376_s10 = int_to_ptr.vmem [resolvable:$true] %s562_s10 }
 0x100   : > { %s2070_s0 = sshll.u32 (!%p1995_p12), %s3784_s2, 10  ;;  %s3383_s8 = scalar_lea.hbm (!%p1995_p12), %s3785_s20, 2048 }
 0x101   : > { %s3374_s21 = scalar_lea.hbm (!%p1995_p12), %s3785_s20, %s2070_s0 }
 0x102   : > { %s2732_s17 = scalar_lea.hbm %s3374_s21, 256  ;;  %p2735_p7 = scmp.lt.u32.totalorder %s3374_s21, %s3785_s20 }
 0x103   : > { %p2733_p0 = scmp.ne.s32.totalorder %s3374_s21, %s2732_s17  ;;  %p2736_p5 = scmp.lt.u32.totalorder %s3383_s8, %s2732_s17 }
 0x104   : > { %p2738_p2 = scmp.lt.u32.totalorder %s2732_s17, %s3374_s21 }
 0x105   : > { %p2737_p11 = por %p2736_p5, %p2735_p7 }
 0x107   : > { %p2739_p4 = por %p2738_p2, %p2737_p11 }
 0x109   : > { %p3391_p1 = pnand %p2739_p4, %p2733_p0 }
 0x10b   : > { %s3786_s2 = scalar_select %p3391_p1, 1, 0 }
 0x10c   : > { %2743 = shalt.err (!%p3391_p1)  }
 0x10d   : > { %s2744_s0 = scalar_lea.vmem %s3376_s10, 256  ;;  %s3404_s16 = scalar_lea.vmem %s3376_s10, 512 }
 0x10e   : > { %p3399_p6 = scmp.ne.s32.totalorder %s3376_s10, %s2744_s0  ;;  %p2749_p8 = scmp.lt.s32.totalorder %s3376_s10, %s3376_s10 }
 0x10f   : > { %p2750_p9 = scmp.lt.s32.totalorder %s3404_s16, %s2744_s0 }
 0x110   : > { %s3787_s12 = scalar_select %p3399_p6, 1, 0 }
 0x111   : > { %p3409_p10 = por %p2750_p9, %p2749_p8 }
 0x113   : > { %s3788_s20 = scalar_select %p3409_p10, 1, 0 }
 0x114   : > { %p3732_p3 = pnand %p3409_p10, %p3399_p6 }
 0x116   : > { %2755 = shalt.err (!%p3732_p3)  }
 0x117   : > { %565 = dma.hbm_to_vmem [thread:$0]  %s3374_s21, 256, %s3376_s10, [#allocation7]  ;;  %v3424_v0 = vmov 0.0   ;;  %v3426_v1 = vmov 0.0  }
 0x118   : > { %s3428_s28 = smov 0  }
 0x119 LB: >> { %p574_p13 = scmp.lt.s32.totalorder %s2980_s28, 0  ;;  %s575_s17 = ssub.s32 0, %s2980_s28  ;;  %s2980_s28 = sphi %s3428_s28, %s3793_s28   ;;  %v2976_v1 = vphi %v3426_v1, %v3792_v1   ;;  %v2972_v0 = vphi %v3424_v0, %v3791_v0  }
 0x11a   : >> { %s1998_s3 = smin.u32 %s2980_s28, %s575_s17 }
 0x11b   : >> { %s577_s4 = sand.u32 1, %s1998_s3  }
 0x11c   : >> { %s578_s5 = ssub.s32 0, %s577_s4 }
 0x11d   : >> { %s3831_s5 = smov (!%p574_p13, %s578_s5), %s577_s4 }
 0x11e   : >> { %p2000_p12 = scmp.lt.s32.totalorder %s3831_s5, 0  ;;  %s584_s18 = sadd.s32 2, %s3831_s5 }
 0x120   : >> { %s3833_s18 = smov (!%p2000_p12, %s584_s18), %s3831_s5 }
 0x121   : >> { %s2001_s0 = sshll.u32 %s3833_s18, 4  ;;  %s588_s9 = scalar_lea.sflag [#allocation7], %s3833_s18 }
 0x122   : >> { %s3442_s1 = scalar_lea.vmem [#allocation6], %s2001_s0 }
 0x123   : >> { %2930 = dma.done.wait %s588_s9, 256 }
 0x124   : >> { %2931 = vsyncadd %s588_s9, 4294967040  ;;  %s3789_s11 = sld [smem:[#allocation41_spill]]  ;;  %s3445_s6 = sadd.s32 1, %s2980_s28   ;;  %v2997_v2 = vmov 0.0|0.0   ;;  %vm2998_vm0 = vmmov 0   ;;  %v2999_v3 = vmov 0.0  }
 0x125   : >> { %s597_s17 = ssub.s32 1, %s3833_s18  ;;  %p2398_p7 = scmp.lt.s32.totalorder %s3445_s6, 4  ;;  %2305 = vmatprep.subr.bf16.mxu0 %v2997_v2  ;;  %2308 = vmatprep.subr.bf16.mxu1 %v2997_v2 }
 0x126   : >> { %s2003_s3 = sshll.u32 %s2980_s28, 4  ;;  %2147 = vmatprep.mubr.msk.f32.mxu0 %vm2998_vm0, %v2999_v3  ;;  %2154 = vmatprep.mubr.msk.f32.mxu1 %vm2998_vm0, %v2999_v3  ;;  %s2006_s5 = sshll.u32 %s597_s17, 4 }
 0x127   : >> { %s3790_s18 = sld [smem:[#allocation49_spill]]  ;;  %s603_s27 = scalar_lea.vmem [#allocation6], %s2006_s5 }
 0x128   : >> { %s612_s26 = sshll.u32 %s603_s27, 4  ;;  %s604_s28 = scalar_lea.sflag [#allocation7], %s597_s17  ;;  %s613_s26 = int_to_ptr.vmem [resolvable:$true] %s612_s26 }
 0x12a   : >> { %s2004_s4 = sshll.u32 %s3789_s11, 6 }
 0x12b   : >> { %s1839_s9 = sadd.s32 %s2004_s4, %s2003_s3 }
 0x12c   : >> { %s2005_s0 = sshll.u32 %s1839_s9, 4 }
 0x12d   : >> { %s1841_s30 = scalar_lea.hbm %s3790_s18, %s2005_s0 }
 0x12e   : >> { %s1842_s23 = scalar_lea.hbm %s1841_s30, 256  ;;  %s2784_s24 = scalar_lea.hbm %s1841_s30, 512 }
 0x12f   : >> { %p2757_p5 = scmp.ne.s32.totalorder %s1842_s23, %s2784_s24  ;;  %p2761_p4 = scmp.lt.u32.totalorder %s1842_s23, %s3790_s18 }
 0x130   : >> { %p2762_p8 = scmp.lt.u32.totalorder %s3383_s8, %s2784_s24  ;;  %p2764_p13 = scmp.lt.u32.totalorder %s2784_s24, %s1842_s23 }
 0x131   : >> { %p2758_p11 = pnand %p2757_p5, %p2398_p7 }
 0x132   : >> { %p2763_p9 = por %p2762_p8, %p2761_p4 }
 0x133   : >> { %p2759_p2 = pneg %p2758_p11 }
 0x134   : >> { %p2765_p12 = por %p2764_p13, %p2763_p9 }
 0x136   : >> { %p2766_p3 = pnand %p2765_p12, %p2759_p2 }
 0x138   : >> { %2769 = shalt.err (!%p2766_p3)  }
 0x139   : >> { %s2770_s11 = scalar_lea.vmem %s613_s26, 256  ;;  %p2777_p5 = scmp.lt.s32.totalorder %s613_s26, %s3376_s10 }
 0x13a   : >> { %p2771_p0 = scmp.ne.s32.totalorder %s613_s26, %s2770_s11  ;;  %p2778_p11 = scmp.lt.s32.totalorder %s3404_s16, %s2770_s11 }
 0x13c   : >> { %p2772_p6 = pnand %p2771_p0, %p2398_p7  ;;  %p2779_p1 = por %p2778_p11, %p2777_p5 }
 0x13e   : >> { %p2773_p10 = pneg %p2772_p6 }
 0x140   : >> { %p2780_p4 = pnand %p2779_p1, %p2773_p10 }
 0x142   : >> { %2783 = shalt.err (!%p2780_p4)  }
 0x143   : >> { %2358 = dma.hbm_to_vmem [thread:$0]  (%p2398_p7), %s1842_s23, 256, %s613_s26, %s604_s28  ;;  %vm618_vm1 = vcmask 130048   ;;  %v3000_v10 = vmov 1.0  }
 0x144   : >> { %v616_v4 = vld [vmem:[%s3442_s1] sm:$0xff]  ;;  %v617_v5 = vld [vmem:[%s3442_s1 + $0x8] sm:$0xff]  ;;  %s3793_s28 = smov %s3445_s6  ;;  %p3794_p1 = scmp.ge.s32.totalorder %s3445_s6, 4 }
 0x145   : >> { %v2306_v6 = vpack.c.bf16 %v617_v5, %v616_v4  ;;  %v693_v7 = vmul.f32 %v616_v4, %v616_v4  ;;  %v694_v8 = vmul.f32 %v617_v5, %v617_v5  ;;  %v766_v17 = vld [vmem:[#allocation11] sm:$0xff] (%p3794_p1)  ;;  %v767_v18 = vld [vmem:[#allocation11 + $0x8] sm:$0xff] (%p3794_p1)  ;;  %v3001_v19 = vmov (%p3794_p1), 0.0|0.0   ;;  %p3795_p6 = scmp.ne.s32.totalorder (%p3794_p1), %s3786_s2, 0 }
 0x146   : > { %v2312_v20 = vpack.c.bf16 (%p3794_p1), %v767_v18, %v766_v17 }
 0x147   : >> { %2307 = vmatpush3.bf16.msra.mxu0 %v2306_v6  ;;  %v2309_v9 = vpack.c.bf16 %v694_v8, %v693_v7 }
 0x148   : > { %2311 = vmatprep.subr.bf16.mxu0 (%p3794_p1), %v3001_v19 }
 0x149   : >> { %2310 = vmatpush3.bf16.msra.mxu1 %v2309_v9 }
 0x14a   : >> { %2148 = vmatmul.mubr.msk.f32.vlgmr.msra.gmra.mrb[0].mxu0 %vm618_vm1, %v3000_v10  ;;  %2317 = vmatprep.subr.bf16.mxu1 (%p3794_p1), %v3001_v19 }
 0x14c   : >> { %2155 = vmatmul.mubr.msk.f32.vlgmr.msra.gmra.mrb[0].mxu1 %vm618_vm1, %v3000_v10 }
 0x21c   : > { %570 = sbr.rel (!%p3794_p1) target bundleno = 281 (0x119), region = 189 }
 0x21d   : >> { %v688_v11 = vpop.f32.mrb[0].mxu0 }
 0x21e   : >> { %v692_v12 = vadd.f32 %v2976_v1, %v688_v11   ;;  %v2149_v13 = vpop.f32.mrb[1].mxu0 }
 0x21f   : >> { %v761_v14 = vpop.f32.mrb[0].mxu1 }
 0x220   : >> { %v765_v15 = vadd.f32 %v2972_v0, %v761_v14   ;;  %v2156_v16 = vpop.f32.mrb[1].mxu1  ;;  %v3792_v1 = vmov %v692_v12 }
 0x222   : >> { %v3791_v0 = vmov %v765_v15 }
 0x223   : > { %2796 = shalt.err (!%p3795_p6)  }
 0x224   : > { %p3796_p10 = scmp.ne.s32.totalorder %s3788_s20, 0  ;;  %p3797_p3 = scmp.ne.s32.totalorder %s3787_s12, 0 }
 0x226   : > { %p3798_p0 = pnand %p3796_p10, %p3797_p3 }
 0x228   : > { %2808 = shalt.err (!%p3798_p0)  }
 0x229   : > { %1079 = dma.hbm_to_vmem [thread:$0]  %s3374_s21, 256, %s3376_s10, [#allocation7]  ;;  %vm3002_vm2 = vmmov 0   ;;  %v3003_v21 = vmov 0.0   ;;  %2313 = vmatpush3.bf16.xpose.msra.mxu0 %v2312_v20  ;;  %2319 = vmatpush3.bf16.xpose.msra.mxu1 %v2312_v20  ;;  %v768_v22 = vld [vmem:[#allocation11 + $0x10] sm:$0xff]  ;;  %v769_v23 = vld [vmem:[#allocation11 + $0x18] sm:$0xff] }
 0x22a   : > { %2165 = vmatprep.mubr.msk.f32.mxu0 %vm3002_vm2, %v3003_v21  ;;  %2176 = vmatprep.mubr.msk.f32.mxu1 %vm3002_vm2, %v3003_v21  ;;  %v2315_v24 = vpack.c.bf16 %v769_v23, %v768_v22  ;;  %vm914_vm3 = vcmask 261120   ;;  %s3799_s26 = sld [smem:[#allocation51_spill]]  ;;  %s3800_s14 = sld [smem:[#allocation52_spill]] }
 0x22b   : > { %2314 = vmatprep.subr.bf16.mxu0 %v3001_v19  ;;  %2320 = vmatprep.subr.bf16.mxu1 %v3001_v19  ;;  %s3507_s15 = smov 0  }
 0x230   : > { %v1062_v38 = vld [vmem:[%s3799_s26] sm:$0x1] }
 0x231   : > { %2316 = vmatpush3.bf16.xpose.msra.mxu0 %v2315_v24  ;;  %2322 = vmatpush3.bf16.xpose.msra.mxu1 %v2315_v24  ;;  %v1064_v41 = vld [vmem:[%s3800_s14] sm:$0x1] }
 0x232   : > { %2323 = vmatprep.subr.bf16.mxu0 %v3001_v19  ;;  %2329 = vmatprep.subr.bf16.mxu1 %v3001_v19 }
 0x238   : > { %2166 = vmatmul.mubr.f32.vlgmr.msra.gmra.mrb[0].mxu0 %v692_v12  ;;  %2177 = vmatmul.mubr.f32.vlgmr.msra.gmra.mrb[0].mxu1 %v765_v15 }
 0x239   : > { %2325 = vmatpush3.bf16.msra.mxu0 %v2312_v20  ;;  %2331 = vmatpush3.bf16.msra.mxu1 %v2312_v20 }
 0x23a   : > { %2326 = vmatprep.subr.bf16.mxu0 %v3001_v19  ;;  %2187 = vmatprep.mubr.msk.f32.mxu0 %vm3002_vm2, %v3003_v21 }
 0x23b   : > { %2332 = vmatprep.subr.bf16.mxu1 %v3001_v19  ;;  %2198 = vmatprep.mubr.msk.f32.mxu1 %vm3002_vm2, %v3003_v21 }
 0x23d   : > { %2328 = vmatpush3.bf16.msra.mxu0 %v2315_v24  ;;  %2334 = vmatpush3.bf16.msra.mxu1 %v2315_v24 }
 0x30b   : > { %v836_v25 = vpop.f32.mrb[0].mxu0  ;;  %v907_v26 = vpop.f32.mrb[0].mxu1 }
 0x30c   : > { %v840_v27 = vmul.f32 0.015625, %v836_v25  ;;  %v2167_v28 = vpop.f32.mrb[1].mxu0  ;;  %v911_v29 = vmul.f32 0.015625, %v907_v26  ;;  %v2178_v30 = vpop.f32.mrb[1].mxu1 }
 0x30e   : > { %v912_v31 = vmul.f32 %v840_v27, %v840_v27  ;;  %2188 = vmatmul.mubr.msk.f32.vlgmr.msra.gmra.mrb[2].mxu0 %vm914_vm3, %v840_v27 }
 0x310   : > { %v913_v32 = vsub.f32 %v911_v29, %v912_v31 }
 0x312   : > { %2199 = vmatmul.mubr.msk.f32.vlgmr.msra.gmra.mrb[2].mxu1 %vm914_vm3, %v913_v32 }
 0x3e1   : > { %v984_v33 = vpop.f32.mrb[2].mxu0 }
 0x3e2   : > { %v2189_v34 = vpop.f32.mrb[3].mxu0 }
 0x3e5   : > { %v1057_v35 = vpop.f32.mrb[2].mxu1 }
 0x3e6   : > { %v1058_v36 = vadd.f32 1e-06, %v1057_v35  ;;  %v2200_v37 = vpop.f32.mrb[3].mxu1 }
 0x3e8   : > { %2520 = vrsqrt.f32 %v1058_v36 }
 0x3f2   : > { %v2521_v39 = vpop.eup %2520 }
 0x3f3   : > { %v3497_v40 = vmul.f32 %v2521_v39, %v1062_v38 }
 0x3f5   : > { %v1065_v42 = vmul.f32 %v3497_v40, %v984_v33  ;;  %1067 = vst [vmem:[#allocation4] sm:$0x1] %v3497_v40 }
 0x3f7   : > { %v3504_v43 = vsub.f32 %v1064_v41, %v1065_v42 }
 0x3f9   : > { %1068 = vst [vmem:[#allocation5] sm:$0x1] %v3504_v43 }
 0x3fa LB: >> { %p1086_p7 = scmp.lt.s32.totalorder %s2984_s15, 0  ;;  %s1087_s19 = ssub.s32 0, %s2984_s15  ;;  %s2984_s15 = sphi %s3507_s15, %s3805_s15  }
 0x3fb   : >> { %s2011_s6 = smin.u32 %s2984_s15, %s1087_s19 }
 0x3fc   : >> { %s1089_s24 = sand.u32 1, %s2011_s6  }
 0x3fd   : >> { %s1090_s23 = ssub.s32 0, %s1089_s24 }
 0x3fe   : >> { %s3835_s23 = smov (!%p1086_p7, %s1090_s23), %s1089_s24 }
 0x3ff   : >> { %p2013_p2 = scmp.lt.s32.totalorder %s3835_s23, 0  ;;  %s1096_s21 = sadd.s32 2, %s3835_s23 }
 0x401   : >> { %s3837_s21 = smov (!%p2013_p2, %s1096_s21), %s3835_s23 }
 0x402   : >> { %s2014_s2 = sshll.u32 %s3837_s21, 4  ;;  %s1100_s20 = scalar_lea.sflag [#allocation7], %s3837_s21 }
 0x403   : >> { %s3515_s12 = scalar_lea.vmem [#allocation6], %s2014_s2 }
 0x404   : >> { %2932 = dma.done.wait %s1100_s20, 256 }
 0x405   : >> { %2933 = vsyncadd %s1100_s20, 4294967040  ;;  %s3518_s3 = sadd.s32 1, %s2984_s15   ;;  %s1109_s9 = ssub.s32 1, %s3837_s21  ;;  %v3004_v44 = vmov 0.0   ;;  %vm3005_vm4 = vmmov 0   ;;  %v2522_v45 = vld [vmem:[#allocation16] sm:$0xff]  }
 0x406   : >> { %2221 = vmatprep.subr.bf16.mxu1 %v3004_v44  ;;  %p2399_p9 = scmp.lt.s32.totalorder %s3518_s3, 4  ;;  %2237 = vmatprep.mubr.msk.bf16.mxu1 %vm3005_vm4, %v3004_v44  ;;  %s2016_s5 = sshll.u32 %s2984_s15, 4 }
 0x407   : >> { %s2019_s0 = sshll.u32 %s1109_s9, 4  ;;  %2201 = vmatprep.subr.bf16.mxu0 %v3004_v44  ;;  %2217 = vmatprep.mubr.msk.bf16.mxu0 %vm3005_vm4, %v3004_v44  ;;  %s1851_s18 = sadd.s32 %s2016_s5, %s2004_s4 }
 0x408   : >> { %s2018_s28 = sshll.u32 %s1851_s18, 4  ;;  %s3802_s25 = sld [smem:[#allocation49_spill]] }
 0x409   : >> { %s1115_s27 = scalar_lea.vmem [#allocation6], %s2019_s0  ;;  %s1116_s19 = scalar_lea.sflag [#allocation7], %s1109_s9 }
 0x40a   : >> { %s1124_s30 = sshll.u32 %s1115_s27, 4  ;;  %s1125_s30 = int_to_ptr.vmem [resolvable:$true] %s1124_s30 }
 0x40e   : >> { %s1853_s26 = scalar_lea.hbm %s3802_s25, %s2018_s28 }
 0x40f   : >> { %s1854_s14 = scalar_lea.hbm %s1853_s26, 256  ;;  %s2837_s6 = scalar_lea.hbm %s1853_s26, 512 }
 0x410   : >> { %p2810_p13 = scmp.ne.s32.totalorder %s1854_s14, %s2837_s6  ;;  %p2814_p11 = scmp.lt.u32.totalorder %s1854_s14, %s3802_s25 }
 0x411   : >> { %p2815_p4 = scmp.lt.u32.totalorder %s3383_s8, %s2837_s6  ;;  %p2817_p6 = scmp.lt.u32.totalorder %s2837_s6, %s1854_s14 }
 0x412   : >> { %p2811_p12 = pnand %p2810_p13, %p2399_p9 }
 0x413   : >> { %p2816_p1 = por %p2815_p4, %p2814_p11 }
 0x414   : >> { %p2812_p5 = pneg %p2811_p12 }
 0x415   : >> { %p2818_p10 = por %p2817_p6, %p2816_p1 }
 0x417   : >> { %p2819_p3 = pnand %p2818_p10, %p2812_p5 }
 0x419   : >> { %2822 = shalt.err (!%p2819_p3)  }
 0x41a   : >> { %s2823_s21 = scalar_lea.vmem %s1125_s30, 256  ;;  %p2830_p13 = scmp.lt.s32.totalorder %s1125_s30, %s3376_s10 }
 0x41b   : >> { %p2824_p0 = scmp.ne.s32.totalorder %s1125_s30, %s2823_s21  ;;  %p2831_p12 = scmp.lt.s32.totalorder %s3404_s16, %s2823_s21 }
 0x41d   : >> { %p2825_p7 = pnand %p2824_p0, %p2399_p9  ;;  %p2832_p8 = por %p2831_p12, %p2830_p13 }
 0x41f   : >> { %p2826_p2 = pneg %p2825_p7 }
 0x421   : >> { %p2833_p4 = pnand %p2832_p8, %p2826_p2 }
 0x423   : >> { %2836 = shalt.err (!%p2833_p4)  }
 0x424   : >> { %2360 = dma.hbm_to_vmem [thread:$0]  (%p2399_p9), %s1854_s14, 256, %s1125_s30, %s1116_s19  ;;  %2222 = vmatpush3.bf16.msra.mxu1 %v2522_v45  ;;  %v2523_v46 = vld [vmem:[#allocation16 + $0x8] sm:$0xff]   ;;  %v1130_v47 = vlaneseq  ;;  %v2524_v48 = vld [vmem:[#allocation16 + $0x10] sm:$0xff]   ;;  %v2530_v50 = vld [vmem:[#allocation14] sm:$0xff]  }
 0x425   : >> { %2223 = vmatprep.subr.bf16.mxu1 %v3004_v44  ;;  %v2525_v51 = vld [vmem:[#allocation16 + $0x18] sm:$0xff]   ;;  %2202 = vmatpush3.bf16.msra.mxu0 %v2530_v50  ;;  %v2531_v52 = vld [vmem:[#allocation14 + $0x8] sm:$0xff]   ;;  %v2526_v54 = vld [vmem:[#allocation16 + $0x20] sm:$0xff]   ;;  %s3803_s20 = sld [smem:[#allocation59_spill]]  ;;  %s1477_s17 = sshra.s32 %s2016_s5, 4 }
 0x426   : >> { %v1131_v49 = vshrl.u32 %v1130_v47, 7  ;;  %2203 = vmatprep.subr.bf16.mxu0 %v3004_v44  ;;  %v2532_v55 = vld [vmem:[#allocation14 + $0x10] sm:$0xff]   ;;  %v2527_v56 = vld [vmem:[#allocation16 + $0x28] sm:$0xff]   ;;  %v1128_v57 = vld [vmem:[%s3515_s12] sm:$0xff]  ;;  %s3804_s18 = sld [smem:[#allocation57_spill]]  ;;  %s2047_s28 = sshll.u32 %s1477_s17, 3 }
 0x427   : >> { %v1129_v59 = vld [vmem:[%s3515_s12 + $0x8] sm:$0xff]  ;;  %v2533_v60 = vld [vmem:[#allocation14 + $0x18] sm:$0xff]   ;;  %v2528_v0 = vld [vmem:[#allocation16 + $0x30] sm:$0xff]   ;;  %s1480_s11 = scalar_lea.vmem [#allocation2], %s2047_s28  ;;  %s1484_s15 = scalar_lea.vmem [#allocation3], %s2047_s28 }
 0x428   : >> { %2224 = vmatpush3.bf16.msra.mxu1 %v2523_v46  ;;  %v1132_v53 = vsub.s32 0, %v1131_v49  ;;  %v2534_v1 = vld [vmem:[#allocation14 + $0x20] sm:$0xff]   ;;  %v2529_v4 = vld [vmem:[#allocation16 + $0x38] sm:$0xff]   ;;  %v2535_v5 = vld [vmem:[#allocation14 + $0x28] sm:$0xff]   ;;  %p3806_p8 = scmp.ge.s32.totalorder %s3518_s3, 4 }
 0x429   : >> { %2225 = vmatprep.subr.bf16.mxu1 %v3004_v44  ;;  %2204 = vmatpush3.bf16.msra.mxu0 %v2531_v52  ;;  %v2536_v7 = vld [vmem:[#allocation14 + $0x30] sm:$0xff]   ;;  %v2537_v8 = vld [vmem:[#allocation14 + $0x38] sm:$0xff]   ;;  %v2538_v9 = vld [vmem:[#allocation17] sm:$0xff]  }
 0x42a   : >> { %2205 = vmatprep.subr.bf16.mxu0 %v3004_v44  ;;  %v1133_v58 = vrot.slane %v3497_v40, %v1132_v53  ;;  %v1140_v63 = vrot.slane %v3504_v43, %v1132_v53  ;;  %v2539_v10 = vld [vmem:[#allocation17 + $0x8] sm:$0xff]   ;;  %v2540_v11 = vld [vmem:[#allocation17 + $0x10] sm:$0xff]   ;;  %v2541_v12 = vld [vmem:[#allocation17 + $0x18] sm:$0xff]  }
 0x42b   : >> { %v2542_v13 = vld [vmem:[#allocation17 + $0x20] sm:$0xff]   ;;  %v2543_v14 = vld [vmem:[#allocation17 + $0x28] sm:$0xff]   ;;  %v2544_v15 = vld [vmem:[#allocation17 + $0x30] sm:$0xff]  }
 0x42c   : >> { %2226 = vmatpush3.bf16.msra.mxu1 %v2524_v48  ;;  %v1134_v61 = vmul.f32 %v1133_v58, %v1128_v57  ;;  %v1135_v62 = vmul.f32 %v1133_v58, %v1129_v59  ;;  %v2545_v16 = vld [vmem:[#allocation17 + $0x38] sm:$0xff]  }
 0x42d   : >> { %2227 = vmatprep.subr.bf16.mxu1 %v3004_v44  ;;  %2206 = vmatpush3.bf16.msra.mxu0 %v2532_v55  ;;  %v2029_v17 = vld [vmem:[%s3803_s20] ss:$0 sm:$0xff] }
 0x42e   : >> { %2207 = vmatprep.subr.bf16.mxu0 %v3004_v44  ;;  %v1142_v2 = vadd.f32 %v1140_v63, %v1134_v61  ;;  %v1143_v3 = vadd.f32 %v1140_v63, %v1135_v62  ;;  %v2020_v25 = vld [vmem:[%s3804_s18] ss:$0 sm:$0xff] }
 0x430   : >> { %2228 = vmatpush3.bf16.msra.mxu1 %v2525_v51  ;;  %v1144_v6 = vpack.c.bf16 %v1143_v3, %v1142_v2 }
 0x431   : >> { %2229 = vmatprep.subr.bf16.mxu1 %v3004_v44  ;;  %2208 = vmatpush3.bf16.msra.mxu0 %v2533_v60 }
 0x432   : >> { %2209 = vmatprep.subr.bf16.mxu0 %v3004_v44 }
 0x434   : >> { %2230 = vmatpush3.bf16.msra.mxu1 %v2526_v54 }
 0x435   : >> { %2231 = vmatprep.subr.bf16.mxu1 %v3004_v44  ;;  %2210 = vmatpush3.bf16.msra.mxu0 %v2534_v1 }
 0x436   : >> { %2211 = vmatprep.subr.bf16.mxu0 %v3004_v44 }
 0x438   : >> { %2232 = vmatpush3.bf16.msra.mxu1 %v2527_v56 }
 0x439   : >> { %2233 = vmatprep.subr.bf16.mxu1 %v3004_v44  ;;  %2212 = vmatpush3.bf16.msra.mxu0 %v2535_v5 }
 0x43a   : >> { %2213 = vmatprep.subr.bf16.mxu0 %v3004_v44 }
 0x43c   : >> { %2234 = vmatpush3.bf16.msra.mxu1 %v2528_v0 }
 0x43d   : >> { %2235 = vmatprep.subr.bf16.mxu1 %v3004_v44  ;;  %2214 = vmatpush3.bf16.msra.mxu0 %v2536_v7 }
 0x43e   : >> { %2215 = vmatprep.subr.bf16.mxu0 %v3004_v44 }
 0x440   : >> { %2236 = vmatpush3.bf16.msra.mxu1 %v2529_v4 }
 0x441   : >> { %2216 = vmatpush3.bf16.msra.mxu0 %v2537_v8 }
 0x442   : >> { %2241 = vmatprep.subr.bf16.mxu0 %v3004_v44 }
 0x443   : >> { %2238 = vmatmul.mubr.bf16.vlgmr.msra.gmra.mrb[0].mxu1 %v1144_v6 }
 0x444   : >> { %2218 = vmatmul.mubr.bf16.vlgmr.msra.gmra.mrb[0].mxu0 %v1144_v6 }
 0x445   : >> { %2242 = vmatpush3.bf16.msra.mxu0 %v2538_v9  ;;  %2257 = vmatprep.mubr.msk.bf16.mxu0 %vm3005_vm4, %v3004_v44 }
 0x446   : >> { %2243 = vmatprep.subr.bf16.mxu0 %v3004_v44 }
 0x449   : >> { %2244 = vmatpush3.bf16.msra.mxu0 %v2539_v10 }
 0x44a   : >> { %2245 = vmatprep.subr.bf16.mxu0 %v3004_v44 }
 0x44d   : >> { %2246 = vmatpush3.bf16.msra.mxu0 %v2540_v11 }
 0x44e   : >> { %2247 = vmatprep.subr.bf16.mxu0 %v3004_v44 }
 0x451   : >> { %2248 = vmatpush3.bf16.msra.mxu0 %v2541_v12 }
 0x452   : >> { %2249 = vmatprep.subr.bf16.mxu0 %v3004_v44 }
 0x455   : >> { %2250 = vmatpush3.bf16.msra.mxu0 %v2542_v13 }
 0x456   : >> { %2251 = vmatprep.subr.bf16.mxu0 %v3004_v44 }
 0x459   : >> { %2252 = vmatpush3.bf16.msra.mxu0 %v2543_v14 }
 0x45a   : >> { %2253 = vmatprep.subr.bf16.mxu0 %v3004_v44 }
 0x45d   : >> { %2254 = vmatpush3.bf16.msra.mxu0 %v2544_v15 }
 0x45e   : >> { %2255 = vmatprep.subr.bf16.mxu0 %v3004_v44 }
 0x461   : >> { %2256 = vmatpush3.bf16.msra.mxu0 %v2545_v16 }
 0x516   : >> { %v1362_v18 = vpop.f32.mrb[0].mxu1 }
 0x517   : >> { %v2239_v19 = vpop.f32.mrb[1].mxu1  ;;  %v1363_v21 = vadd.f32 %v2029_v17, %v1362_v18  ;;  %v1250_v26 = vpop.f32.mrb[0].mxu0 }
 0x518   : >> { %v1365_v20 = vpop.f32.mrb[2].mxu1  ;;  %v1251_v27 = vadd.f32 %v2020_v25, %v1250_v26  ;;  %v2219_v28 = vpop.f32.mrb[1].mxu0 }
 0x519   : >> { %v1366_v22 = vadd.f32 %v2029_v17, %v1365_v20  ;;  %v2240_v23 = vpop.f32.mrb[3].mxu1  ;;  %v1253_v29 = vpop.f32.mrb[2].mxu0 }
 0x51a   : >> { %v1254_v30 = vadd.f32 %v2020_v25, %v1253_v29  ;;  %v2220_v31 = vpop.f32.mrb[3].mxu0 }
 0x51b   : >> { %v1369_v24 = vpack.c.bf16 %v1366_v22, %v1363_v21 }
 0x51c   : >> { %v1476_v32 = vpack.c.bf16 %v1254_v30, %v1251_v27 }
 0x51d   : >> { %2258 = vmatmul.mubr.bf16.vlgmr.msra.gmra.mrb[4].mxu0 %v1369_v24 }
 0x51e   : >> { %1481 = vst [vmem:[%s1480_s11] sm:$0xff] %v1476_v32 }
 0x5ef   : > { %1084 = sbr.rel (!%p3806_p8) target bundleno = 1018 (0x3fa), region = 200 }
 0x5f0   : >> { %v1468_v33 = vpop.f32.mrb[4].mxu0 }
 0x5f1   : >> { %v2259_v34 = vpop.f32.mrb[5].mxu0 }
 0x5f2   : >> { %v1471_v35 = vpop.f32.mrb[6].mxu0 }
 0x5f3   : >> { %v1482_v36 = vpack.c.bf16 %v1471_v35, %v1468_v33  ;;  %v2260_v37 = vpop.f32.mrb[7].mxu0 }
 0x5f5   : >> { %1485 = vst [vmem:[%s1484_s15] sm:$0xff] %v1482_v36  ;;  %s3805_s15 = smov %s3518_s3 }
 0x5f6 PF: > { %v2546_v38 = vld [vmem:[#allocation13] sm:$0xff]   ;;  %v3006_v39 = vmov 0.0   ;;  %v2547_v41 = vld [vmem:[#allocation13 + $0x8] sm:$0xff]   ;;  %vm3007_vm5 = vmmov 0   ;;  %v2548_v40 = vld [vmem:[#allocation13 + $0x10] sm:$0xff]   ;;  %s3807_s8 = sld [smem:[#allocation55_spill]] }
 0x5f7   : > { %2261 = vmatprep.subr.bf16.mxu0 %v3006_v39  ;;  %2281 = vmatprep.subr.bf16.mxu1 %v3006_v39  ;;  %v1622_v42 = vld [vmem:[#allocation2] sm:$0xff]  ;;  %v1623_v45 = vld [vmem:[#allocation2 + $0x8] sm:$0xff]  ;;  %v2552_v52 = vld [vmem:[#allocation13 + $0x30] sm:$0xff]   ;;  %vm1667_vm6 = vcmask 523264   ;;  %s3808_s16 = sld [smem:[#allocation40_spill]]  ;;  %s3809_s4 = sld [smem:[#allocation41_spill]] }
 0x5f8   : > { %2262 = vmatpush3.bf16.msra.mxu0 %v2546_v38  ;;  %2277 = vmatprep.mubr.msk.bf16.mxu0 %vm3007_vm5, %v3006_v39  ;;  %v2549_v43 = vld [vmem:[#allocation13 + $0x18] sm:$0xff]   ;;  %v2550_v44 = vld [vmem:[#allocation13 + $0x20] sm:$0xff]   ;;  %v2551_v46 = vld [vmem:[#allocation13 + $0x28] sm:$0xff]   ;;  %s3810_s27 = sld [smem:[#allocation61_spill]]  ;;  %s1770_s14 = sshll.u32 %s3367_s7, 4  ;;  %s3640_s14 = int_to_ptr.vmem [resolvable:$true] %s1770_s14 }
 0x5f9   : > { %2263 = vmatprep.subr.bf16.mxu0 %v3006_v39  ;;  %2289 = vmatprep.mubr.msk.bf16.mxu1 %vm3007_vm5, %v3006_v39  ;;  %v3601_v47 = vld [vmem:[%s3349_s22] sm:$0xff]  ;;  %v3604_v48 = vld [vmem:[%s3349_s22 + $0x8] sm:$0xff]  ;;  %s3811_s24 = sld [smem:[#allocation62_spill]]  ;;  %s1753_s21 = scalar_lea.sflag [#allocation10], %s3345_s29 }
 0x5fa   : > { %2282 = vmatpush3.bf16.xpose.msra.mxu1 %v1622_v42  ;;  %v2049_v49 = vld [vmem:[#allocation4] ss:$0 sm:$0xff]  ;;  %v2050_v53 = vld [vmem:[#allocation5] ss:$0 sm:$0xff]  ;;  %v1624_v54 = vld [vmem:[#allocation2 + $0x10] sm:$0xff]  ;;  %s2838_s2 = scalar_lea.vmem %s3640_s14, 256 }
 0x5fb   : > { %2283 = vmatprep.subr.bf16.mxu1 %v3006_v39  ;;  %v1495_v50 = vmul.f32 %v2049_v49, %v3601_v47  ;;  %v1496_v51 = vmul.f32 %v2049_v49, %v3604_v48  ;;  %v2553_v57 = vld [vmem:[#allocation13 + $0x38] sm:$0xff]   ;;  %p2839_p9 = scmp.ne.s32.totalorder %s3640_s14, %s2838_s2  ;;  %p3812_p5 = scmp.ne.s32.totalorder %s3773_s13, 0 }
 0x5fc   : > { %2264 = vmatpush3.bf16.msra.mxu0 %v2547_v41  ;;  %v1625_v59 = vld [vmem:[#allocation2 + $0x18] sm:$0xff]  ;;  %v2051_v60 = vld [vmem:[%s3807_s8] ss:$0 sm:$0xff]  ;;  %v1688_v13 = vld [vmem:[#allocation3 + $0x8] sm:$0xff]  ;;  %s3008_s12 = smov [#allocation19]  }
 0x5fd   : > { %2265 = vmatprep.subr.bf16.mxu0 %v3006_v39  ;;  %v1504_v55 = vadd.f32 %v2050_v53, %v1495_v50  ;;  %v1505_v56 = vadd.f32 %v2050_v53, %v1496_v51  ;;  %v1687_v12 = vld [vmem:[#allocation3] sm:$0xff]  ;;  %v1689_v14 = vld [vmem:[#allocation3 + $0x10] sm:$0xff]  ;;  %v1690_v15 = vld [vmem:[#allocation3 + $0x18] sm:$0xff]  ;;  %s2063_s3 = sshll.u32 %s3808_s16, 1  ;;  %s2064_s5 = sshll.u32 %s3809_s4, 3 }
 0x5fe   : > { %s1767_s1 = sadd.s32 %s2064_s5, %s2063_s3  ;;  %v2061_v34 = vld [vmem:[%s3810_s27] ss:$0 sm:$0xff]  ;;  %p2840_p11 = pnand %p2839_p9, %p3812_p5 }
 0x5ff   : > { %v1506_v58 = vpack.c.bf16 %v1505_v56, %v1504_v55  ;;  %s2065_s30 = sshll.u32 %s1767_s1, 7  ;;  %s2842_s20 = sshll.u32 %s3008_s12, 4  ;;  %s2843_s20 = int_to_ptr.vmem [resolvable:$false] %s2842_s20 }
 0x600   : > { %2266 = vmatpush3.bf16.msra.mxu0 %v2548_v40  ;;  %s3638_s23 = scalar_lea.hbm %s3811_s24, %s2065_s30  ;;  %p2841_p1 = pneg %p2840_p11 }
 0x601   : > { %2267 = vmatprep.subr.bf16.mxu0 %v3006_v39  ;;  %s2844_s17 = scalar_lea.vmem %s2843_s20, 512  ;;  %p2845_p6 = scmp.lt.s32.totalorder %s3640_s14, %s2843_s20 }
 0x602   : > { %2284 = vmatpush3.bf16.xpose.msra.mxu1 %v1623_v45  ;;  %p2846_p10 = scmp.lt.s32.totalorder %s2844_s17, %s2838_s2 }
 0x603   : > { %2285 = vmatprep.subr.bf16.mxu1 %v3006_v39 }
 0x604   : > { %2268 = vmatpush3.bf16.msra.mxu0 %v2549_v43  ;;  %p2847_p3 = por %p2846_p10, %p2845_p6 }
 0x605   : > { %2269 = vmatprep.subr.bf16.mxu0 %v3006_v39 }
 0x606   : > { %p2848_p0 = pnand %p2847_p3, %p2841_p1 }
 0x608   : > { %2270 = vmatpush3.bf16.msra.mxu0 %v2550_v44 }
 0x609   : > { %2271 = vmatprep.subr.bf16.mxu0 %v3006_v39 }
 0x60a   : > { %2286 = vmatpush3.bf16.xpose.msra.mxu1 %v1624_v54 }
 0x60b   : > { %2287 = vmatprep.subr.bf16.mxu1 %v3006_v39 }
 0x60c   : > { %2272 = vmatpush3.bf16.msra.mxu0 %v2551_v46 }
 0x60d   : > { %2273 = vmatprep.subr.bf16.mxu0 %v3006_v39 }
 0x610   : > { %2274 = vmatpush3.bf16.msra.mxu0 %v2552_v52 }
 0x611   : > { %2275 = vmatprep.subr.bf16.mxu0 %v3006_v39 }
 0x612   : > { %2288 = vmatpush3.bf16.xpose.msra.mxu1 %v1625_v59 }
 0x614   : > { %2276 = vmatpush3.bf16.msra.mxu0 %v2553_v57 }
 0x615   : > { %2293 = vmatprep.subr.bf16.mxu0 %v3006_v39 }
 0x617   : > { %2278 = vmatmul.mubr.bf16.vlgmr.msra.gmra.mrb[0].mxu0 %v1506_v58 }
 0x618   : > { %2301 = vmatprep.mubr.msk.bf16.mxu0 %vm3007_vm5, %v3006_v39  ;;  %2294 = vmatpush3.bf16.msra.mxu0 %v1687_v12 }
 0x619   : > { %2295 = vmatprep.subr.bf16.mxu0 %v3006_v39 }
 0x61c   : > { %2296 = vmatpush3.bf16.msra.mxu0 %v1688_v13 }
 0x61d   : > { %2297 = vmatprep.subr.bf16.mxu0 %v3006_v39 }
 0x620   : > { %2298 = vmatpush3.bf16.msra.mxu0 %v1689_v14 }
 0x621   : > { %2299 = vmatprep.subr.bf16.mxu0 %v3006_v39 }
 0x624   : > { %2300 = vmatpush3.bf16.msra.mxu0 %v1690_v15 }
 0x6ea   : > { %v1612_v61 = vpop.f32.mrb[0].mxu0 }
 0x6eb   : > { %v1613_v62 = vadd.f32 %v2051_v60, %v1612_v61  ;;  %v2279_v63 = vpop.f32.mrb[1].mxu0 }
 0x6ec   : > { %v1615_v0 = vpop.f32.mrb[2].mxu0 }
 0x6ed   : > { %v1616_v1 = vadd.f32 %v2051_v60, %v1615_v0  ;;  %v2280_v2 = vpop.f32.mrb[3].mxu0  ;;  %v1619_v3 = vmul.f32 0.17677669, %v1613_v62 }
 0x6ef   : > { %v1620_v4 = vmul.f32 0.17677669, %v1616_v1 }
 0x6f1   : > { %v1621_v5 = vpack.c.bf16 %v1620_v4, %v1619_v3 }
 0x6f3   : > { %2290 = vmatmul.mubr.bf16.vlgmr.msra.gmra.mrb[0].mxu1 %v1621_v5 }
 0x7c6   : > { %v1660_v6 = vpop.f32.mrb[0].mxu1 }
 0x7c7   : > { %v2291_v7 = vpop.f32.mrb[1].mxu1  ;;  %v1668_v8 = vsel %vm1667_vm6, %v1660_v6, -inf }
 0x7c8   : > { %1669 = vmax.xlane.f32.xlu0 %v1668_v8  ;;  %v1663_v9 = vpop.f32.mrb[2].mxu1 }
 0x7c9   : > { %v2292_v10 = vpop.f32.mrb[3].mxu1  ;;  %v1671_v11 = vsel %vm1667_vm6, %v1663_v9, -inf }
 0x7cc   : > { %1672 = vmax.xlane.f32.xlu0 %v1671_v11 }
 0x855   : > { %v1670_v16 = vpop.xlane.xlu0 %1669 }
 0x856   : > { %v1674_v17 = vsub.f32 %v1660_v6, %v1670_v16 }
 0x858   : > { %v1676_v18 = vmul.f32 1.442695, %v1674_v17 }
 0x859   : > { %v1673_v19 = vpop.xlane.xlu0 %1672 }
 0x85a   : > { %2554 = vpow2.f32 %v1676_v18  ;;  %v1675_v20 = vsub.f32 %v1663_v9, %v1673_v19 }
 0x85c   : > { %v1678_v21 = vmul.f32 1.442695, %v1675_v20 }
 0x85e   : > { %2556 = vpow2.f32 %v1678_v21 }
 0x864   : > { %v2555_v22 = vpop.eup %2554 }
 0x865   : > { %v1680_v23 = vsel %vm1667_vm6, %v2555_v22, 0.0 }
 0x866   : > { %1681 = vadd.xlane.f32.xlu1 %v1680_v23 }
 0x868   : > { %v2557_v24 = vpop.eup %2556 }
 0x869   : > { %v1683_v25 = vsel %vm1667_vm6, %v2557_v24, 0.0  ;;  %v1686_v26 = vpack.c.bf16 %v2557_v24, %v2555_v22 }
 0x86a   : > { %1684 = vadd.xlane.f32.xlu1 %v1683_v25 }
 0x86b   : > { %2302 = vmatmul.mubr.msk.bf16.vlgmr.msra.gmra.mrb[4].mxu0 %vm1667_vm6, %v1686_v26 }
 0x8f3   : > { %v1682_v27 = vpop.xlane.xlu1 %1681 }
 0x8f4   : > { %2558 = vrcp.f32 %v1682_v27 }
 0x8f7   : > { %v1685_v28 = vpop.xlane.xlu1 %1684 }
 0x8f8   : > { %2560 = vrcp.f32 %v1685_v28 }
 0x8fe   : > { %v2559_v29 = vpop.eup %2558 }
 0x902   : > { %v2561_v33 = vpop.eup %2560 }
 0x93e   : > { %v1728_v30 = vpop.f32.mrb[4].mxu0 }
 0x93f   : > { %v1737_v31 = vmul.f32 %v2559_v29, %v1728_v30  ;;  %v2303_v32 = vpop.f32.mrb[5].mxu0 }
 0x940   : > { %v1731_v35 = vpop.f32.mrb[6].mxu0 }
 0x941   : > { %v1739_v36 = vadd.f32 %v1737_v31, %v3601_v47  ;;  %v1738_v37 = vmul.f32 %v2561_v33, %v1731_v35  ;;  %v2304_v38 = vpop.f32.mrb[7].mxu0 }
 0x943   : > { %v1748_v39 = vadd.f32 %v2061_v34, %v1739_v36  ;;  %v1740_v41 = vadd.f32 %v1738_v37, %v3604_v48 }
 0x945   : > { %1750 = vst [vmem:[%s3367_s7] sm:$0xff] %v1748_v39  ;;  %v1749_v40 = vadd.f32 %v2061_v34, %v1740_v41 }
 0x947   : > { %1751 = vst [vmem:[%s3367_s7 + $0x8] sm:$0xff] %v1749_v40 }
 0x948   : > { %2851 = shalt.err (!%p2848_p0)
}
 0x949   : > { %s2852_s7 = scalar_lea.hbm %s3638_s23, 256  ;;  %s2856_s18 = scalar_lea.hbm %s3811_s24, 2048 }
 0x94a   : > { %p2853_p7 = scmp.ne.s32.totalorder %s3638_s23, %s2852_s7  ;;  %p2857_p12 = scmp.lt.u32.totalorder %s3638_s23, %s3811_s24 }
 0x94b   : > { %p2858_p4 = scmp.lt.u32.totalorder %s2856_s18, %s2852_s7  ;;  %p2860_p9 = scmp.lt.u32.totalorder %s2852_s7, %s3638_s23 }
 0x94c   : > { %p2854_p2 = pnand %p2853_p7, %p3812_p5 }
 0x94d   : > { %p2859_p8 = por %p2858_p4, %p2857_p12 }
 0x94e   : > { %p2855_p13 = pneg %p2854_p2 }
 0x94f   : > { %p2861_p11 = por %p2860_p9, %p2859_p8 }
 0x951   : > { %p2862_p1 = pnand %p2861_p11, %p2855_p13 }
 0x953   : > { %2865 = shalt.err (!%p2862_p1)
}
 0x954   : > { %s3009_s15 = smov 128   ;;  %s3010_s22 = smov 8  }
 0x955   : > { %2361 = dma.vmem_to_hbm [thread:$0]  (%p3812_p5), %s3640_s14, 256, %s3638_s23, %s1753_s21, %s3009_s15, %s3009_s15, %s3010_s22  }
 0x956 PF: > { %s3813_s10 = sld [smem:[#allocation44_spill]]  ;;  %s3814_s8 = sld [smem:[#allocation37_spill]] }
 0x957   : > { %s3815_s16 = sld [smem:[#allocation47_spill]] }
 0x95c   : > { %p2400_p6 = scmp.ge.s32.totalorder %s3813_s10, 2  ;;  %s1785_s4 = sand.u32 1, %s3814_s8  }
 0x95d   : > { %p3816_p10 = scmp.ne.s32.totalorder %s3815_s16, 0  ;;  %s1786_s3 = scalar_lea.sflag [#allocation10], %s1785_s4 }
 0x95f   : > { %p2384_p3 = pnand %p2400_p6, %p3816_p10 }
 0x961   : > { %2935 = dma.done.wait (!%p2384_p3), %s1786_s3, 256  }
 0x962   : > { %2937 = vsyncadd (!%p2384_p3), %s1786_s3, 4294967040  ;;  %s32_s15 = sadd.s32 1, %s3813_s10   ;;  %s3817_s25 = sld [smem:[#allocation38_spill]] }
 0x963   : > { %p29_p0 = scmp.ge.s32.totalorder %s32_s15, 10   ;;  %s3818_s26 = sld [smem:[#allocation39_spill]] }
 0x964   : > { %s3819_s27 = sld [smem:[#allocation48_spill]]  ;;  %s3820_s28 = sld [smem:[#allocation42_spill]] }
 0x965   : > { %s3821_s29 = sld [smem:[#allocation43_spill]]  ;;  %s3822_s30 = sld [smem:[#allocation45_spill]] }
 0x966   : > { %s3823_s14 = sld [smem:[#allocation46_spill]]  ;;  %31 = sbr.rel (!%p29_p0) target bundleno = 25 (0x19), region = 211 }
 0x96d   :  { %1791 = vsyncpa [#allocation9], 1 }
 0x96e   :  { %1793 = vsyncpa [#allocation9 + $0x1], 1 }
 0x96f   :  { %1794 = vsyncpa [#allocation12], 1 }
 0x970   :  { %1795 = vsyncpa [#allocation15], 1 }
 0x971   :  { %1796 = vsyncpa [#allocation18], 1 }
 0x972   :  { %1797 = vsyncpa [#allocation10], 1 }
 0x973   :  { %1799 = vsyncpa [#allocation10 + $0x1], 1 }
 0x974   :  { %1800 = vsyncmov [#allocation7] }
 0x977   :  { %s1801_s13 = vpop.sfrf %1800 }
 0x978   :  { %p2068_p5 = scmp.ne.s32.totalorder %s1801_s13, 0 }
 0x97a   :  { %1805 = shalt.err (%p2068_p5)  }
 0x97b   :  { %1807 = vsyncmov [#allocation7 + $0x1] }
 0x97e   :  { %s1808_s5 = vpop.sfrf %1807 }
 0x97f   :  { %p2069_p7 = scmp.ne.s32.totalorder %s1808_s5, 0 }
 0x981   :  { %1812 = shalt.err (%p2069_p7)  }

// kernel: tpu_custom_call.1
= control target key start
LH: loop header
LB: loop body
LE: loop exit
PB: predicated region body
PF: predicated region fallthrough
CT: control target
= control target key end

     0   :  { %s3696_s0 = inlined_call_operand.hbm [shape: f32[2,64,128], index: 0, kind: input, shape index: {}]   ;;  %s3697_s1 = inlined_call_operand.hbm [shape: f32[2,64,128], index: 1, kind: input, shape index: {}]   ;;  %s3698_s2 = inlined_call_operand.vmem [shape: f32[1,128], index: 2, kind: input, shape index: {}]   ;;  %s3699_s3 = inlined_call_operand.vmem [shape: f32[1,128], index: 3, kind: input, shape index: {}]   ;;  %s3700_s4 = inlined_call_operand.hbm [shape: f32[32,128], index: 4, kind: input, shape index: {}]   ;;  %s3701_s5 = inlined_call_operand.hbm [shape: bf16[128,128], index: 5, kind: input, shape index: {}]   ;;  %s3702_s6 = inlined_call_operand.vmem [shape: f32[1,128], index: 6, kind: input, shape index: {}]   ;;  %s3703_s7 = inlined_call_operand.hbm [shape: bf16[128,128], index: 7, kind: input, shape index: {}]   ;;  %s3704_s8 = inlined_call_operand.vmem [shape: f32[1,128], index: 8, kind: input, shape index: {}]   ;;  %s3705_s9 = inlined_call_operand.hbm [shape: bf16[128,128], index: 9, kind: input, shape index: {}]   ;;  %s3706_s10 = inlined_call_operand.vmem [shape: f32[1,128], index: 10, kind: input, shape index: {}]   ;;  %s3707_s11 = inlined_call_operand.hbm [shape: bf16[128,128], index: 11, kind: input, shape index: {}]   ;;  %s3708_s12 = inlined_call_operand.vmem [shape: f32[1,128], index: 12, kind: input, shape index: {}]   ;;  %s3709_s13 = inlined_call_operand.hbm [shape: f32[2,64,128], index: 13, kind: output, shape index: {}]  }
   0x1   :  { %3736 = sst [smem:[#allocation49_spill]] %s3696_s0 }
   0x2   :  { %3737 = sst [smem:[#allocation50_spill]] %s3697_s1 }
   0x3   :  { %3738 = sst [smem:[#allocation51_spill]] %s3698_s2 }
   0x4   :  { %3739 = sst [smem:[#allocation52_spill]] %s3699_s3 }
   0x5   :  { %3740 = sst [smem:[#allocation53_spill]] %s3700_s4 }
   0x6   :  { %3741 = sst [smem:[#allocation54_spill]] %s3701_s5 }
   0x7   :  { %3742 = sst [smem:[#allocation55_spill]] %s3702_s6 }
   0x8   :  { %3743 = sst [smem:[#allocation56_spill]] %s3703_s7 }
   0x9   :  { %3744 = sst [smem:[#allocation57_spill]] %s3704_s8 }
   0xa   :  { %3745 = sst [smem:[#allocation58_spill]] %s3705_s9 }
   0xb   :  { %3746 = sst [smem:[#allocation59_spill]] %s3706_s10 }
   0xc   :  { %3747 = sst [smem:[#allocation60_spill]] %s3707_s11 }
   0xd   :  { %3748 = sst [smem:[#allocation61_spill]] %s3708_s12 }
   0xe   :  { %3749 = sst [smem:[#allocation62_spill]] %s3709_s13 }
   0xf   :  { %18 = vsyncpa [#allocation9], 0 }
  0x10   :  { %20 = vsyncpa [#allocation9 + $0x1], 0 }
  0x11   :  { %21 = vsyncpa [#allocation12], 0 }
  0x12   :  { %22 = vsyncpa [#allocation15], 0 }
  0x13   :  { %23 = vsyncpa [#allocation18], 0 }
  0x14   :  { %24 = vsyncpa [#allocation10], 0 }
  0x15   :  { %26 = vsyncpa [#allocation10 + $0x1], 0  ;;  %s3081_s25 = smov 0   ;;  %s3083_s26 = smov 0  }
  0x16   :  { %s3085_s27 = smov 0   ;;  %s3087_s28 = smov 0  }
  0x17   :  { %s3089_s29 = smov 0   ;;  %s3091_s30 = smov 0  }
  0x18   :  { %s3093_s14 = smov 0   ;;  %s3095_s15 = smov 0  }
  0x19 LB: > { %3750 = sst [smem:[#allocation37_spill]] %s2940_s25  ;;  %s3710_s16 = sadd.s32 4294967295, %s2968_s15   ;;  %s2968_s15 = sphi %s3095_s15, %s32_s15   ;;  %s2964_s14 = sphi %s3093_s14, %s3823_s14   ;;  %s2960_s30 = sphi %s3091_s30, %s3822_s30   ;;  %s2956_s29 = sphi %s3089_s29, %s3821_s29   ;;  %s2952_s28 = sphi %s3087_s28, %s3820_s28   ;;  %s2948_s27 = sphi %s3085_s27, %s3819_s27   ;;  %s2944_s26 = sphi %s3083_s26, %s3818_s26   ;;  %s2940_s25 = sphi %s3081_s25, %s3817_s25  }
  0x1a   : > { %3751 = sst [smem:[#allocation38_spill]] %s2944_s26  ;;  %p1976_p0 = scmp.ge.s32.totalorder %s2968_s15, 1 }
  0x1b   : > { %3752 = sst [smem:[#allocation39_spill]] %s2948_s27  ;;  %p3125_p1 = scmp.eq.s32.totalorder %s3710_s16, 0 }
  0x1c   : > { %3753 = sst [smem:[#allocation40_spill]] %s2952_s28  ;;  %p351_p2 = scmp.lt.s32.totalorder %s2968_s15, 9 }
  0x1d   : > { %3754 = sst [smem:[#allocation41_spill]] %s2956_s29  ;;  %s2986_s19 = smov [#allocation11]  }
  0x1e   : > { %3755 = sst [smem:[#allocation42_spill]] %s2960_s30  ;;  %p3130_p3 = pnand %p1976_p0, %p351_p2 }
  0x1f   : > { %3756 = sst [smem:[#allocation43_spill]] %s2964_s14  ;;  %s369_s20 = sshll.u32 %s2986_s19, 4  ;;  %s370_s20 = int_to_ptr.vmem [resolvable:$true] %s369_s20 }
  0x20   : > { %3757 = sst [smem:[#allocation44_spill]] %s2968_s15  ;;  %p2363_p4 = pneg %p3130_p3 }
  0x21   : > { %s3758_s17 = scalar_select %p3125_p1, 1, 0 }
  0x22   : > { %s3759_s18 = scalar_select %p3130_p3, 1, 0 }
  0x23   : > { %p3138_p5 = pnand %p2363_p4, %p3125_p1  ;;  %s2987_s22 = smov [#allocation14]  }
  0x24   : > { %s398_s23 = sshll.u32 %s2987_s22, 4  ;;  %s3761_s4 = sld [smem:[#allocation53_spill]]  ;;  %s399_s23 = int_to_ptr.vmem [resolvable:$true] %s398_s23 }
  0x25   : > { %p3150_p7 = pneg %p3138_p5 }
  0x2a   : > { %s2562_s13 = scalar_lea.hbm %s3761_s4, 512 }
  0x2b   : > { %p2563_p6 = scmp.ne.s32.totalorder %s3761_s4, %s2562_s13  ;;  %p2569_p10 = scmp.lt.u32.totalorder %s2562_s13, %s3761_s4 }
  0x2d   : > { %p2565_p8 = pnand %p3150_p7, %p2563_p6 }
  0x2f   : > { %p2566_p9 = pneg %p2565_p8 }
  0x31   : > { %p2571_p11 = pnand %p2569_p10, %p2566_p9 }
  0x33   : > { %2574 = shalt.err (!%p2571_p11)
}
  0x34   : > { %s2575_s16 = scalar_lea.vmem %s370_s20, 512  ;;  %p2583_p2 = scmp.lt.s32.totalorder %s370_s20, %s370_s20 }
  0x35   : > { %p2576_p12 = scmp.ne.s32.totalorder %s370_s20, %s2575_s16  ;;  %p2584_p4 = scmp.lt.s32.totalorder %s2575_s16, %s2575_s16 }
  0x37   : > { %p2578_p13 = pnand %p2576_p12, %p3150_p7  ;;  %p2585_p3 = por %p2584_p4, %p2583_p2 }
  0x39   : > { %p2579_p0 = pneg %p2578_p13 }
  0x3b   : > { %p2586_p1 = pnand %p2585_p3, %p2579_p0 }
  0x3d   : > { %2589 = shalt.err (!%p2586_p1)
}
  0x3e   : > { %s3719_s6 = smov 128   ;;  %s3720_s12 = smov 8  }
  0x3f   : > { %2366 = dma.hbm_to_vmem [thread:$0]  (!%p3138_p5), %s3761_s4, 512, %s370_s20, [#allocation12], %s3719_s6, %s3719_s6, %s3720_s12  }
  0x40   : > { %s2990_s13 = smov [#allocation13]   ;;  %s3763_s7 = sld [smem:[#allocation56_spill]] }
  0x41   : > { %s382_s22 = sshll.u32 %s2990_s13, 4  ;;  %s383_s22 = int_to_ptr.vmem [resolvable:$true] %s382_s22 }
  0x46   : > { %s2590_s3 = scalar_lea.hbm %s3763_s7, 1024 }
  0x47   : > { %p2591_p1 = scmp.ne.s32.totalorder %s3763_s7, %s2590_s3  ;;  %p2597_p8 = scmp.lt.u32.totalorder %s2590_s3, %s3763_s7 }
  0x49   : > { %p2593_p3 = pnand %p2591_p1, %p3150_p7 }
  0x4b   : > { %p2594_p6 = pneg %p2593_p3 }
  0x4d   : > { %p2599_p9 = pnand %p2597_p8, %p2594_p6 }
  0x4f   : > { %2602 = shalt.err (!%p2599_p9)
}
  0x50   : > { %s2603_s20 = scalar_lea.vmem %s399_s23, 1024  ;;  %p2611_p13 = scmp.lt.s32.totalorder %s399_s23, %s399_s23 }
  0x51   : > { %p2604_p10 = scmp.ne.s32.totalorder %s399_s23, %s2603_s20  ;;  %p2612_p0 = scmp.lt.s32.totalorder %s2603_s20, %s2603_s20 }
  0x53   : > { %p2606_p11 = pnand %p2604_p10, %p3150_p7  ;;  %p2613_p2 = por %p2612_p0, %p2611_p13 }
  0x55   : > { %p2607_p12 = pneg %p2606_p11 }
  0x57   : > { %p2614_p4 = pnand %p2613_p2, %p2607_p12 }
  0x59   : > { %2617 = shalt.err (!%p2614_p4)
}
  0x5a   : > { %s2991_s0 = smov 64   ;;  %s2992_s2 = smov 4  }
  0x5b   : > { %2372 = dma.hbm_to_vmem [thread:$0]  (!%p3138_p5), %s3763_s7, 1024, %s399_s23, [#allocation15], %s2991_s0, %s2991_s0, %s2992_s2  }
  0x5c   : > { %s3764_s5 = sld [smem:[#allocation54_spill]] }
  0x62   : > { %s2618_s10 = scalar_lea.hbm %s3764_s5, 1024 }
  0x63   : > { %p2619_p1 = scmp.ne.s32.totalorder %s3764_s5, %s2618_s10  ;;  %p2625_p8 = scmp.lt.u32.totalorder %s2618_s10, %s3764_s5 }
  0x65   : > { %p2621_p3 = pnand %p2619_p1, %p3150_p7 }
  0x67   : > { %p2622_p6 = pneg %p2621_p3 }
  0x69   : > { %p2627_p9 = pnand %p2625_p8, %p2622_p6 }
  0x6b   : > { %2630 = shalt.err (!%p2627_p9)
}
  0x6c   : > { %s2631_s3 = scalar_lea.vmem %s383_s22, 1024  ;;  %p2639_p13 = scmp.lt.s32.totalorder %s383_s22, %s383_s22 }
  0x6d   : > { %p2632_p10 = scmp.ne.s32.totalorder %s383_s22, %s2631_s3  ;;  %p2640_p0 = scmp.lt.s32.totalorder %s2631_s3, %s2631_s3 }
  0x6f   : > { %p2634_p11 = pnand %p2632_p10, %p3150_p7  ;;  %p2641_p2 = por %p2640_p0, %p2639_p13 }
  0x71   : > { %p2635_p12 = pneg %p2634_p11 }
  0x73   : > { %p2642_p4 = pnand %p2641_p2, %p2635_p12 }
  0x75   : > { %2645 = shalt.err (!%p2642_p4)
}
  0x76   : > { %2369 = dma.hbm_to_vmem [thread:$0]  (!%p3138_p5), %s3764_s5, 1024, %s383_s22, [#allocation12], %s2991_s0, %s2991_s0, %s2992_s2  }
  0x77   : > { %s2993_s29 = smov [#allocation16]   ;;  %s2994_s10 = smov [#allocation17]  }
  0x78   : > { %s414_s8 = sshll.u32 %s2993_s29, 4  ;;  %s430_s13 = sshll.u32 %s2994_s10, 4  ;;  %s415_s8 = int_to_ptr.vmem [resolvable:$true] %s414_s8  ;;  %s431_s13 = int_to_ptr.vmem [resolvable:$true] %s430_s13 }
  0x79   : > { %s3765_s9 = sld [smem:[#allocation58_spill]] }
  0x7f   : > { %s2646_s20 = scalar_lea.hbm %s3765_s9, 1024 }
  0x80   : > { %p2647_p1 = scmp.ne.s32.totalorder %s3765_s9, %s2646_s20  ;;  %p2653_p8 = scmp.lt.u32.totalorder %s2646_s20, %s3765_s9 }
  0x82   : > { %p2649_p3 = pnand %p2647_p1, %p3150_p7 }
  0x84   : > { %p2650_p6 = pneg %p2649_p3 }
  0x86   : > { %p2655_p9 = pnand %p2653_p8, %p2650_p6 }
  0x88   : > { %2658 = shalt.err (!%p2655_p9)
}
  0x89   : > { %s2659_s22 = scalar_lea.vmem %s415_s8, 1024  ;;  %p2667_p13 = scmp.lt.s32.totalorder %s415_s8, %s415_s8 }
  0x8a   : > { %p2660_p10 = scmp.ne.s32.totalorder %s415_s8, %s2659_s22  ;;  %p2668_p0 = scmp.lt.s32.totalorder %s2659_s22, %s2659_s22 }
  0x8c   : > { %p2662_p11 = pnand %p2660_p10, %p3150_p7  ;;  %p2669_p2 = por %p2668_p0, %p2667_p13 }
  0x8e   : > { %p2663_p12 = pneg %p2662_p11 }
  0x90   : > { %p2670_p4 = pnand %p2669_p2, %p2663_p12 }
  0x92   : > { %2673 = shalt.err (!%p2670_p4)
}
  0x93   : > { %2375 = dma.hbm_to_vmem [thread:$0]  (!%p3138_p5), %s3765_s9, 1024, %s415_s8, [#allocation15], %s2991_s0, %s2991_s0, %s2992_s2  }
  0x94   : > { %s3766_s11 = sld [smem:[#allocation60_spill]] }
  0x9a   : > { %s2674_s10 = scalar_lea.hbm %s3766_s11, 1024 }
  0x9b   : > { %p2675_p1 = scmp.ne.s32.totalorder %s3766_s11, %s2674_s10  ;;  %p2681_p8 = scmp.lt.u32.totalorder %s2674_s10, %s3766_s11 }
  0x9d   : > { %p2677_p3 = pnand %p2675_p1, %p3150_p7 }
  0x9f   : > { %p2678_p6 = pneg %p2677_p3 }
  0xa1   : > { %p2683_p9 = pnand %p2681_p8, %p2678_p6 }
  0xa3   : > { %2686 = shalt.err (!%p2683_p9)
}
  0xa4   : > { %s2687_s23 = scalar_lea.vmem %s431_s13, 1024  ;;  %p2695_p13 = scmp.lt.s32.totalorder %s431_s13, %s431_s13 }
  0xa5   : > { %p2688_p10 = scmp.ne.s32.totalorder %s431_s13, %s2687_s23  ;;  %p2696_p0 = scmp.lt.s32.totalorder %s2687_s23, %s2687_s23 }
  0xa7   : > { %p2690_p11 = pnand %p2688_p10, %p3150_p7  ;;  %p2697_p2 = por %p2696_p0, %p2695_p13 }
  0xa9   : > { %p2691_p12 = pneg %p2690_p11 }
  0xab   : > { %p2698_p4 = pnand %p2697_p2, %p2691_p12 }
  0xad   : > { %2701 = shalt.err (!%p2698_p4)
}
  0xae   : > { %2378 = dma.hbm_to_vmem [thread:$0]  (!%p3138_p5), %s3766_s11, 1024, %s431_s13, [#allocation18], %s2991_s0, %s2991_s0, %s2992_s2  }
  0xaf   : > { %s1975_s21 = sadd.s32 4294967294, %s2968_s15   ;;  %s44_s19 = sadd.s32 1, %s2960_s30 }
  0xb0   : > { %s51_s6 = sadd.s32 1, %s2964_s14  ;;  %p45_p7 = scmp.ge.s32.totalorder %s44_s19, 4 }
  0xb1   : > { %s64_s12 = sadd.s32 1, %s2948_s27  ;;  %p71_p1 = scmp.ne.s32.totalorder %s2948_s27, %s2944_s26 }
  0xb2   : > { %p72_p3 = scmp.eq.s32.totalorder %s2968_s15, 0  ;;  %s3825_s19 = smov (%p45_p7, %s44_s19), 0 }
  0xb3   : > { %3767 = sst [smem:[#allocation45_spill]] %s3825_s19  ;;  %s3827_s6 = smov (!%p45_p7, %s51_s6), %s2964_s14 }
  0xb4   : > { %s60_s28 = ssub.s32 %s2960_s30, %s3825_s19  ;;  %p3265_p6 = por %p72_p3, %p71_p1 }
  0xb5   : > { %p53_p5 = scmp.ge.s32.totalorder %s3827_s6, 2  ;;  %p77_p8 = scmp.ne.s32.totalorder %s2944_s26, %s2940_s25 }
  0xb6   : > { %s3769_s0 = sadd.s32 4294967295, %s2968_s15   ;;  %p344_p10 = scmp.eq.s32.totalorder %s1975_s21, 7 }
  0xb7   : > { %p338_p9 = scmp.eq.s32.totalorder %s3769_s0, 7  ;;  %s3829_s6 = smov (%p53_p5, %s3827_s6), 0 }
  0xb8   : > { %3770 = sst [smem:[#allocation46_spill]] %s3829_s6  ;;  %p3771_p11 = scmp.ne.s32.totalorder %s3758_s17, 0 }
  0xb9   : > { %p3281_p13 = por %p338_p9, %p71_p1  ;;  %s59_s10 = ssub.s32 %s2964_s14, %s3829_s6 }
  0xba   : > { %p3277_p12 = por %p3771_p11, %p77_p8  ;;  %p3287_p0 = por %p344_p10, %p77_p8 }
  0xbb   : > { %s3773_s13 = scalar_select %p3281_p13, 1, 0 }
  0xbc   : > { %s3774_s24 = scalar_select %p3287_p0, 1, 0 }
  0xbd   : > { %s61_s16 = sor.u32 %s60_s28, %s59_s10  ;;  %p2392_p2 = scmp.lt.s32.totalorder %s2968_s15, 8 }
  0xbe   : > { %3775 = sst [smem:[#allocation47_spill]] %s3774_s24  ;;  %p62_p4 = scmp.eq.s32.totalorder %s61_s16, 0 }
  0xbf   : > { %s447_s20 = sand.u32 1, %s2948_s27   ;;  %s1984_s8 = sshll.u32 %s2960_s30, 1 }
  0xc0   : > { %s1983_s3 = sshll.u32 %s447_s20, 4  ;;  %s1985_s22 = sshll.u32 %s2964_s14, 3 }
  0xc1   : > { %s3294_s23 = scalar_select %p62_p4, %s2948_s27, %s64_s12  }
  0xc2   : > { %s451_s21 = scalar_lea.vmem [#allocation8], %s1983_s3  ;;  %s459_s4 = sadd.s32 %s1985_s22, %s1984_s8 }
  0xc3   : > { %3776 = sst [smem:[#allocation48_spill]] %s3294_s23  ;;  %s462_s0 = sshll.u32 %s451_s21, 4  ;;  %s3298_s0 = int_to_ptr.vmem [resolvable:$true] %s462_s0 }
  0xc4   : > { %s1986_s5 = sshll.u32 %s459_s4, 7  ;;  %p3302_p7 = pnand %p2392_p2, %p3265_p6 }
  0xc5   : > { %s3778_s1 = sld [smem:[#allocation50_spill]]  ;;  %s3311_s16 = scalar_lea.sflag [#allocation9], %s447_s20 }
  0xc6   : > { %p2704_p3 = pneg %p3302_p7 }
  0xcb   : > { %s3309_s12 = scalar_lea.hbm %s3778_s1, %s1986_s5  ;;  %s2707_s8 = scalar_lea.hbm %s3778_s1, 2048 }
  0xcc   : > { %s2702_s3 = scalar_lea.hbm %s3309_s12, 256  ;;  %p2708_p8 = scmp.lt.u32.totalorder %s3309_s12, %s3778_s1 }
  0xcd   : > { %p2703_p1 = scmp.ne.s32.totalorder %s3309_s12, %s2702_s3  ;;  %p2709_p9 = scmp.lt.u32.totalorder %s2707_s8, %s2702_s3 }
  0xce   : > { %p2711_p11 = scmp.lt.u32.totalorder %s2702_s3, %s3309_s12 }
  0xcf   : > { %p2705_p6 = pnand %p2704_p3, %p2703_p1  ;;  %p2710_p10 = por %p2709_p9, %p2708_p8 }
  0xd1   : > { %p2706_p5 = pneg %p2705_p6  ;;  %p2712_p2 = por %p2711_p11, %p2710_p10 }
  0xd3   : > { %p2713_p4 = pnand %p2712_p2, %p2706_p5 }
  0xd5   : > { %2716 = shalt.err (!%p2713_p4)
}
  0xd6   : > { %s2717_s20 = scalar_lea.vmem %s3298_s0, 256  ;;  %s2995_s21 = smov [#allocation8]  }
  0xd7   : > { %p2718_p1 = scmp.ne.s32.totalorder %s3298_s0, %s2717_s20  ;;  %s2722_s28 = sshll.u32 %s2995_s21, 4  ;;  %s2723_s28 = int_to_ptr.vmem [resolvable:$false] %s2722_s28 }
  0xd8   : > { %s2724_s10 = scalar_lea.vmem %s2723_s28, 512  ;;  %p2725_p13 = scmp.lt.s32.totalorder %s3298_s0, %s2723_s28 }
  0xd9   : > { %p2720_p6 = pnand %p2718_p1, %p2704_p3  ;;  %p2726_p8 = scmp.lt.s32.totalorder %s2724_s10, %s2717_s20 }
  0xdb   : > { %p2721_p0 = pneg %p2720_p6  ;;  %p2727_p9 = por %p2726_p8, %p2725_p13 }
  0xdd   : > { %p2728_p10 = pnand %p2727_p9, %p2721_p0 }
  0xdf   : > { %2731 = shalt.err (!%p2728_p10)
}
  0xe0   : > { %s3779_s3 = smov 8   ;;  %s3780_s4 = smov 128  }
  0xe1   : > { %2382 = dma.hbm_to_vmem [thread:$0]  (!%p3302_p7), %s3309_s12, 256, %s3298_s0, %s3311_s16, %s3780_s4, %s3780_s4, %s3779_s3  }
  0xe2   : > { %p3781_p3 = scmp.ne.s32.totalorder %s3759_s18, 0 }
  0xe3   : > { %s3345_s29 = sand.u32 (!%p3781_p3), 1, %s2944_s26  }
  0xe4   : > { %474 = sbr.rel (%p3781_p3) target bundleno = 2390 (0x956), region = 68  ;;  %s1988_s8 = sshll.u32 (!%p3781_p3), %s3345_s29, 4 }
  0xe5   : > { %s477_s5 = scalar_lea.sflag (!%p3781_p3), [#allocation9], %s3345_s29  ;;  %s3349_s22 = scalar_lea.vmem (!%p3781_p3), [#allocation8], %s1988_s8 }
  0xeb   : > { %2915 = dma.done.wait (%p3277_p12), %s477_s5, 256  }
  0xec   : > { %2917 = vsyncadd (%p3277_p12), %s477_s5, 4294967040  ;;  %p3782_p13 = scmp.ne.s32.totalorder %s3758_s17, 0 }
  0xee   : > { %2919 = dma.done.wait (%p3782_p13), [#allocation12], 1536  }
  0xef   : > { %2921 = vsyncadd (%p3782_p13), [#allocation12], 4294965760 }
  0xf0   : > { %2923 = dma.done.wait (%p3782_p13), [#allocation15], 2048  }
  0xf1   : > { %2925 = vsyncadd (%p3782_p13), [#allocation15], 4294965248 }
  0xf2   : > { %2927 = dma.done.wait (%p3782_p13), [#allocation18], 1024  }
  0xf3   : > { %2929 = vsyncadd (%p3782_p13), [#allocation18], 4294966272  ;;  %s3367_s7 = scalar_lea.vmem [#allocation19], %s1988_s8  ;;  %s3783_s18 = sld [smem:[#allocation40_spill]] }
  0xf9   : > { %p1995_p12 = scmp.ne.s32.totalorder %s3783_s18, 0 }
  0xfa   : > { %s3784_s2 = sld [smem:[#allocation41_spill]] (!%p1995_p12)  ;;  %s3785_s20 = sld [smem:[#allocation49_spill]] (!%p1995_p12) }
  0xfb   : > { %551 = sbr.rel (%p1995_p12) target bundleno = 1526 (0x5f6), region = 96  ;;  %s2996_s28 = smov (!%p1995_p12), [#allocation6]  }
  0xfc   : > { %s562_s10 = sshll.u32 (!%p1995_p12), %s2996_s28, 4  ;;  %s3376_s10 = int_to_ptr.vmem [resolvable:$true] %s562_s10 }
 0x100   : > { %s2070_s0 = sshll.u32 (!%p1995_p12), %s3784_s2, 10  ;;  %s3383_s8 = scalar_lea.hbm (!%p1995_p12), %s3785_s20, 2048 }
 0x101   : > { %s3374_s21 = scalar_lea.hbm (!%p1995_p12), %s3785_s20, %s2070_s0 }
 0x102   : > { %s2732_s17 = scalar_lea.hbm %s3374_s21, 256  ;;  %p2735_p7 = scmp.lt.u32.totalorder %s3374_s21, %s3785_s20 }
 0x103   : > { %p2733_p0 = scmp.ne.s32.totalorder %s3374_s21, %s2732_s17  ;;  %p2736_p5 = scmp.lt.u32.totalorder %s3383_s8, %s2732_s17 }
 0x104   : > { %p2738_p2 = scmp.lt.u32.totalorder %s2732_s17, %s3374_s21 }
 0x105   : > { %p2737_p11 = por %p2736_p5, %p2735_p7 }
 0x107   : > { %p2739_p4 = por %p2738_p2, %p2737_p11 }
 0x109   : > { %p3391_p1 = pnand %p2739_p4, %p2733_p0 }
 0x10b   : > { %s3786_s2 = scalar_select %p3391_p1, 1, 0 }
 0x10c   : > { %2743 = shalt.err (!%p3391_p1)  }
 0x10d   : > { %s2744_s0 = scalar_lea.vmem %s3376_s10, 256  ;;  %s3404_s16 = scalar_lea.vmem %s3376_s10, 512 }
 0x10e   : > { %p3399_p6 = scmp.ne.s32.totalorder %s3376_s10, %s2744_s0  ;;  %p2749_p8 = scmp.lt.s32.totalorder %s3376_s10, %s3376_s10 }
 0x10f   : > { %p2750_p9 = scmp.lt.s32.totalorder %s3404_s16, %s2744_s0 }
 0x110   : > { %s3787_s12 = scalar_select %p3399_p6, 1, 0 }
 0x111   : > { %p3409_p10 = por %p2750_p9, %p2749_p8 }
 0x113   : > { %s3788_s20 = scalar_select %p3409_p10, 1, 0 }
 0x114   : > { %p3732_p3 = pnand %p3409_p10, %p3399_p6 }
 0x116   : > { %2755 = shalt.err (!%p3732_p3)  }
 0x117   : > { %565 = dma.hbm_to_vmem [thread:$0]  %s3374_s21, 256, %s3376_s10, [#allocation7]  ;;  %v3424_v0 = vmov 0.0   ;;  %v3426_v1 = vmov 0.0  }
 0x118   : > { %s3428_s28 = smov 0  }
 0x119 LB: >> { %p574_p13 = scmp.lt.s32.totalorder %s2980_s28, 0  ;;  %s575_s17 = ssub.s32 0, %s2980_s28  ;;  %s2980_s28 = sphi %s3428_s28, %s3793_s28   ;;  %v2976_v1 = vphi %v3426_v1, %v3792_v1   ;;  %v2972_v0 = vphi %v3424_v0, %v3791_v0  }
 0x11a   : >> { %s1998_s3 = smin.u32 %s2980_s28, %s575_s17 }
 0x11b   : >> { %s577_s4 = sand.u32 1, %s1998_s3  }
 0x11c   : >> { %s578_s5 = ssub.s32 0, %s577_s4 }
 0x11d   : >> { %s3831_s5 = smov (!%p574_p13, %s578_s5), %s577_s4 }
 0x11e   : >> { %p2000_p12 = scmp.lt.s32.totalorder %s3831_s5, 0  ;;  %s584_s18 = sadd.s32 2, %s3831_s5 }
 0x120   : >> { %s3833_s18 = smov (!%p2000_p12, %s584_s18), %s3831_s5 }
 0x121   : >> { %s2001_s0 = sshll.u32 %s3833_s18, 4  ;;  %s588_s9 = scalar_lea.sflag [#allocation7], %s3833_s18 }
 0x122   : >> { %s3442_s1 = scalar_lea.vmem [#allocation6], %s2001_s0 }
 0x123   : >> { %2930 = dma.done.wait %s588_s9, 256 }
 0x124   : >> { %2931 = vsyncadd %s588_s9, 4294967040  ;;  %s3789_s11 = sld [smem:[#allocation41_spill]]  ;;  %s3445_s6 = sadd.s32 1, %s2980_s28   ;;  %v2997_v2 = vmov 0.0|0.0   ;;  %vm2998_vm0 = vmmov 0   ;;  %v2999_v3 = vmov 0.0  }
 0x125   : >> { %s597_s17 = ssub.s32 1, %s3833_s18  ;;  %p2398_p7 = scmp.lt.s32.totalorder %s3445_s6, 4  ;;  %2305 = vmatprep.subr.bf16.mxu0 %v2997_v2  ;;  %2308 = vmatprep.subr.bf16.mxu1 %v2997_v2 }
 0x126   : >> { %s2003_s3 = sshll.u32 %s2980_s28, 4  ;;  %2147 = vmatprep.mubr.msk.f32.mxu0 %vm2998_vm0, %v2999_v3  ;;  %2154 = vmatprep.mubr.msk.f32.mxu1 %vm2998_vm0, %v2999_v3  ;;  %s2006_s5 = sshll.u32 %s597_s17, 4 }
 0x127   : >> { %s3790_s18 = sld [smem:[#allocation49_spill]]  ;;  %s603_s27 = scalar_lea.vmem [#allocation6], %s2006_s5 }
 0x128   : >> { %s612_s26 = sshll.u32 %s603_s27, 4  ;;  %s604_s28 = scalar_lea.sflag [#allocation7], %s597_s17  ;;  %s613_s26 = int_to_ptr.vmem [resolvable:$true] %s612_s26 }
 0x12a   : >> { %s2004_s4 = sshll.u32 %s3789_s11, 6 }
 0x12b   : >> { %s1839_s9 = sadd.s32 %s2004_s4, %s2003_s3 }
 0x12c   : >> { %s2005_s0 = sshll.u32 %s1839_s9, 4 }
 0x12d   : >> { %s1841_s30 = scalar_lea.hbm %s3790_s18, %s2005_s0 }
 0x12e   : >> { %s1842_s23 = scalar_lea.hbm %s1841_s30, 256  ;;  %s2784_s24 = scalar_lea.hbm %s1841_s30, 512 }
 0x12f   : >> { %p2757_p5 = scmp.ne.s32.totalorder %s1842_s23, %s2784_s24  ;;  %p2761_p4 = scmp.lt.u32.totalorder %s1842_s23, %s3790_s18 }
 0x130   : >> { %p2762_p8 = scmp.lt.u32.totalorder %s3383_s8, %s2784_s24  ;;  %p2764_p13 = scmp.lt.u32.totalorder %s2784_s24, %s1842_s23 }
 0x131   : >> { %p2758_p11 = pnand %p2757_p5, %p2398_p7 }
 0x132   : >> { %p2763_p9 = por %p2762_p8, %p2761_p4 }
 0x133   : >> { %p2759_p2 = pneg %p2758_p11 }
 0x134   : >> { %p2765_p12 = por %p2764_p13, %p2763_p9 }
 0x136   : >> { %p2766_p3 = pnand %p2765_p12, %p2759_p2 }
 0x138   : >> { %2769 = shalt.err (!%p2766_p3)  }
 0x139   : >> { %s2770_s11 = scalar_lea.vmem %s613_s26, 256  ;;  %p2777_p5 = scmp.lt.s32.totalorder %s613_s26, %s3376_s10 }
 0x13a   : >> { %p2771_p0 = scmp.ne.s32.totalorder %s613_s26, %s2770_s11  ;;  %p2778_p11 = scmp.lt.s32.totalorder %s3404_s16, %s2770_s11 }
 0x13c   : >> { %p2772_p6 = pnand %p2771_p0, %p2398_p7  ;;  %p2779_p1 = por %p2778_p11, %p2777_p5 }
 0x13e   : >> { %p2773_p10 = pneg %p2772_p6 }
 0x140   : >> { %p2780_p4 = pnand %p2779_p1, %p2773_p10 }
 0x142   : >> { %2783 = shalt.err (!%p2780_p4)  }
 0x143   : >> { %2358 = dma.hbm_to_vmem [thread:$0]  (%p2398_p7), %s1842_s23, 256, %s613_s26, %s604_s28  ;;  %vm618_vm1 = vcmask 130048   ;;  %v3000_v10 = vmov 1.0  }
 0x144   : >> { %v616_v4 = vld [vmem:[%s3442_s1] sm:$0xff]  ;;  %v617_v5 = vld [vmem:[%s3442_s1 + $0x8] sm:$0xff]  ;;  %s3793_s28 = smov %s3445_s6  ;;  %p3794_p1 = scmp.ge.s32.totalorder %s3445_s6, 4 }
 0x145   : >> { %v2306_v6 = vpack.c.bf16 %v617_v5, %v616_v4  ;;  %v693_v7 = vmul.f32 %v616_v4, %v616_v4  ;;  %v694_v8 = vmul.f32 %v617_v5, %v617_v5  ;;  %v766_v17 = vld [vmem:[#allocation11] sm:$0xff] (%p3794_p1)  ;;  %v767_v18 = vld [vmem:[#allocation11 + $0x8] sm:$0xff] (%p3794_p1)  ;;  %v3001_v19 = vmov (%p3794_p1), 0.0|0.0   ;;  %p3795_p6 = scmp.ne.s32.totalorder (%p3794_p1), %s3786_s2, 0 }
 0x146   : > { %v2312_v20 = vpack.c.bf16 (%p3794_p1), %v767_v18, %v766_v17 }
 0x147   : >> { %2307 = vmatpush3.bf16.msra.mxu0 %v2306_v6  ;;  %v2309_v9 = vpack.c.bf16 %v694_v8, %v693_v7 }
 0x148   : > { %2311 = vmatprep.subr.bf16.mxu0 (%p3794_p1), %v3001_v19 }
 0x149   : >> { %2310 = vmatpush3.bf16.msra.mxu1 %v2309_v9 }
 0x14a   : >> { %2148 = vmatmul.mubr.msk.f32.vlgmr.msra.gmra.mrb[0].mxu0 %vm618_vm1, %v3000_v10  ;;  %2317 = vmatprep.subr.bf16.mxu1 (%p3794_p1), %v3001_v19 }
 0x14c   : >> { %2155 = vmatmul.mubr.msk.f32.vlgmr.msra.gmra.mrb[0].mxu1 %vm618_vm1, %v3000_v10 }
 0x21c   : > { %570 = sbr.rel (!%p3794_p1) target bundleno = 281 (0x119), region = 189 }
 0x21d   : >> { %v688_v11 = vpop.f32.mrb[0].mxu0 }
 0x21e   : >> { %v692_v12 = vadd.f32 %v2976_v1, %v688_v11   ;;  %v2149_v13 = vpop.f32.mrb[1].mxu0 }
 0x21f   : >> { %v761_v14 = vpop.f32.mrb[0].mxu1 }
 0x220   : >> { %v765_v15 = vadd.f32 %v2972_v0, %v761_v14   ;;  %v2156_v16 = vpop.f32.mrb[1].mxu1  ;;  %v3792_v1 = vmov %v692_v12 }
 0x222   : >> { %v3791_v0 = vmov %v765_v15 }
 0x223   : > { %2796 = shalt.err (!%p3795_p6)  }
 0x224   : > { %p3796_p10 = scmp.ne.s32.totalorder %s3788_s20, 0  ;;  %p3797_p3 = scmp.ne.s32.totalorder %s3787_s12, 0 }
 0x226   : > { %p3798_p0 = pnand %p3796_p10, %p3797_p3 }
 0x228   : > { %2808 = shalt.err (!%p3798_p0)  }
 0x229   : > { %1079 = dma.hbm_to_vmem [thread:$0]  %s3374_s21, 256, %s3376_s10, [#allocation7]  ;;  %vm3002_vm2 = vmmov 0   ;;  %v3003_v21 = vmov 0.0   ;;  %2313 = vmatpush3.bf16.xpose.msra.mxu0 %v2312_v20  ;;  %2319 = vmatpush3.bf16.xpose.msra.mxu1 %v2312_v20  ;;  %v768_v22 = vld [vmem:[#allocation11 + $0x10] sm:$0xff]  ;;  %v769_v23 = vld [vmem:[#allocation11 + $0x18] sm:$0xff] }
 0x22a   : > { %2165 = vmatprep.mubr.msk.f32.mxu0 %vm3002_vm2, %v3003_v21  ;;  %2176 = vmatprep.mubr.msk.f32.mxu1 %vm3002_vm2, %v3003_v21  ;;  %v2315_v24 = vpack.c.bf16 %v769_v23, %v768_v22  ;;  %vm914_vm3 = vcmask 261120   ;;  %s3799_s26 = sld [smem:[#allocation51_spill]]  ;;  %s3800_s14 = sld [smem:[#allocation52_spill]] }
 0x22b   : > { %2314 = vmatprep.subr.bf16.mxu0 %v3001_v19  ;;  %2320 = vmatprep.subr.bf16.mxu1 %v3001_v19  ;;  %s3507_s15 = smov 0  }
 0x230   : > { %v1062_v38 = vld [vmem:[%s3799_s26] sm:$0x1] }
 0x231   : > { %2316 = vmatpush3.bf16.xpose.msra.mxu0 %v2315_v24  ;;  %2322 = vmatpush3.bf16.xpose.msra.mxu1 %v2315_v24  ;;  %v1064_v41 = vld [vmem:[%s3800_s14] sm:$0x1] }
 0x232   : > { %2323 = vmatprep.subr.bf16.mxu0 %v3001_v19  ;;  %2329 = vmatprep.subr.bf16.mxu1 %v3001_v19 }
 0x238   : > { %2166 = vmatmul.mubr.f32.vlgmr.msra.gmra.mrb[0].mxu0 %v692_v12  ;;  %2177 = vmatmul.mubr.f32.vlgmr.msra.gmra.mrb[0].mxu1 %v765_v15 }
 0x239   : > { %2325 = vmatpush3.bf16.msra.mxu0 %v2312_v20  ;;  %2331 = vmatpush3.bf16.msra.mxu1 %v2312_v20 }
 0x23a   : > { %2326 = vmatprep.subr.bf16.mxu0 %v3001_v19  ;;  %2187 = vmatprep.mubr.msk.f32.mxu0 %vm3002_vm2, %v3003_v21 }
 0x23b   : > { %2332 = vmatprep.subr.bf16.mxu1 %v3001_v19  ;;  %2198 = vmatprep.mubr.msk.f32.mxu1 %vm3002_vm2, %v3003_v21 }
 0x23d   : > { %2328 = vmatpush3.bf16.msra.mxu0 %v2315_v24  ;;  %2334 = vmatpush3.bf16.msra.mxu1 %v2315_v24 }
 0x30b   : > { %v836_v25 = vpop.f32.mrb[0].mxu0  ;;  %v907_v26 = vpop.f32.mrb[0].mxu1 }
 0x30c   : > { %v840_v27 = vmul.f32 0.015625, %v836_v25  ;;  %v2167_v28 = vpop.f32.mrb[1].mxu0  ;;  %v911_v29 = vmul.f32 0.015625, %v907_v26  ;;  %v2178_v30 = vpop.f32.mrb[1].mxu1 }
 0x30e   : > { %v912_v31 = vmul.f32 %v840_v27, %v840_v27  ;;  %2188 = vmatmul.mubr.msk.f32.vlgmr.msra.gmra.mrb[2].mxu0 %vm914_vm3, %v840_v27 }
 0x310   : > { %v913_v32 = vsub.f32 %v911_v29, %v912_v31 }
 0x312   : > { %2199 = vmatmul.mubr.msk.f32.vlgmr.msra.gmra.mrb[2].mxu1 %vm914_vm3, %v913_v32 }
 0x3e1   : > { %v984_v33 = vpop.f32.mrb[2].mxu0 }
 0x3e2   : > { %v2189_v34 = vpop.f32.mrb[3].mxu0 }
 0x3e5   : > { %v1057_v35 = vpop.f32.mrb[2].mxu1 }
 0x3e6   : > { %v1058_v36 = vadd.f32 1e-06, %v1057_v35  ;;  %v2200_v37 = vpop.f32.mrb[3].mxu1 }
 0x3e8   : > { %2520 = vrsqrt.f32 %v1058_v36 }
 0x3f2   : > { %v2521_v39 = vpop.eup %2520 }
 0x3f3   : > { %v3497_v40 = vmul.f32 %v2521_v39, %v1062_v38 }
 0x3f5   : > { %v1065_v42 = vmul.f32 %v3497_v40, %v984_v33  ;;  %1067 = vst [vmem:[#allocation4] sm:$0x1] %v3497_v40 }
 0x3f7   : > { %v3504_v43 = vsub.f32 %v1064_v41, %v1065_v42 }
 0x3f9   : > { %1068 = vst [vmem:[#allocation5] sm:$0x1] %v3504_v43 }
 0x3fa LB: >> { %p1086_p7 = scmp.lt.s32.totalorder %s2984_s15, 0  ;;  %s1087_s19 = ssub.s32 0, %s2984_s15  ;;  %s2984_s15 = sphi %s3507_s15, %s3805_s15  }
 0x3fb   : >> { %s2011_s6 = smin.u32 %s2984_s15, %s1087_s19 }
 0x3fc   : >> { %s1089_s24 = sand.u32 1, %s2011_s6  }
 0x3fd   : >> { %s1090_s23 = ssub.s32 0, %s1089_s24 }
 0x3fe   : >> { %s3835_s23 = smov (!%p1086_p7, %s1090_s23), %s1089_s24 }
 0x3ff   : >> { %p2013_p2 = scmp.lt.s32.totalorder %s3835_s23, 0  ;;  %s1096_s21 = sadd.s32 2, %s3835_s23 }
 0x401   : >> { %s3837_s21 = smov (!%p2013_p2, %s1096_s21), %s3835_s23 }
 0x402   : >> { %s2014_s2 = sshll.u32 %s3837_s21, 4  ;;  %s1100_s20 = scalar_lea.sflag [#allocation7], %s3837_s21 }
 0x403   : >> { %s3515_s12 = scalar_lea.vmem [#allocation6], %s2014_s2 }
 0x404   : >> { %2932 = dma.done.wait %s1100_s20, 256 }
 0x405   : >> { %2933 = vsyncadd %s1100_s20, 4294967040  ;;  %s3518_s3 = sadd.s32 1, %s2984_s15   ;;  %s1109_s9 = ssub.s32 1, %s3837_s21  ;;  %v3004_v44 = vmov 0.0   ;;  %vm3005_vm4 = vmmov 0   ;;  %v2522_v45 = vld [vmem:[#allocation16] sm:$0xff]  }
 0x406   : >> { %2221 = vmatprep.subr.bf16.mxu1 %v3004_v44  ;;  %p2399_p9 = scmp.lt.s32.totalorder %s3518_s3, 4  ;;  %2237 = vmatprep.mubr.msk.bf16.mxu1 %vm3005_vm4, %v3004_v44  ;;  %s2016_s5 = sshll.u32 %s2984_s15, 4 }
 0x407   : >> { %s2019_s0 = sshll.u32 %s1109_s9, 4  ;;  %2201 = vmatprep.subr.bf16.mxu0 %v3004_v44  ;;  %2217 = vmatprep.mubr.msk.bf16.mxu0 %vm3005_vm4, %v3004_v44  ;;  %s1851_s18 = sadd.s32 %s2016_s5, %s2004_s4 }
 0x408   : >> { %s2018_s28 = sshll.u32 %s1851_s18, 4  ;;  %s3802_s25 = sld [smem:[#allocation49_spill]] }
 0x409   : >> { %s1115_s27 = scalar_lea.vmem [#allocation6], %s2019_s0  ;;  %s1116_s19 = scalar_lea.sflag [#allocation7], %s1109_s9 }
 0x40a   : >> { %s1124_s30 = sshll.u32 %s1115_s27, 4  ;;  %s1125_s30 = int_to_ptr.vmem [resolvable:$true] %s1124_s30 }
 0x40e   : >> { %s1853_s26 = scalar_lea.hbm %s3802_s25, %s2018_s28 }
 0x40f   : >> { %s1854_s14 = scalar_lea.hbm %s1853_s26, 256  ;;  %s2837_s6 = scalar_lea.hbm %s1853_s26, 512 }
 0x410   : >> { %p2810_p13 = scmp.ne.s32.totalorder %s1854_s14, %s2837_s6  ;;  %p2814_p11 = scmp.lt.u32.totalorder %s1854_s14, %s3802_s25 }
 0x411   : >> { %p2815_p4 = scmp.lt.u32.totalorder %s3383_s8, %s2837_s6  ;;  %p2817_p6 = scmp.lt.u32.totalorder %s2837_s6, %s1854_s14 }
 0x412   : >> { %p2811_p12 = pnand %p2810_p13, %p2399_p9 }
 0x413   : >> { %p2816_p1 = por %p2815_p4, %p2814_p11 }
 0x414   : >> { %p2812_p5 = pneg %p2811_p12 }
 0x415   : >> { %p2818_p10 = por %p2817_p6, %p2816_p1 }
 0x417   : >> { %p2819_p3 = pnand %p2818_p10, %p2812_p5 }
 0x419   : >> { %2822 = shalt.err (!%p2819_p3)  }
 0x41a   : >> { %s2823_s21 = scalar_lea.vmem %s1125_s30, 256  ;;  %p2830_p13 = scmp.lt.s32.totalorder %s1125_s30, %s3376_s10 }
 0x41b   : >> { %p2824_p0 = scmp.ne.s32.totalorder %s1125_s30, %s2823_s21  ;;  %p2831_p12 = scmp.lt.s32.totalorder %s3404_s16, %s2823_s21 }
 0x41d   : >> { %p2825_p7 = pnand %p2824_p0, %p2399_p9  ;;  %p2832_p8 = por %p2831_p12, %p2830_p13 }
 0x41f   : >> { %p2826_p2 = pneg %p2825_p7 }
 0x421   : >> { %p2833_p4 = pnand %p2832_p8, %p2826_p2 }
 0x423   : >> { %2836 = shalt.err (!%p2833_p4)  }
 0x424   : >> { %2360 = dma.hbm_to_vmem [thread:$0]  (%p2399_p9), %s1854_s14, 256, %s1125_s30, %s1116_s19  ;;  %2222 = vmatpush3.bf16.msra.mxu1 %v2522_v45  ;;  %v2523_v46 = vld [vmem:[#allocation16 + $0x8] sm:$0xff]   ;;  %v1130_v47 = vlaneseq  ;;  %v2524_v48 = vld [vmem:[#allocation16 + $0x10] sm:$0xff]   ;;  %v2530_v50 = vld [vmem:[#allocation14] sm:$0xff]  }
 0x425   : >> { %2223 = vmatprep.subr.bf16.mxu1 %v3004_v44  ;;  %v2525_v51 = vld [vmem:[#allocation16 + $0x18] sm:$0xff]   ;;  %2202 = vmatpush3.bf16.msra.mxu0 %v2530_v50  ;;  %v2531_v52 = vld [vmem:[#allocation14 + $0x8] sm:$0xff]   ;;  %v2526_v54 = vld [vmem:[#allocation16 + $0x20] sm:$0xff]   ;;  %s3803_s20 = sld [smem:[#allocation59_spill]]  ;;  %s1477_s17 = sshra.s32 %s2016_s5, 4 }
 0x426   : >> { %v1131_v49 = vshrl.u32 %v1130_v47, 7  ;;  %2203 = vmatprep.subr.bf16.mxu0 %v3004_v44  ;;  %v2532_v55 = vld [vmem:[#allocation14 + $0x10] sm:$0xff]   ;;  %v2527_v56 = vld [vmem:[#allocation16 + $0x28] sm:$0xff]   ;;  %v1128_v57 = vld [vmem:[%s3515_s12] sm:$0xff]  ;;  %s3804_s18 = sld [smem:[#allocation57_spill]]  ;;  %s2047_s28 = sshll.u32 %s1477_s17, 3 }
 0x427   : >> { %v1129_v59 = vld [vmem:[%s3515_s12 + $0x8] sm:$0xff]  ;;  %v2533_v60 = vld [vmem:[#allocation14 + $0x18] sm:$0xff]   ;;  %v2528_v0 = vld [vmem:[#allocation16 + $0x30] sm:$0xff]   ;;  %s1480_s11 = scalar_lea.vmem [#allocation2], %s2047_s28  ;;  %s1484_s15 = scalar_lea.vmem [#allocation3], %s2047_s28 }
 0x428   : >> { %2224 = vmatpush3.bf16.msra.mxu1 %v2523_v46  ;;  %v1132_v53 = vsub.s32 0, %v1131_v49  ;;  %v2534_v1 = vld [vmem:[#allocation14 + $0x20] sm:$0xff]   ;;  %v2529_v4 = vld [vmem:[#allocation16 + $0x38] sm:$0xff]   ;;  %v2535_v5 = vld [vmem:[#allocation14 + $0x28] sm:$0xff]   ;;  %p3806_p8 = scmp.ge.s32.totalorder %s3518_s3, 4 }
 0x429   : >> { %2225 = vmatprep.subr.bf16.mxu1 %v3004_v44  ;;  %2204 = vmatpush3.bf16.msra.mxu0 %v2531_v52  ;;  %v2536_v7 = vld [vmem:[#allocation14 + $0x30] sm:$0xff]   ;;  %v2537_v8 = vld [vmem:[#allocation14 + $0x38] sm:$0xff]   ;;  %v2538_v9 = vld [vmem:[#allocation17] sm:$0xff]  }
 0x42a   : >> { %2205 = vmatprep.subr.bf16.mxu0 %v3004_v44  ;;  %v1133_v58 = vrot.slane %v3497_v40, %v1132_v53  ;;  %v1140_v63 = vrot.slane %v3504_v43, %v1132_v53  ;;  %v2539_v10 = vld [vmem:[#allocation17 + $0x8] sm:$0xff]   ;;  %v2540_v11 = vld [vmem:[#allocation17 + $0x10] sm:$0xff]   ;;  %v2541_v12 = vld [vmem:[#allocation17 + $0x18] sm:$0xff]  }
 0x42b   : >> { %v2542_v13 = vld [vmem:[#allocation17 + $0x20] sm:$0xff]   ;;  %v2543_v14 = vld [vmem:[#allocation17 + $0x28] sm:$0xff]   ;;  %v2544_v15 = vld [vmem:[#allocation17 + $0x30] sm:$0xff]  }
 0x42c   : >> { %2226 = vmatpush3.bf16.msra.mxu1 %v2524_v48  ;;  %v1134_v61 = vmul.f32 %v1133_v58, %v1128_v57  ;;  %v1135_v62 = vmul.f32 %v1133_v58, %v1129_v59  ;;  %v2545_v16 = vld [vmem:[#allocation17 + $0x38] sm:$0xff]  }
 0x42d   : >> { %2227 = vmatprep.subr.bf16.mxu1 %v3004_v44  ;;  %2206 = vmatpush3.bf16.msra.mxu0 %v2532_v55  ;;  %v2029_v17 = vld [vmem:[%s3803_s20] ss:$0 sm:$0xff] }
 0x42e   : >> { %2207 = vmatprep.subr.bf16.mxu0 %v3004_v44  ;;  %v1142_v2 = vadd.f32 %v1140_v63, %v1134_v61  ;;  %v1143_v3 = vadd.f32 %v1140_v63, %v1135_v62  ;;  %v2020_v25 = vld [vmem:[%s3804_s18] ss:$0 sm:$0xff] }
 0x430   : >> { %2228 = vmatpush3.bf16.msra.mxu1 %v2525_v51  ;;  %v1144_v6 = vpack.c.bf16 %v1143_v3, %v1142_v2 }
 0x431   : >> { %2229 = vmatprep.subr.bf16.mxu1 %v3004_v44  ;;  %2208 = vmatpush3.bf16.msra.mxu0 %v2533_v60 }
 0x432   : >> { %2209 = vmatprep.subr.bf16.mxu0 %v3004_v44 }
 0x434   : >> { %2230 = vmatpush3.bf16.msra.mxu1 %v2526_v54 }
 0x435   : >> { %2231 = vmatprep.subr.bf16.mxu1 %v3004_v44  ;;  %2210 = vmatpush3.bf16.msra.mxu0 %v2534_v1 }
 0x436   : >> { %2211 = vmatprep.subr.bf16.mxu0 %v3004_v44 }
 0x438   : >> { %2232 = vmatpush3.bf16.msra.mxu1 %v2527_v56 }
 0x439   : >> { %2233 = vmatprep.subr.bf16.mxu1 %v3004_v44  ;;  %2212 = vmatpush3.bf16.msra.mxu0 %v2535_v5 }
 0x43a   : >> { %2213 = vmatprep.subr.bf16.mxu0 %v3004_v44 }
 0x43c   : >> { %2234 = vmatpush3.bf16.msra.mxu1 %v2528_v0 }
 0x43d   : >> { %2235 = vmatprep.subr.bf16.mxu1 %v3004_v44  ;;  %2214 = vmatpush3.bf16.msra.mxu0 %v2536_v7 }
 0x43e   : >> { %2215 = vmatprep.subr.bf16.mxu0 %v3004_v44 }
 0x440   : >> { %2236 = vmatpush3.bf16.msra.mxu1 %v2529_v4 }
 0x441   : >> { %2216 = vmatpush3.bf16.msra.mxu0 %v2537_v8 }
 0x442   : >> { %2241 = vmatprep.subr.bf16.mxu0 %v3004_v44 }
 0x443   : >> { %2238 = vmatmul.mubr.bf16.vlgmr.msra.gmra.mrb[0].mxu1 %v1144_v6 }
 0x444   : >> { %2218 = vmatmul.mubr.bf16.vlgmr.msra.gmra.mrb[0].mxu0 %v1144_v6 }
 0x445   : >> { %2242 = vmatpush3.bf16.msra.mxu0 %v2538_v9  ;;  %2257 = vmatprep.mubr.msk.bf16.mxu0 %vm3005_vm4, %v3004_v44 }
 0x446   : >> { %2243 = vmatprep.subr.bf16.mxu0 %v3004_v44 }
 0x449   : >> { %2244 = vmatpush3.bf16.msra.mxu0 %v2539_v10 }
 0x44a   : >> { %2245 = vmatprep.subr.bf16.mxu0 %v3004_v44 }
 0x44d   : >> { %2246 = vmatpush3.bf16.msra.mxu0 %v2540_v11 }
 0x44e   : >> { %2247 = vmatprep.subr.bf16.mxu0 %v3004_v44 }
 0x451   : >> { %2248 = vmatpush3.bf16.msra.mxu0 %v2541_v12 }
 0x452   : >> { %2249 = vmatprep.subr.bf16.mxu0 %v3004_v44 }
 0x455   : >> { %2250 = vmatpush3.bf16.msra.mxu0 %v2542_v13 }
 0x456   : >> { %2251 = vmatprep.subr.bf16.mxu0 %v3004_v44 }
 0x459   : >> { %2252 = vmatpush3.bf16.msra.mxu0 %v2543_v14 }
 0x45a   : >> { %2253 = vmatprep.subr.bf16.mxu0 %v3004_v44 }
 0x45d   : >> { %2254 = vmatpush3.bf16.msra.mxu0 %v2544_v15 }
 0x45e   : >> { %2255 = vmatprep.subr.bf16.mxu0 %v3004_v44 }
 0x461   : >> { %2256 = vmatpush3.bf16.msra.mxu0 %v2545_v16 }
 0x516   : >> { %v1362_v18 = vpop.f32.mrb[0].mxu1 }
 0x517   : >> { %v2239_v19 = vpop.f32.mrb[1].mxu1  ;;  %v1363_v21 = vadd.f32 %v2029_v17, %v1362_v18  ;;  %v1250_v26 = vpop.f32.mrb[0].mxu0 }
 0x518   : >> { %v1365_v20 = vpop.f32.mrb[2].mxu1  ;;  %v1251_v27 = vadd.f32 %v2020_v25, %v1250_v26  ;;  %v2219_v28 = vpop.f32.mrb[1].mxu0 }
 0x519   : >> { %v1366_v22 = vadd.f32 %v2029_v17, %v1365_v20  ;;  %v2240_v23 = vpop.f32.mrb[3].mxu1  ;;  %v1253_v29 = vpop.f32.mrb[2].mxu0 }
 0x51a   : >> { %v1254_v30 = vadd.f32 %v2020_v25, %v1253_v29  ;;  %v2220_v31 = vpop.f32.mrb[3].mxu0 }
 0x51b   : >> { %v1369_v24 = vpack.c.bf16 %v1366_v22, %v1363_v21 }
 0x51c   : >> { %v1476_v32 = vpack.c.bf16 %v1254_v30, %v1251_v27 }
 0x51d   : >> { %2258 = vmatmul.mubr.bf16.vlgmr.msra.gmra.mrb[4].mxu0 %v1369_v24 }
 0x51e   : >> { %1481 = vst [vmem:[%s1480_s11] sm:$0xff] %v1476_v32 }
 0x5ef   : > { %1084 = sbr.rel (!%p3806_p8) target bundleno = 1018 (0x3fa), region = 200 }
 0x5f0   : >> { %v1468_v33 = vpop.f32.mrb[4].mxu0 }
 0x5f1   : >> { %v2259_v34 = vpop.f32.mrb[5].mxu0 }
 0x5f2   : >> { %v1471_v35 = vpop.f32.mrb[6].mxu0 }
 0x5f3   : >> { %v1482_v36 = vpack.c.bf16 %v1471_v35, %v1468_v33  ;;  %v2260_v37 = vpop.f32.mrb[7].mxu0 }
 0x5f5   : >> { %1485 = vst [vmem:[%s1484_s15] sm:$0xff] %v1482_v36  ;;  %s3805_s15 = smov %s3518_s3 }
 0x5f6 PF: > { %v2546_v38 = vld [vmem:[#allocation13] sm:$0xff]   ;;  %v3006_v39 = vmov 0.0   ;;  %v2547_v41 = vld [vmem:[#allocation13 + $0x8] sm:$0xff]   ;;  %vm3007_vm5 = vmmov 0   ;;  %v2548_v40 = vld [vmem:[#allocation13 + $0x10] sm:$0xff]   ;;  %s3807_s8 = sld [smem:[#allocation55_spill]] }
 0x5f7   : > { %2261 = vmatprep.subr.bf16.mxu0 %v3006_v39  ;;  %2281 = vmatprep.subr.bf16.mxu1 %v3006_v39  ;;  %v1622_v42 = vld [vmem:[#allocation2] sm:$0xff]  ;;  %v1623_v45 = vld [vmem:[#allocation2 + $0x8] sm:$0xff]  ;;  %v2552_v52 = vld [vmem:[#allocation13 + $0x30] sm:$0xff]   ;;  %vm1667_vm6 = vcmask 523264   ;;  %s3808_s16 = sld [smem:[#allocation40_spill]]  ;;  %s3809_s4 = sld [smem:[#allocation41_spill]] }
 0x5f8   : > { %2262 = vmatpush3.bf16.msra.mxu0 %v2546_v38  ;;  %2277 = vmatprep.mubr.msk.bf16.mxu0 %vm3007_vm5, %v3006_v39  ;;  %v2549_v43 = vld [vmem:[#allocation13 + $0x18] sm:$0xff]   ;;  %v2550_v44 = vld [vmem:[#allocation13 + $0x20] sm:$0xff]   ;;  %v2551_v46 = vld [vmem:[#allocation13 + $0x28] sm:$0xff]   ;;  %s3810_s27 = sld [smem:[#allocation61_spill]]  ;;  %s1770_s14 = sshll.u32 %s3367_s7, 4  ;;  %s3640_s14 = int_to_ptr.vmem [resolvable:$true] %s1770_s14 }
 0x5f9   : > { %2263 = vmatprep.subr.bf16.mxu0 %v3006_v39  ;;  %2289 = vmatprep.mubr.msk.bf16.mxu1 %vm3007_vm5, %v3006_v39  ;;  %v3601_v47 = vld [vmem:[%s3349_s22] sm:$0xff]  ;;  %v3604_v48 = vld [vmem:[%s3349_s22 + $0x8] sm:$0xff]  ;;  %s3811_s24 = sld [smem:[#allocation62_spill]]  ;;  %s1753_s21 = scalar_lea.sflag [#allocation10], %s3345_s29 }
 0x5fa   : > { %2282 = vmatpush3.bf16.xpose.msra.mxu1 %v1622_v42  ;;  %v2049_v49 = vld [vmem:[#allocation4] ss:$0 sm:$0xff]  ;;  %v2050_v53 = vld [vmem:[#allocation5] ss:$0 sm:$0xff]  ;;  %v1624_v54 = vld [vmem:[#allocation2 + $0x10] sm:$0xff]  ;;  %s2838_s2 = scalar_lea.vmem %s3640_s14, 256 }
 0x5fb   : > { %2283 = vmatprep.subr.bf16.mxu1 %v3006_v39  ;;  %v1495_v50 = vmul.f32 %v2049_v49, %v3601_v47  ;;  %v1496_v51 = vmul.f32 %v2049_v49, %v3604_v48  ;;  %v2553_v57 = vld [vmem:[#allocation13 + $0x38] sm:$0xff]   ;;  %p2839_p9 = scmp.ne.s32.totalorder %s3640_s14, %s2838_s2  ;;  %p3812_p5 = scmp.ne.s32.totalorder %s3773_s13, 0 }
 0x5fc   : > { %2264 = vmatpush3.bf16.msra.mxu0 %v2547_v41  ;;  %v1625_v59 = vld [vmem:[#allocation2 + $0x18] sm:$0xff]  ;;  %v2051_v60 = vld [vmem:[%s3807_s8] ss:$0 sm:$0xff]  ;;  %v1688_v13 = vld [vmem:[#allocation3 + $0x8] sm:$0xff]  ;;  %s3008_s12 = smov [#allocation19]  }
 0x5fd   : > { %2265 = vmatprep.subr.bf16.mxu0 %v3006_v39  ;;  %v1504_v55 = vadd.f32 %v2050_v53, %v1495_v50  ;;  %v1505_v56 = vadd.f32 %v2050_v53, %v1496_v51  ;;  %v1687_v12 = vld [vmem:[#allocation3] sm:$0xff]  ;;  %v1689_v14 = vld [vmem:[#allocation3 + $0x10] sm:$0xff]  ;;  %v1690_v15 = vld [vmem:[#allocation3 + $0x18] sm:$0xff]  ;;  %s2063_s3 = sshll.u32 %s3808_s16, 1  ;;  %s2064_s5 = sshll.u32 %s3809_s4, 3 }
 0x5fe   : > { %s1767_s1 = sadd.s32 %s2064_s5, %s2063_s3  ;;  %v2061_v34 = vld [vmem:[%s3810_s27] ss:$0 sm:$0xff]  ;;  %p2840_p11 = pnand %p2839_p9, %p3812_p5 }
 0x5ff   : > { %v1506_v58 = vpack.c.bf16 %v1505_v56, %v1504_v55  ;;  %s2065_s30 = sshll.u32 %s1767_s1, 7  ;;  %s2842_s20 = sshll.u32 %s3008_s12, 4  ;;  %s2843_s20 = int_to_ptr.vmem [resolvable:$false] %s2842_s20 }
 0x600   : > { %2266 = vmatpush3.bf16.msra.mxu0 %v2548_v40  ;;  %s3638_s23 = scalar_lea.hbm %s3811_s24, %s2065_s30  ;;  %p2841_p1 = pneg %p2840_p11 }
 0x601   : > { %2267 = vmatprep.subr.bf16.mxu0 %v3006_v39  ;;  %s2844_s17 = scalar_lea.vmem %s2843_s20, 512  ;;  %p2845_p6 = scmp.lt.s32.totalorder %s3640_s14, %s2843_s20 }
 0x602   : > { %2284 = vmatpush3.bf16.xpose.msra.mxu1 %v1623_v45  ;;  %p2846_p10 = scmp.lt.s32.totalorder %s2844_s17, %s2838_s2 }
 0x603   : > { %2285 = vmatprep.subr.bf16.mxu1 %v3006_v39 }
 0x604   : > { %2268 = vmatpush3.bf16.msra.mxu0 %v2549_v43  ;;  %p2847_p3 = por %p2846_p10, %p2845_p6 }
 0x605   : > { %2269 = vmatprep.subr.bf16.mxu0 %v3006_v39 }
 0x606   : > { %p2848_p0 = pnand %p2847_p3, %p2841_p1 }
 0x608   : > { %2270 = vmatpush3.bf16.msra.mxu0 %v2550_v44 }
 0x609   : > { %2271 = vmatprep.subr.bf16.mxu0 %v3006_v39 }
 0x60a   : > { %2286 = vmatpush3.bf16.xpose.msra.mxu1 %v1624_v54 }
 0x60b   : > { %2287 = vmatprep.subr.bf16.mxu1 %v3006_v39 }
 0x60c   : > { %2272 = vmatpush3.bf16.msra.mxu0 %v2551_v46 }
 0x60d   : > { %2273 = vmatprep.subr.bf16.mxu0 %v3006_v39 }
 0x610   : > { %2274 = vmatpush3.bf16.msra.mxu0 %v2552_v52 }
 0x611   : > { %2275 = vmatprep.subr.bf16.mxu0 %v3006_v39 }
 0x612   : > { %2288 = vmatpush3.bf16.xpose.msra.mxu1 %v1625_v59 }
 0x614   : > { %2276 = vmatpush3.bf16.msra.mxu0 %v2553_v57 }
 0x615   : > { %2293 = vmatprep.subr.bf16.mxu0 %v3006_v39 }
 0x617   : > { %2278 = vmatmul.mubr.bf16.vlgmr.msra.gmra.mrb[0].mxu0 %v1506_v58 }
 0x618   : > { %2301 = vmatprep.mubr.msk.bf16.mxu0 %vm3007_vm5, %v3006_v39  ;;  %2294 = vmatpush3.bf16.msra.mxu0 %v1687_v12 }
 0x619   : > { %2295 = vmatprep.subr.bf16.mxu0 %v3006_v39 }
 0x61c   : > { %2296 = vmatpush3.bf16.msra.mxu0 %v1688_v13 }
 0x61d   : > { %2297 = vmatprep.subr.bf16.mxu0 %v3006_v39 }
 0x620   : > { %2298 = vmatpush3.bf16.msra.mxu0 %v1689_v14 }
 0x621   : > { %2299 = vmatprep.subr.bf16.mxu0 %v3006_v39 }
 0x624   : > { %2300 = vmatpush3.bf16.msra.mxu0 %v1690_v15 }
 0x6ea   : > { %v1612_v61 = vpop.f32.mrb[0].mxu0 }
 0x6eb   : > { %v1613_v62 = vadd.f32 %v2051_v60, %v1612_v61  ;;  %v2279_v63 = vpop.f32.mrb[1].mxu0 }
 0x6ec   : > { %v1615_v0 = vpop.f32.mrb[2].mxu0 }
 0x6ed   : > { %v1616_v1 = vadd.f32 %v2051_v60, %v1615_v0  ;;  %v2280_v2 = vpop.f32.mrb[3].mxu0  ;;  %v1619_v3 = vmul.f32 0.17677669, %v1613_v62 }
 0x6ef   : > { %v1620_v4 = vmul.f32 0.17677669, %v1616_v1 }
 0x6f1   : > { %v1621_v5 = vpack.c.bf16 %v1620_v4, %v1619_v3 }
 0x6f3   : > { %2290 = vmatmul.mubr.bf16.vlgmr.msra.gmra.mrb[0].mxu1 %v1621_v5 }
 0x7c6   : > { %v1660_v6 = vpop.f32.mrb[0].mxu1 }
 0x7c7   : > { %v2291_v7 = vpop.f32.mrb[1].mxu1  ;;  %v1668_v8 = vsel %vm1667_vm6, %v1660_v6, -inf }
 0x7c8   : > { %1669 = vmax.xlane.f32.xlu0 %v1668_v8  ;;  %v1663_v9 = vpop.f32.mrb[2].mxu1 }
 0x7c9   : > { %v2292_v10 = vpop.f32.mrb[3].mxu1  ;;  %v1671_v11 = vsel %vm1667_vm6, %v1663_v9, -inf }
 0x7cc   : > { %1672 = vmax.xlane.f32.xlu0 %v1671_v11 }
 0x855   : > { %v1670_v16 = vpop.xlane.xlu0 %1669 }
 0x856   : > { %v1674_v17 = vsub.f32 %v1660_v6, %v1670_v16 }
 0x858   : > { %v1676_v18 = vmul.f32 1.442695, %v1674_v17 }
 0x859   : > { %v1673_v19 = vpop.xlane.xlu0 %1672 }
 0x85a   : > { %2554 = vpow2.f32 %v1676_v18  ;;  %v1675_v20 = vsub.f32 %v1663_v9, %v1673_v19 }
 0x85c   : > { %v1678_v21 = vmul.f32 1.442695, %v1675_v20 }
 0x85e   : > { %2556 = vpow2.f32 %v1678_v21 }
 0x864   : > { %v2555_v22 = vpop.eup %2554 }
 0x865   : > { %v1680_v23 = vsel %vm1667_vm6, %v2555_v22, 0.0 }
 0x866   : > { %1681 = vadd.xlane.f32.xlu1 %v1680_v23 }
 0x868   : > { %v2557_v24 = vpop.eup %2556 }
 0x869   : > { %v1683_v25 = vsel %vm1667_vm6, %v2557_v24, 0.0  ;;  %v1686_v26 = vpack.c.bf16 %v2557_v24, %v2555_v22 }
 0x86a   : > { %1684 = vadd.xlane.f32.xlu1 %v1683_v25 }
 0x86b   : > { %2302 = vmatmul.mubr.msk.bf16.vlgmr.msra.gmra.mrb[4].mxu0 %vm1667_vm6, %v1686_v26 }
 0x8f3   : > { %v1682_v27 = vpop.xlane.xlu1 %1681 }
 0x8f4   : > { %2558 = vrcp.f32 %v1682_v27 }
 0x8f7   : > { %v1685_v28 = vpop.xlane.xlu1 %1684 }
 0x8f8   : > { %2560 = vrcp.f32 %v1685_v28 }
 0x8fe   : > { %v2559_v29 = vpop.eup %2558 }
 0x902   : > { %v2561_v33 = vpop.eup %2560 }
 0x93e   : > { %v1728_v30 = vpop.f32.mrb[4].mxu0 }
 0x93f   : > { %v1737_v31 = vmul.f32 %v2559_v29, %v1728_v30  ;;  %v2303_v32 = vpop.f32.mrb[5].mxu0 }
 0x940   : > { %v1731_v35 = vpop.f32.mrb[6].mxu0 }
 0x941   : > { %v1739_v36 = vadd.f32 %v1737_v31, %v3601_v47  ;;  %v1738_v37 = vmul.f32 %v2561_v33, %v1731_v35  ;;  %v2304_v38 = vpop.f32.mrb[7].mxu0 }
 0x943   : > { %v1748_v39 = vadd.f32 %v2061_v34, %v1739_v36  ;;  %v1740_v41 = vadd.f32 %v1738_v37, %v3604_v48 }
 0x945   : > { %1750 = vst [vmem:[%s3367_s7] sm:$0xff] %v1748_v39  ;;  %v1749_v40 = vadd.f32 %v2061_v34, %v1740_v41 }
 0x947   : > { %1751 = vst [vmem:[%s3367_s7 + $0x8] sm:$0xff] %v1749_v40 }
 0x948   : > { %2851 = shalt.err (!%p2848_p0)
}
 0x949   : > { %s2852_s7 = scalar_lea.hbm %s3638_s23, 256  ;;  %s2856_s18 = scalar_lea.hbm %s3811_s24, 2048 }
 0x94a   : > { %p2853_p7 = scmp.ne.s32.totalorder %s3638_s23, %s2852_s7  ;;  %p2857_p12 = scmp.lt.u32.totalorder %s3638_s23, %s3811_s24 }
 0x94b   : > { %p2858_p4 = scmp.lt.u32.totalorder %s2856_s18, %s2852_s7  ;;  %p2860_p9 = scmp.lt.u32.totalorder %s2852_s7, %s3638_s23 }
 0x94c   : > { %p2854_p2 = pnand %p2853_p7, %p3812_p5 }
 0x94d   : > { %p2859_p8 = por %p2858_p4, %p2857_p12 }
 0x94e   : > { %p2855_p13 = pneg %p2854_p2 }
 0x94f   : > { %p2861_p11 = por %p2860_p9, %p2859_p8 }
 0x951   : > { %p2862_p1 = pnand %p2861_p11, %p2855_p13 }
 0x953   : > { %2865 = shalt.err (!%p2862_p1)
}
 0x954   : > { %s3009_s15 = smov 128   ;;  %s3010_s22 = smov 8  }
 0x955   : > { %2361 = dma.vmem_to_hbm [thread:$0]  (%p3812_p5), %s3640_s14, 256, %s3638_s23, %s1753_s21, %s3009_s15, %s3009_s15, %s3010_s22  }
 0x956 PF: > { %s3813_s10 = sld [smem:[#allocation44_spill]]  ;;  %s3814_s8 = sld [smem:[#allocation37_spill]] }
 0x957   : > { %s3815_s16 = sld [smem:[#allocation47_spill]] }
 0x95c   : > { %p2400_p6 = scmp.ge.s32.totalorder %s3813_s10, 2  ;;  %s1785_s4 = sand.u32 1, %s3814_s8  }
 0x95d   : > { %p3816_p10 = scmp.ne.s32.totalorder %s3815_s16, 0  ;;  %s1786_s3 = scalar_lea.sflag [#allocation10], %s1785_s4 }
 0x95f   : > { %p2384_p3 = pnand %p2400_p6, %p3816_p10 }
 0x961   : > { %2935 = dma.done.wait (!%p2384_p3), %s1786_s3, 256  }
 0x962   : > { %2937 = vsyncadd (!%p2384_p3), %s1786_s3, 4294967040  ;;  %s32_s15 = sadd.s32 1, %s3813_s10   ;;  %s3817_s25 = sld [smem:[#allocation38_spill]] }
 0x963   : > { %p29_p0 = scmp.ge.s32.totalorder %s32_s15, 10   ;;  %s3818_s26 = sld [smem:[#allocation39_spill]] }
 0x964   : > { %s3819_s27 = sld [smem:[#allocation48_spill]]  ;;  %s3820_s28 = sld [smem:[#allocation42_spill]] }
 0x965   : > { %s3821_s29 = sld [smem:[#allocation43_spill]]  ;;  %s3822_s30 = sld [smem:[#allocation45_spill]] }
 0x966   : > { %s3823_s14 = sld [smem:[#allocation46_spill]]  ;;  %31 = sbr.rel (!%p29_p0) target bundleno = 25 (0x19), region = 211 }
 0x96d   :  { %1791 = vsyncpa [#allocation9], 1 }
 0x96e   :  { %1793 = vsyncpa [#allocation9 + $0x1], 1 }
 0x96f   :  { %1794 = vsyncpa [#allocation12], 1 }
 0x970   :  { %1795 = vsyncpa [#allocation15], 1 }
 0x971   :  { %1796 = vsyncpa [#allocation18], 1 }
 0x972   :  { %1797 = vsyncpa [#allocation10], 1 }
 0x973   :  { %1799 = vsyncpa [#allocation10 + $0x1], 1 }
 0x974   :  { %1800 = vsyncmov [#allocation7] }
 0x977   :  { %s1801_s13 = vpop.sfrf %1800 }
 0x978   :  { %p2068_p5 = scmp.ne.s32.totalorder %s1801_s13, 0 }
 0x97a   :  { %1805 = shalt.err (%p2068_p5)  }
 0x97b   :  { %1807 = vsyncmov [#allocation7 + $0x1] }
 0x97e   :  { %s1808_s5 = vpop.sfrf %1807 }
 0x97f   :  { %p2069_p7 = scmp.ne.s32.totalorder %s1808_s5, 0 }
 0x981   :  { %1812 = shalt.err (%p2069_p7)  }

</bundles_post_ra>
